<compile_context>
chip_gen: v7x
topology: tpu7x:2x2x1
jax: 0.10.0
libtpu: 0.0.40
codegen_flags: <defaults>
</compile_context>

<pallas_src>
import functools

import numpy as np
import jax
import jax.numpy as jnp
from jax import lax
from jax.experimental import pallas as pl
from jax.experimental.pallas import tpu as pltpu


def _round_up(v, m):
    return (v + m - 1) // m * m


def _vmem_cap_bytes():
    # Leave headroom below physical VMEM (64 MiB on v7x, 128 MiB on v5e/v6e).
    phys = 64 << 20
    try:
        phys = int(getattr(pltpu.get_tpu_info(), "vmem_capacity_bytes", phys))
    except Exception:
        pass
    return max(min(phys - (16 << 20), 112 << 20), 32 << 20)


# ----------------------------------------------------------------------------
# Fused Pallas kernel: 15 x (3x3 conv + bias [+ ReLU]) entirely in VMEM
# ----------------------------------------------------------------------------
def _ffdnet_fused_kernel(x_ref, mask_ref, w_ref, b_ref, o_ref, buf_ref, *,
                         nb, H, W, cin0, cout, o0):
    # x_ref:    (1, cin0, L)     pre-zero-padded, flattened input (one batch elem)
    # mask_ref: (1, NWIN)        1.0 on valid lanes, 0.0 on the 2 wrap lanes/row
    # w_ref:    (nb, 9, C, C)    packed weights, w[l, tap, c_out, c_in]
    # b_ref:    (nb, C, 1)       packed biases
    # o_ref:    (1, cout, NWIN)  last layer output window
    # buf_ref:  (2, C, L)        ping-pong activation buffers (flat, zero halo)
    C = buf_ref.shape[1]
    L = buf_ref.shape[2]
    Wp = W + 2
    NWIN = H * Wp

    # Per-step init: only the head/tail lanes that the layer stores never touch
    # (top halo row + bottom halo tail). In-window halo lanes are re-zeroed by
    # every masked layer store below, so each grid step is self-contained.
    for s in range(2):
        buf_ref[s, :, 0:o0] = jnp.zeros((C, o0), jnp.float32)
        buf_ref[s, :, o0 + NWIN:L] = jnp.zeros((C, L - o0 - NWIN), jnp.float32)

    # Load the pre-padded, flattened input into slot 0 (one lane-dense copy).
    buf_ref[0, 0:cin0, :] = x_ref[0]

    def conv_layer(src_slot, wl, bl, c_in, c_out, relu):
        # wl: (9, C, C) value, bl: (C, 1) value.
        # out[co, j] = sum_t sum_ci wl[t, co, ci] * act[ci, j + off_t]  (+ bias)
        acc = None
        for ky in range(3):
            for kx in range(3):
                start = o0 - Wp - 1 + ky * Wp + kx
                rhs = buf_ref[src_slot, 0:c_in, start:start + NWIN]
                lhs = wl[ky * 3 + kx, 0:c_out, 0:c_in]
                d = jnp.dot(lhs, rhs, preferred_element_type=jnp.float32)
                acc = d if acc is None else acc + d
        acc = acc + bl[0:c_out, :]
        if relu:
            acc = jnp.maximum(acc, 0.0)
        return acc

    def store_mid(dst_slot, val):
        # Zero the wrap-around lanes (they alias halo positions of the next
        # layer) and store the whole window with a 128-aligned lane start.
        buf_ref[dst_slot, :, o0:o0 + NWIN] = val * mask_ref[...]

    # Layer 0: cin0 -> C, ReLU, slot0 -> slot1.  Contracts only the cin0 real
    # input channels (no work on the zero-padded channel tail).
    store_mid(1, conv_layer(0, w_ref[0], b_ref[0], cin0, C, True))

    # Middle layers in ping-pong pairs: static buffer slots, dynamic layer idx.
    n_mid = nb - 2
    n_pairs = n_mid // 2

    def pair_body(p, carry):
        l = 1 + 2 * p
        store_mid(0, conv_layer(1, w_ref[l], b_ref[l], C, C, True))
        store_mid(1, conv_layer(0, w_ref[l + 1], b_ref[l + 1], C, C, True))
        return carry

    if n_pairs > 0:
        lax.fori_loop(0, n_pairs, pair_body, 0)

    l_next = 1 + 2 * n_pairs
    if n_mid % 2 == 1:
        s = l_next % 2
        store_mid(1 - s, conv_layer(s, w_ref[l_next], b_ref[l_next], C, C, True))

    # Last layer: C -> cout, no ReLU, straight to the output block (only the
    # cout real output rows are computed).
    s_last = (nb - 1) % 2
    o_ref[0] = conv_layer(s_last, w_ref[nb - 1], b_ref[nb - 1],
                          C, cout, False).astype(o_ref.dtype)


def ffdnet_conv_stack(x, w_packed, b_packed, cout):
    """x: (N, Cin0, H, W) f32 (post pixel-unshuffle, channel-major)."""
    N, Cin0, H, W = x.shape
    nb, _, C, _ = w_packed.shape
    Wp, Hp = W + 2, H + 2
    NWIN = H * Wp
    o0 = _round_up(Wp + 1, 128)                 # lane-aligned interior start
    L = _round_up(o0 + NWIN + Wp + 1, 128)      # covers every tap window

    # Zero-pad the 1px conv halo and embed into the flat per-channel layout
    # (interior pixel (y, x) lives at lane index o0 + y*Wp + x).
    xp = jnp.pad(x, ((0, 0), (0, 0), (1, 1), (1, 1)))
    xf = xp.reshape(N, Cin0, Hp * Wp)
    front = o0 - (Wp + 1)
    xf = jnp.pad(xf, ((0, 0), (0, 0), (front, L - front - Hp * Wp)))

    # {0,1} mask of the valid (non wrap-around) lanes of the output window.
    m = np.zeros((H, Wp), np.float32)
    m[:, :W] = 1.0
    mask = jnp.asarray(m.reshape(1, NWIN))

    kernel = functools.partial(_ffdnet_fused_kernel, nb=nb, H=H, W=W,
                               cin0=Cin0, cout=cout, o0=o0)

    # VMEM budget, accounting for Mosaic's (8, 128) padding of the minor dims.
    def _padded_bytes(shape, itemsize=4):
        s = list(shape)
        s[-1] = _round_up(s[-1], 128)
        if len(s) >= 2:
            s[-2] = _round_up(s[-2], 8)
        n = 1
        for d in s:
            n *= d
        return n * itemsize

    vmem_need = (_padded_bytes((2, C, L))               # ping-pong activations
                 + _padded_bytes((nb, 9, C, C))         # resident weights
                 + _padded_bytes((nb, C, 1))            # resident bias
                 + 2 * _padded_bytes((1, Cin0, L))      # double-buffered input
                 + 2 * _padded_bytes((1, cout, NWIN))   # double-buffered output
                 + 2 * _padded_bytes((1, NWIN))         # mask
                 + 6 * _padded_bytes((C, NWIN)))        # acc + tap staging temps
    vmem_limit = int(min(max(vmem_need + (8 << 20), 32 << 20), _vmem_cap_bytes()))

    out = pl.pallas_call(
        kernel,
        out_shape=jax.ShapeDtypeStruct((N, cout, NWIN), x.dtype),
        grid_spec=pltpu.PrefetchScalarGridSpec(
            num_scalar_prefetch=0,
            grid=(N,),
            in_specs=[
                pl.BlockSpec((1, Cin0, L), lambda n: (n, 0, 0)),
                pl.BlockSpec((1, NWIN), lambda n: (0, 0)),
                pl.BlockSpec((nb, 9, C, C), lambda n: (0, 0, 0, 0)),
                pl.BlockSpec((nb, C, 1), lambda n: (0, 0, 0)),
            ],
            out_specs=pl.BlockSpec((1, cout, NWIN), lambda n: (n, 0, 0)),
            scratch_shapes=[pltpu.VMEM((2, C, L), jnp.float32)],
        ),
        compiler_params=pltpu.CompilerParams(
            dimension_semantics=("parallel",),
            vmem_limit_bytes=vmem_limit),
    )(xf, mask, w_packed, b_packed)

    # Drop the 2 wrap-around columns per row: (N, cout, H*Wp) -> (N, cout, H, W)
    return out.reshape(N, cout, H, Wp)[..., :W]


# ----------------------------------------------------------------------------
# Boundary glue: replication pad / pixel (un)shuffle / parameter packing
# ----------------------------------------------------------------------------
def nchw_pixel_unshuffle(x, r=2):
    # (N, C, H, W) -> (N, C*r*r, H//r, W//r), torch.pixel_unshuffle channel order.
    N, C, H, W = x.shape
    x = x.reshape(N, C, H // r, r, W // r, r)
    x = x.transpose(0, 1, 3, 5, 2, 4)           # n, c, i, j, h', w'
    return x.reshape(N, C * r * r, H // r, W // r)


def nchw_pixel_shuffle(y, r=2):
    # (N, C*r*r, H, W) -> (N, C, H*r, W*r), torch.PixelShuffle channel order.
    N, Cr2, H, W = y.shape
    C = Cr2 // (r * r)
    y = y.reshape(N, C, r, r, H, W)
    y = y.transpose(0, 1, 4, 2, 5, 3)           # n, c, h, i, w, j
    return y.reshape(N, C, H * r, W * r)


def init_params(key, in_nc, nc, nb=15):
    sf = 2
    dims = ([(in_nc * sf * sf, nc)]
            + [(nc, nc)] * (nb - 2)
            + [(nc, in_nc * sf * sf)])
    params = []
    for (ci, co) in dims:
        key, kw, kb = jax.random.split(key, 3)
        scale = 1.0 / np.sqrt(ci * 9)
        w = jax.random.normal(kw, (3, 3, ci, co), jnp.float32) * scale
        b = jax.random.normal(kb, (1, co), jnp.float32) * 0.01
        params.append((w, b))
    return params


def pack_params(params):
    """Pad to a uniform channel width C, per-tap transposed: w[l, t, c_out, c_in]."""
    C = max(max(w.shape[2], w.shape[3]) for w, _ in params)
    nb = len(params)
    wp = np.zeros((nb, 9, C, C), np.float32)
    bp = np.zeros((nb, C, 1), np.float32)
    for l, (w, b) in enumerate(params):
        w = np.asarray(w)
        b = np.asarray(b)
        ci, co = w.shape[2], w.shape[3]
        for ky in range(3):
            for kx in range(3):
                wp[l, ky * 3 + kx, :co, :ci] = w[ky, kx].T
        bp[l, :co, 0] = b.reshape(-1)
    return jnp.asarray(wp), jnp.asarray(bp)


def ffdnet_forward(x, params):
    # x: NCHW float32, same convention as the PyTorch module.
    _, _, h, w = x.shape
    pb = int(np.ceil(h / 2) * 2 - h)
    pr = int(np.ceil(w / 2) * 2 - w)
    x = jnp.pad(x, ((0, 0), (0, 0), (0, pb), (0, pr)), mode="edge")  # ReplicationPad2d
    x = nchw_pixel_unshuffle(x, 2)
    w_packed, b_packed = pack_params(params)
    cout = params[-1][0].shape[3]
    y = ffdnet_conv_stack(x, w_packed, b_packed, cout)
    y = nchw_pixel_shuffle(y, 2)
    return y[..., :h, :w]


# ----------------------------------------------------------------------------
# Pure-JAX reference (per-layer lax.conv) for a correctness cross-check
# ----------------------------------------------------------------------------
def ffdnet_forward_ref(x, params):
    _, _, h, w = x.shape
    pb = int(np.ceil(h / 2) * 2 - h)
    pr = int(np.ceil(w / 2) * 2 - w)
    x = jnp.pad(x, ((0, 0), (0, 0), (0, pb), (0, pr)), mode="edge")
    x = nchw_pixel_unshuffle(x, 2)
    n_layers = len(params)
    for i, (wgt, b) in enumerate(params):
        x = lax.conv_general_dilated(
            x, wgt, window_strides=(1, 1), padding=((1, 1), (1, 1)),
            dimension_numbers=("NCHW", "HWIO", "NCHW"),
            precision=jax.lax.Precision.HIGHEST)
        x = x + b.reshape(1, -1, 1, 1)
        if i < n_layers - 1:
            x = jnp.maximum(x, 0.0)
    x = nchw_pixel_shuffle(x, 2)
    return x[..., :h, :w]


if __name__ == "__main__":
    # Small config consistent with the module: n_colors=4, n_feats=32, nb=15
    N, n_colors, H, W = 2, 4, 16, 16
    n_feats, nb = 32, 15

    key = jax.random.PRNGKey(0)
    kx_, kp_ = jax.random.split(key)
    x = jax.random.normal(kx_, (N, n_colors, H, W), jnp.float32)
    params = init_params(kp_, n_colors, n_feats, nb)

    out = jax.block_until_ready(ffdnet_forward(x, params))
    assert out.shape == (N, n_colors, H, W)

    out_ref = jax.block_until_ready(ffdnet_forward_ref(x, params))
    np.testing.assert_allclose(np.asarray(out), np.asarray(out_ref),
                               rtol=2e-3, atol=2e-3)

    print("KERNEL_OK")
</pallas_src>

<mosaic_0001>
module attributes {stable_mosaic.version = 11 : i64} {
  func.func @_ffdnet_fused_kernel(%arg0: i32, %arg1: memref<1x16x256xf32, #tpu.memory_space<vmem>>, %arg2: memref<1x80xf32, #tpu.memory_space<vmem>>, %arg3: memref<15x9x32x32xf32, #tpu.memory_space<vmem>>, %arg4: memref<15x32x1xf32, #tpu.memory_space<vmem>>, %arg5: memref<1x16x80xf32, #tpu.memory_space<vmem>>, %arg6: memref<2x32x256xf32, #tpu.memory_space<vmem>>) attributes {dimension_semantics = [#tpu.dimension_semantics<parallel>], iteration_bounds = array<i64: 2>, scalar_prefetch = 0 : i64, scratch_operands = 1 : i64, tpu.core_type = #tpu.core_type<tc>, window_params = [{transform_indices = @transform_0, window_bounds = array<i64: 1, 16, 256>}, {pipeline_mode = #tpu.pipeline_mode<synchronous>, transform_indices = @transform_1, window_bounds = array<i64: 1, 80>}, {pipeline_mode = #tpu.pipeline_mode<synchronous>, transform_indices = @transform_2, window_bounds = array<i64: 15, 9, 32, 32>}, {pipeline_mode = #tpu.pipeline_mode<synchronous>, transform_indices = @transform_3, window_bounds = array<i64: 15, 32, 1>}, {transform_indices = @transform_4, window_bounds = array<i64: 1, 16, 80>}]} {
    %cst = arith.constant 0.000000e+00 : f32
    %0 = vector.broadcast %cst : f32 to vector<32x128xf32>
    %c0 = arith.constant 0 : index
    %c0_0 = arith.constant 0 : index
    %c0_1 = arith.constant 0 : index
    %1 = vector.load %arg6[%c0, %c0_0, %c0_1] : memref<2x32x256xf32, #tpu.memory_space<vmem>>, vector<1x32x128xf32>
    %2 = vector.shape_cast %1 : vector<1x32x128xf32> to vector<32x128xf32>
    %3 = vector.shape_cast %0 : vector<32x128xf32> to vector<1x32x128xf32>
    tpu.vector_store %arg6[%c0, %c0_0, %c0_1], %3 {strides = array<i32>} : memref<2x32x256xf32, #tpu.memory_space<vmem>>, vector<1x32x128xf32>,
    %cst_2 = arith.constant 0.000000e+00 : f32
    %4 = vector.broadcast %cst_2 : f32 to vector<32x48xf32>
    %c0_3 = arith.constant 0 : index
    %c0_4 = arith.constant 0 : index
    %c208 = arith.constant 208 : index
    %5 = vector.load %arg6[%c0_3, %c0_4, %c208] : memref<2x32x256xf32, #tpu.memory_space<vmem>>, vector<1x32x48xf32>
    %6 = vector.shape_cast %5 : vector<1x32x48xf32> to vector<32x48xf32>
    %7 = vector.shape_cast %4 : vector<32x48xf32> to vector<1x32x48xf32>
    tpu.vector_store %arg6[%c0_3, %c0_4, %c208], %7 {strides = array<i32>} : memref<2x32x256xf32, #tpu.memory_space<vmem>>, vector<1x32x48xf32>,
    %cst_5 = arith.constant 0.000000e+00 : f32
    %8 = vector.broadcast %cst_5 : f32 to vector<32x128xf32>
    %c1 = arith.constant 1 : index
    %c0_6 = arith.constant 0 : index
    %c0_7 = arith.constant 0 : index
    %9 = vector.load %arg6[%c1, %c0_6, %c0_7] : memref<2x32x256xf32, #tpu.memory_space<vmem>>, vector<1x32x128xf32>
    %10 = vector.shape_cast %9 : vector<1x32x128xf32> to vector<32x128xf32>
    %11 = vector.shape_cast %8 : vector<32x128xf32> to vector<1x32x128xf32>
    tpu.vector_store %arg6[%c1, %c0_6, %c0_7], %11 {strides = array<i32>} : memref<2x32x256xf32, #tpu.memory_space<vmem>>, vector<1x32x128xf32>,
    %cst_8 = arith.constant 0.000000e+00 : f32
    %12 = vector.broadcast %cst_8 : f32 to vector<32x48xf32>
    %c1_9 = arith.constant 1 : index
    %c0_10 = arith.constant 0 : index
    %c208_11 = arith.constant 208 : index
    %13 = vector.load %arg6[%c1_9, %c0_10, %c208_11] : memref<2x32x256xf32, #tpu.memory_space<vmem>>, vector<1x32x48xf32>
    %14 = vector.shape_cast %13 : vector<1x32x48xf32> to vector<32x48xf32>
    %15 = vector.shape_cast %12 : vector<32x48xf32> to vector<1x32x48xf32>
    tpu.vector_store %arg6[%c1_9, %c0_10, %c208_11], %15 {strides = array<i32>} : memref<2x32x256xf32, #tpu.memory_space<vmem>>, vector<1x32x48xf32>,
    %c0_12 = arith.constant 0 : index
    %c0_13 = arith.constant 0 : index
    %c0_14 = arith.constant 0 : index
    %16 = vector.load %arg1[%c0_12, %c0_13, %c0_14] : memref<1x16x256xf32, #tpu.memory_space<vmem>>, vector<1x16x256xf32>
    %17 = vector.shape_cast %16 : vector<1x16x256xf32> to vector<16x256xf32>
    %c0_15 = arith.constant 0 : index
    %c0_16 = arith.constant 0 : index
    %c0_17 = arith.constant 0 : index
    %18 = vector.load %arg6[%c0_15, %c0_16, %c0_17] : memref<2x32x256xf32, #tpu.memory_space<vmem>>, vector<1x16x256xf32>
    %19 = vector.shape_cast %18 : vector<1x16x256xf32> to vector<16x256xf32>
    %20 = vector.shape_cast %17 : vector<16x256xf32> to vector<1x16x256xf32>
    tpu.vector_store %arg6[%c0_15, %c0_16, %c0_17], %20 {strides = array<i32>} : memref<2x32x256xf32, #tpu.memory_space<vmem>>, vector<1x16x256xf32>,
    %c0_18 = arith.constant 0 : index
    %c0_19 = arith.constant 0 : index
    %c0_20 = arith.constant 0 : index
    %c0_21 = arith.constant 0 : index
    %21 = vector.load %arg3[%c0_18, %c0_19, %c0_20, %c0_21] : memref<15x9x32x32xf32, #tpu.memory_space<vmem>>, vector<1x9x32x32xf32>
    %22 = vector.shape_cast %21 : vector<1x9x32x32xf32> to vector<9x32x32xf32>
    %c0_22 = arith.constant 0 : index
    %c0_23 = arith.constant 0 : index
    %c0_24 = arith.constant 0 : index
    %23 = vector.load %arg4[%c0_22, %c0_23, %c0_24] : memref<15x32x1xf32, #tpu.memory_space<vmem>>, vector<1x32x1xf32>
    %24 = vector.shape_cast %23 : vector<1x32x1xf32> to vector<32x1xf32>
    %c0_25 = arith.constant 0 : index
    %c0_26 = arith.constant 0 : index
    %c117 = arith.constant 117 : index
    %25 = vector.load %arg6[%c0_25, %c0_26, %c117] : memref<2x32x256xf32, #tpu.memory_space<vmem>>, vector<1x16x80xf32>
    %26 = vector.shape_cast %25 : vector<1x16x80xf32> to vector<16x80xf32>
    %27 = vector.extract_strided_slice %22 {offsets = [0, 0, 0], sizes = [1, 32, 16], strides = [1, 1, 1]} : vector<9x32x32xf32> to vector<1x32x16xf32>
    %28 = vector.shape_cast %27 : vector<1x32x16xf32> to vector<32x16xf32>
    %cst_27 = arith.constant dense<0.000000e+00> : vector<32x80xf32>
    %29 = tpu.matmul %28, %26, %cst_27 {dimension_numbers = #tpu.dot_dimension_numbers<[1], [0], [0], [1], [0, 0, 1, 1], [], []>} : vector<32x16xf32>, vector<16x80xf32>, vector<32x80xf32> -> vector<32x80xf32>
    %c0_28 = arith.constant 0 : index
    %c0_29 = arith.constant 0 : index
    %c118 = arith.constant 118 : index
    %30 = vector.load %arg6[%c0_28, %c0_29, %c118] : memref<2x32x256xf32, #tpu.memory_space<vmem>>, vector<1x16x80xf32>
    %31 = vector.shape_cast %30 : vector<1x16x80xf32> to vector<16x80xf32>
    %32 = vector.extract_strided_slice %22 {offsets = [1, 0, 0], sizes = [1, 32, 16], strides = [1, 1, 1]} : vector<9x32x32xf32> to vector<1x32x16xf32>
    %33 = vector.shape_cast %32 : vector<1x32x16xf32> to vector<32x16xf32>
    %cst_30 = arith.constant dense<0.000000e+00> : vector<32x80xf32>
    %34 = tpu.matmul %33, %31, %cst_30 {dimension_numbers = #tpu.dot_dimension_numbers<[1], [0], [0], [1], [0, 0, 1, 1], [], []>} : vector<32x16xf32>, vector<16x80xf32>, vector<32x80xf32> -> vector<32x80xf32>
    %35 = arith.addf %29, %34 : vector<32x80xf32>
    %c0_31 = arith.constant 0 : index
    %c0_32 = arith.constant 0 : index
    %c119 = arith.constant 119 : index
    %36 = vector.load %arg6[%c0_31, %c0_32, %c119] : memref<2x32x256xf32, #tpu.memory_space<vmem>>, vector<1x16x80xf32>
    %37 = vector.shape_cast %36 : vector<1x16x80xf32> to vector<16x80xf32>
    %38 = vector.extract_strided_slice %22 {offsets = [2, 0, 0], sizes = [1, 32, 16], strides = [1, 1, 1]} : vector<9x32x32xf32> to vector<1x32x16xf32>
    %39 = vector.shape_cast %38 : vector<1x32x16xf32> to vector<32x16xf32>
    %cst_33 = arith.constant dense<0.000000e+00> : vector<32x80xf32>
    %40 = tpu.matmul %39, %37, %cst_33 {dimension_numbers = #tpu.dot_dimension_numbers<[1], [0], [0], [1], [0, 0, 1, 1], [], []>} : vector<32x16xf32>, vector<16x80xf32>, vector<32x80xf32> -> vector<32x80xf32>
    %41 = arith.addf %35, %40 : vector<32x80xf32>
    %c0_34 = arith.constant 0 : index
    %c0_35 = arith.constant 0 : index
    %c127 = arith.constant 127 : index
    %42 = vector.load %arg6[%c0_34, %c0_35, %c127] : memref<2x32x256xf32, #tpu.memory_space<vmem>>, vector<1x16x80xf32>
    %43 = vector.shape_cast %42 : vector<1x16x80xf32> to vector<16x80xf32>
    %44 = vector.extract_strided_slice %22 {offsets = [3, 0, 0], sizes = [1, 32, 16], strides = [1, 1, 1]} : vector<9x32x32xf32> to vector<1x32x16xf32>
    %45 = vector.shape_cast %44 : vector<1x32x16xf32> to vector<32x16xf32>
    %cst_36 = arith.constant dense<0.000000e+00> : vector<32x80xf32>
    %46 = tpu.matmul %45, %43, %cst_36 {dimension_numbers = #tpu.dot_dimension_numbers<[1], [0], [0], [1], [0, 0, 1, 1], [], []>} : vector<32x16xf32>, vector<16x80xf32>, vector<32x80xf32> -> vector<32x80xf32>
    %47 = arith.addf %41, %46 : vector<32x80xf32>
    %c0_37 = arith.constant 0 : index
    %c0_38 = arith.constant 0 : index
    %c128 = arith.constant 128 : index
    %48 = vector.load %arg6[%c0_37, %c0_38, %c128] : memref<2x32x256xf32, #tpu.memory_space<vmem>>, vector<1x16x80xf32>
    %49 = vector.shape_cast %48 : vector<1x16x80xf32> to vector<16x80xf32>
    %50 = vector.extract_strided_slice %22 {offsets = [4, 0, 0], sizes = [1, 32, 16], strides = [1, 1, 1]} : vector<9x32x32xf32> to vector<1x32x16xf32>
    %51 = vector.shape_cast %50 : vector<1x32x16xf32> to vector<32x16xf32>
    %cst_39 = arith.constant dense<0.000000e+00> : vector<32x80xf32>
    %52 = tpu.matmul %51, %49, %cst_39 {dimension_numbers = #tpu.dot_dimension_numbers<[1], [0], [0], [1], [0, 0, 1, 1], [], []>} : vector<32x16xf32>, vector<16x80xf32>, vector<32x80xf32> -> vector<32x80xf32>
    %53 = arith.addf %47, %52 : vector<32x80xf32>
    %c0_40 = arith.constant 0 : index
    %c0_41 = arith.constant 0 : index
    %c129 = arith.constant 129 : index
    %54 = vector.load %arg6[%c0_40, %c0_41, %c129] : memref<2x32x256xf32, #tpu.memory_space<vmem>>, vector<1x16x80xf32>
    %55 = vector.shape_cast %54 : vector<1x16x80xf32> to vector<16x80xf32>
    %56 = vector.extract_strided_slice %22 {offsets = [5, 0, 0], sizes = [1, 32, 16], strides = [1, 1, 1]} : vector<9x32x32xf32> to vector<1x32x16xf32>
    %57 = vector.shape_cast %56 : vector<1x32x16xf32> to vector<32x16xf32>
    %cst_42 = arith.constant dense<0.000000e+00> : vector<32x80xf32>
    %58 = tpu.matmul %57, %55, %cst_42 {dimension_numbers = #tpu.dot_dimension_numbers<[1], [0], [0], [1], [0, 0, 1, 1], [], []>} : vector<32x16xf32>, vector<16x80xf32>, vector<32x80xf32> -> vector<32x80xf32>
    %59 = arith.addf %53, %58 : vector<32x80xf32>
    %c0_43 = arith.constant 0 : index
    %c0_44 = arith.constant 0 : index
    %c137 = arith.constant 137 : index
    %60 = vector.load %arg6[%c0_43, %c0_44, %c137] : memref<2x32x256xf32, #tpu.memory_space<vmem>>, vector<1x16x80xf32>
    %61 = vector.shape_cast %60 : vector<1x16x80xf32> to vector<16x80xf32>
    %62 = vector.extract_strided_slice %22 {offsets = [6, 0, 0], sizes = [1, 32, 16], strides = [1, 1, 1]} : vector<9x32x32xf32> to vector<1x32x16xf32>
    %63 = vector.shape_cast %62 : vector<1x32x16xf32> to vector<32x16xf32>
    %cst_45 = arith.constant dense<0.000000e+00> : vector<32x80xf32>
    %64 = tpu.matmul %63, %61, %cst_45 {dimension_numbers = #tpu.dot_dimension_numbers<[1], [0], [0], [1], [0, 0, 1, 1], [], []>} : vector<32x16xf32>, vector<16x80xf32>, vector<32x80xf32> -> vector<32x80xf32>
    %65 = arith.addf %59, %64 : vector<32x80xf32>
    %c0_46 = arith.constant 0 : index
    %c0_47 = arith.constant 0 : index
    %c138 = arith.constant 138 : index
    %66 = vector.load %arg6[%c0_46, %c0_47, %c138] : memref<2x32x256xf32, #tpu.memory_space<vmem>>, vector<1x16x80xf32>
    %67 = vector.shape_cast %66 : vector<1x16x80xf32> to vector<16x80xf32>
    %68 = vector.extract_strided_slice %22 {offsets = [7, 0, 0], sizes = [1, 32, 16], strides = [1, 1, 1]} : vector<9x32x32xf32> to vector<1x32x16xf32>
    %69 = vector.shape_cast %68 : vector<1x32x16xf32> to vector<32x16xf32>
    %cst_48 = arith.constant dense<0.000000e+00> : vector<32x80xf32>
    %70 = tpu.matmul %69, %67, %cst_48 {dimension_numbers = #tpu.dot_dimension_numbers<[1], [0], [0], [1], [0, 0, 1, 1], [], []>} : vector<32x16xf32>, vector<16x80xf32>, vector<32x80xf32> -> vector<32x80xf32>
    %71 = arith.addf %65, %70 : vector<32x80xf32>
    %c0_49 = arith.constant 0 : index
    %c0_50 = arith.constant 0 : index
    %c139 = arith.constant 139 : index
    %72 = vector.load %arg6[%c0_49, %c0_50, %c139] : memref<2x32x256xf32, #tpu.memory_space<vmem>>, vector<1x16x80xf32>
    %73 = vector.shape_cast %72 : vector<1x16x80xf32> to vector<16x80xf32>
    %74 = vector.extract_strided_slice %22 {offsets = [8, 0, 0], sizes = [1, 32, 16], strides = [1, 1, 1]} : vector<9x32x32xf32> to vector<1x32x16xf32>
    %75 = vector.shape_cast %74 : vector<1x32x16xf32> to vector<32x16xf32>
    %cst_51 = arith.constant dense<0.000000e+00> : vector<32x80xf32>
    %76 = tpu.matmul %75, %73, %cst_51 {dimension_numbers = #tpu.dot_dimension_numbers<[1], [0], [0], [1], [0, 0, 1, 1], [], []>} : vector<32x16xf32>, vector<16x80xf32>, vector<32x80xf32> -> vector<32x80xf32>
    %77 = arith.addf %71, %76 : vector<32x80xf32>
    %78 = vector.broadcast %24 : vector<32x1xf32> to vector<32x80xf32>
    %79 = arith.addf %77, %78 : vector<32x80xf32>
    %cst_52 = arith.constant 0.000000e+00 : f32
    %80 = vector.broadcast %cst_52 : f32 to vector<32x80xf32>
    %81 = arith.maximumf %79, %80 : vector<32x80xf32>
    %c0_53 = arith.constant 0 : index
    %c0_54 = arith.constant 0 : index
    %82 = vector.load %arg2[%c0_53, %c0_54] : memref<1x80xf32, #tpu.memory_space<vmem>>, vector<1x80xf32>
    %83 = vector.broadcast %82 : vector<1x80xf32> to vector<32x80xf32>
    %84 = arith.mulf %81, %83 : vector<32x80xf32>
    %c1_55 = arith.constant 1 : index
    %c0_56 = arith.constant 0 : index
    %c128_57 = arith.constant 128 : index
    %85 = vector.load %arg6[%c1_55, %c0_56, %c128_57] : memref<2x32x256xf32, #tpu.memory_space<vmem>>, vector<1x32x80xf32>
    %86 = vector.shape_cast %85 : vector<1x32x80xf32> to vector<32x80xf32>
    %87 = vector.shape_cast %84 : vector<32x80xf32> to vector<1x32x80xf32>
    tpu.vector_store %arg6[%c1_55, %c0_56, %c128_57], %87 {strides = array<i32>} : memref<2x32x256xf32, #tpu.memory_space<vmem>>, vector<1x32x80xf32>,
    %c0_i32 = arith.constant 0 : i32
    %c6_i32 = arith.constant 6 : i32
    %88 = arith.addi %c0_i32, %c6_i32 : i32
    %c1_i32 = arith.constant 1 : i32
    scf.for %arg7 = %c0_i32 to %88 step %c1_i32  : i32 {
      %c2_i32 = arith.constant 2 : i32
      %219 = arith.muli %c2_i32, %arg7 : i32
      %c1_i32_152 = arith.constant 1 : i32
      %220 = arith.addi %c1_i32_152, %219 : i32
      %221 = arith.index_cast %220 : i32 to index
      %c0_153 = arith.constant 0 : index
      %c0_154 = arith.constant 0 : index
      %c0_155 = arith.constant 0 : index
      %222 = vector.load %arg3[%221, %c0_153, %c0_154, %c0_155] : memref<15x9x32x32xf32, #tpu.memory_space<vmem>>, vector<1x9x32x32xf32>
      %223 = vector.shape_cast %222 : vector<1x9x32x32xf32> to vector<9x32x32xf32>
      %224 = arith.index_cast %220 : i32 to index
      %c0_156 = arith.constant 0 : index
      %c0_157 = arith.constant 0 : index
      %225 = vector.load %arg4[%224, %c0_156, %c0_157] : memref<15x32x1xf32, #tpu.memory_space<vmem>>, vector<1x32x1xf32>
      %226 = vector.shape_cast %225 : vector<1x32x1xf32> to vector<32x1xf32>
      %c1_158 = arith.constant 1 : index
      %c0_159 = arith.constant 0 : index
      %c117_160 = arith.constant 117 : index
      %227 = vector.load %arg6[%c1_158, %c0_159, %c117_160] : memref<2x32x256xf32, #tpu.memory_space<vmem>>, vector<1x32x80xf32>
      %228 = vector.shape_cast %227 : vector<1x32x80xf32> to vector<32x80xf32>
      %229 = vector.extract_strided_slice %223 {offsets = [0, 0, 0], sizes = [1, 32, 32], strides = [1, 1, 1]} : vector<9x32x32xf32> to vector<1x32x32xf32>
      %230 = vector.shape_cast %229 : vector<1x32x32xf32> to vector<32x32xf32>
      %cst_161 = arith.constant dense<0.000000e+00> : vector<32x80xf32>
      %231 = tpu.matmul %230, %228, %cst_161 {dimension_numbers = #tpu.dot_dimension_numbers<[1], [0], [0], [1], [0, 0, 1, 1], [], []>} : vector<32x32xf32>, vector<32x80xf32>, vector<32x80xf32> -> vector<32x80xf32>
      %c1_162 = arith.constant 1 : index
      %c0_163 = arith.constant 0 : index
      %c118_164 = arith.constant 118 : index
      %232 = vector.load %arg6[%c1_162, %c0_163, %c118_164] : memref<2x32x256xf32, #tpu.memory_space<vmem>>, vector<1x32x80xf32>
      %233 = vector.shape_cast %232 : vector<1x32x80xf32> to vector<32x80xf32>
      %234 = vector.extract_strided_slice %223 {offsets = [1, 0, 0], sizes = [1, 32, 32], strides = [1, 1, 1]} : vector<9x32x32xf32> to vector<1x32x32xf32>
      %235 = vector.shape_cast %234 : vector<1x32x32xf32> to vector<32x32xf32>
      %cst_165 = arith.constant dense<0.000000e+00> : vector<32x80xf32>
      %236 = tpu.matmul %235, %233, %cst_165 {dimension_numbers = #tpu.dot_dimension_numbers<[1], [0], [0], [1], [0, 0, 1, 1], [], []>} : vector<32x32xf32>, vector<32x80xf32>, vector<32x80xf32> -> vector<32x80xf32>
      %237 = arith.addf %231, %236 : vector<32x80xf32>
      %c1_166 = arith.constant 1 : index
      %c0_167 = arith.constant 0 : index
      %c119_168 = arith.constant 119 : index
      %238 = vector.load %arg6[%c1_166, %c0_167, %c119_168] : memref<2x32x256xf32, #tpu.memory_space<vmem>>, vector<1x32x80xf32>
      %239 = vector.shape_cast %238 : vector<1x32x80xf32> to vector<32x80xf32>
      %240 = vector.extract_strided_slice %223 {offsets = [2, 0, 0], sizes = [1, 32, 32], strides = [1, 1, 1]} : vector<9x32x32xf32> to vector<1x32x32xf32>
      %241 = vector.shape_cast %240 : vector<1x32x32xf32> to vector<32x32xf32>
      %cst_169 = arith.constant dense<0.000000e+00> : vector<32x80xf32>
      %242 = tpu.matmul %241, %239, %cst_169 {dimension_numbers = #tpu.dot_dimension_numbers<[1], [0], [0], [1], [0, 0, 1, 1], [], []>} : vector<32x32xf32>, vector<32x80xf32>, vector<32x80xf32> -> vector<32x80xf32>
      %243 = arith.addf %237, %242 : vector<32x80xf32>
      %c1_170 = arith.constant 1 : index
      %c0_171 = arith.constant 0 : index
      %c127_172 = arith.constant 127 : index
      %244 = vector.load %arg6[%c1_170, %c0_171, %c127_172] : memref<2x32x256xf32, #tpu.memory_space<vmem>>, vector<1x32x80xf32>
      %245 = vector.shape_cast %244 : vector<1x32x80xf32> to vector<32x80xf32>
      %246 = vector.extract_strided_slice %223 {offsets = [3, 0, 0], sizes = [1, 32, 32], strides = [1, 1, 1]} : vector<9x32x32xf32> to vector<1x32x32xf32>
      %247 = vector.shape_cast %246 : vector<1x32x32xf32> to vector<32x32xf32>
      %cst_173 = arith.constant dense<0.000000e+00> : vector<32x80xf32>
      %248 = tpu.matmul %247, %245, %cst_173 {dimension_numbers = #tpu.dot_dimension_numbers<[1], [0], [0], [1], [0, 0, 1, 1], [], []>} : vector<32x32xf32>, vector<32x80xf32>, vector<32x80xf32> -> vector<32x80xf32>
      %249 = arith.addf %243, %248 : vector<32x80xf32>
      %c1_174 = arith.constant 1 : index
      %c0_175 = arith.constant 0 : index
      %c128_176 = arith.constant 128 : index
      %250 = vector.load %arg6[%c1_174, %c0_175, %c128_176] : memref<2x32x256xf32, #tpu.memory_space<vmem>>, vector<1x32x80xf32>
      %251 = vector.shape_cast %250 : vector<1x32x80xf32> to vector<32x80xf32>
      %252 = vector.extract_strided_slice %223 {offsets = [4, 0, 0], sizes = [1, 32, 32], strides = [1, 1, 1]} : vector<9x32x32xf32> to vector<1x32x32xf32>
      %253 = vector.shape_cast %252 : vector<1x32x32xf32> to vector<32x32xf32>
      %cst_177 = arith.constant dense<0.000000e+00> : vector<32x80xf32>
      %254 = tpu.matmul %253, %251, %cst_177 {dimension_numbers = #tpu.dot_dimension_numbers<[1], [0], [0], [1], [0, 0, 1, 1], [], []>} : vector<32x32xf32>, vector<32x80xf32>, vector<32x80xf32> -> vector<32x80xf32>
      %255 = arith.addf %249, %254 : vector<32x80xf32>
      %c1_178 = arith.constant 1 : index
      %c0_179 = arith.constant 0 : index
      %c129_180 = arith.constant 129 : index
      %256 = vector.load %arg6[%c1_178, %c0_179, %c129_180] : memref<2x32x256xf32, #tpu.memory_space<vmem>>, vector<1x32x80xf32>
      %257 = vector.shape_cast %256 : vector<1x32x80xf32> to vector<32x80xf32>
      %258 = vector.extract_strided_slice %223 {offsets = [5, 0, 0], sizes = [1, 32, 32], strides = [1, 1, 1]} : vector<9x32x32xf32> to vector<1x32x32xf32>
      %259 = vector.shape_cast %258 : vector<1x32x32xf32> to vector<32x32xf32>
      %cst_181 = arith.constant dense<0.000000e+00> : vector<32x80xf32>
      %260 = tpu.matmul %259, %257, %cst_181 {dimension_numbers = #tpu.dot_dimension_numbers<[1], [0], [0], [1], [0, 0, 1, 1], [], []>} : vector<32x32xf32>, vector<32x80xf32>, vector<32x80xf32> -> vector<32x80xf32>
      %261 = arith.addf %255, %260 : vector<32x80xf32>
      %c1_182 = arith.constant 1 : index
      %c0_183 = arith.constant 0 : index
      %c137_184 = arith.constant 137 : index
      %262 = vector.load %arg6[%c1_182, %c0_183, %c137_184] : memref<2x32x256xf32, #tpu.memory_space<vmem>>, vector<1x32x80xf32>
      %263 = vector.shape_cast %262 : vector<1x32x80xf32> to vector<32x80xf32>
      %264 = vector.extract_strided_slice %223 {offsets = [6, 0, 0], sizes = [1, 32, 32], strides = [1, 1, 1]} : vector<9x32x32xf32> to vector<1x32x32xf32>
      %265 = vector.shape_cast %264 : vector<1x32x32xf32> to vector<32x32xf32>
      %cst_185 = arith.constant dense<0.000000e+00> : vector<32x80xf32>
      %266 = tpu.matmul %265, %263, %cst_185 {dimension_numbers = #tpu.dot_dimension_numbers<[1], [0], [0], [1], [0, 0, 1, 1], [], []>} : vector<32x32xf32>, vector<32x80xf32>, vector<32x80xf32> -> vector<32x80xf32>
      %267 = arith.addf %261, %266 : vector<32x80xf32>
      %c1_186 = arith.constant 1 : index
      %c0_187 = arith.constant 0 : index
      %c138_188 = arith.constant 138 : index
      %268 = vector.load %arg6[%c1_186, %c0_187, %c138_188] : memref<2x32x256xf32, #tpu.memory_space<vmem>>, vector<1x32x80xf32>
      %269 = vector.shape_cast %268 : vector<1x32x80xf32> to vector<32x80xf32>
      %270 = vector.extract_strided_slice %223 {offsets = [7, 0, 0], sizes = [1, 32, 32], strides = [1, 1, 1]} : vector<9x32x32xf32> to vector<1x32x32xf32>
      %271 = vector.shape_cast %270 : vector<1x32x32xf32> to vector<32x32xf32>
      %cst_189 = arith.constant dense<0.000000e+00> : vector<32x80xf32>
      %272 = tpu.matmul %271, %269, %cst_189 {dimension_numbers = #tpu.dot_dimension_numbers<[1], [0], [0], [1], [0, 0, 1, 1], [], []>} : vector<32x32xf32>, vector<32x80xf32>, vector<32x80xf32> -> vector<32x80xf32>
      %273 = arith.addf %267, %272 : vector<32x80xf32>
      %c1_190 = arith.constant 1 : index
      %c0_191 = arith.constant 0 : index
      %c139_192 = arith.constant 139 : index
      %274 = vector.load %arg6[%c1_190, %c0_191, %c139_192] : memref<2x32x256xf32, #tpu.memory_space<vmem>>, vector<1x32x80xf32>
      %275 = vector.shape_cast %274 : vector<1x32x80xf32> to vector<32x80xf32>
      %276 = vector.extract_strided_slice %223 {offsets = [8, 0, 0], sizes = [1, 32, 32], strides = [1, 1, 1]} : vector<9x32x32xf32> to vector<1x32x32xf32>
      %277 = vector.shape_cast %276 : vector<1x32x32xf32> to vector<32x32xf32>
      %cst_193 = arith.constant dense<0.000000e+00> : vector<32x80xf32>
      %278 = tpu.matmul %277, %275, %cst_193 {dimension_numbers = #tpu.dot_dimension_numbers<[1], [0], [0], [1], [0, 0, 1, 1], [], []>} : vector<32x32xf32>, vector<32x80xf32>, vector<32x80xf32> -> vector<32x80xf32>
      %279 = arith.addf %273, %278 : vector<32x80xf32>
      %280 = vector.broadcast %226 : vector<32x1xf32> to vector<32x80xf32>
      %281 = arith.addf %279, %280 : vector<32x80xf32>
      %cst_194 = arith.constant 0.000000e+00 : f32
      %282 = vector.broadcast %cst_194 : f32 to vector<32x80xf32>
      %283 = arith.maximumf %281, %282 : vector<32x80xf32>
      %c0_195 = arith.constant 0 : index
      %c0_196 = arith.constant 0 : index
      %284 = vector.load %arg2[%c0_195, %c0_196] : memref<1x80xf32, #tpu.memory_space<vmem>>, vector<1x80xf32>
      %285 = vector.broadcast %284 : vector<1x80xf32> to vector<32x80xf32>
      %286 = arith.mulf %283, %285 : vector<32x80xf32>
      %c0_197 = arith.constant 0 : index
      %c0_198 = arith.constant 0 : index
      %c128_199 = arith.constant 128 : index
      %287 = vector.load %arg6[%c0_197, %c0_198, %c128_199] : memref<2x32x256xf32, #tpu.memory_space<vmem>>, vector<1x32x80xf32>
      %288 = vector.shape_cast %287 : vector<1x32x80xf32> to vector<32x80xf32>
      %289 = vector.shape_cast %286 : vector<32x80xf32> to vector<1x32x80xf32>
      tpu.vector_store %arg6[%c0_197, %c0_198, %c128_199], %289 {strides = array<i32>} : memref<2x32x256xf32, #tpu.memory_space<vmem>>, vector<1x32x80xf32>,
      %c1_i32_200 = arith.constant 1 : i32
      %290 = arith.addi %220, %c1_i32_200 : i32
      %291 = arith.index_cast %290 : i32 to index
      %c0_201 = arith.constant 0 : index
      %c0_202 = arith.constant 0 : index
      %c0_203 = arith.constant 0 : index
      %292 = vector.load %arg3[%291, %c0_201, %c0_202, %c0_203] : memref<15x9x32x32xf32, #tpu.memory_space<vmem>>, vector<1x9x32x32xf32>
      %293 = vector.shape_cast %292 : vector<1x9x32x32xf32> to vector<9x32x32xf32>
      %c1_i32_204 = arith.constant 1 : i32
      %294 = arith.addi %220, %c1_i32_204 : i32
      %295 = arith.index_cast %294 : i32 to index
      %c0_205 = arith.constant 0 : index
      %c0_206 = arith.constant 0 : index
      %296 = vector.load %arg4[%295, %c0_205, %c0_206] : memref<15x32x1xf32, #tpu.memory_space<vmem>>, vector<1x32x1xf32>
      %297 = vector.shape_cast %296 : vector<1x32x1xf32> to vector<32x1xf32>
      %c0_207 = arith.constant 0 : index
      %c0_208 = arith.constant 0 : index
      %c117_209 = arith.constant 117 : index
      %298 = vector.load %arg6[%c0_207, %c0_208, %c117_209] : memref<2x32x256xf32, #tpu.memory_space<vmem>>, vector<1x32x80xf32>
      %299 = vector.shape_cast %298 : vector<1x32x80xf32> to vector<32x80xf32>
      %300 = vector.extract_strided_slice %293 {offsets = [0, 0, 0], sizes = [1, 32, 32], strides = [1, 1, 1]} : vector<9x32x32xf32> to vector<1x32x32xf32>
      %301 = vector.shape_cast %300 : vector<1x32x32xf32> to vector<32x32xf32>
      %cst_210 = arith.constant dense<0.000000e+00> : vector<32x80xf32>
      %302 = tpu.matmul %301, %299, %cst_210 {dimension_numbers = #tpu.dot_dimension_numbers<[1], [0], [0], [1], [0, 0, 1, 1], [], []>} : vector<32x32xf32>, vector<32x80xf32>, vector<32x80xf32> -> vector<32x80xf32>
      %c0_211 = arith.constant 0 : index
      %c0_212 = arith.constant 0 : index
      %c118_213 = arith.constant 118 : index
      %303 = vector.load %arg6[%c0_211, %c0_212, %c118_213] : memref<2x32x256xf32, #tpu.memory_space<vmem>>, vector<1x32x80xf32>
      %304 = vector.shape_cast %303 : vector<1x32x80xf32> to vector<32x80xf32>
      %305 = vector.extract_strided_slice %293 {offsets = [1, 0, 0], sizes = [1, 32, 32], strides = [1, 1, 1]} : vector<9x32x32xf32> to vector<1x32x32xf32>
      %306 = vector.shape_cast %305 : vector<1x32x32xf32> to vector<32x32xf32>
      %cst_214 = arith.constant dense<0.000000e+00> : vector<32x80xf32>
      %307 = tpu.matmul %306, %304, %cst_214 {dimension_numbers = #tpu.dot_dimension_numbers<[1], [0], [0], [1], [0, 0, 1, 1], [], []>} : vector<32x32xf32>, vector<32x80xf32>, vector<32x80xf32> -> vector<32x80xf32>
      %308 = arith.addf %302, %307 : vector<32x80xf32>
      %c0_215 = arith.constant 0 : index
      %c0_216 = arith.constant 0 : index
      %c119_217 = arith.constant 119 : index
      %309 = vector.load %arg6[%c0_215, %c0_216, %c119_217] : memref<2x32x256xf32, #tpu.memory_space<vmem>>, vector<1x32x80xf32>
      %310 = vector.shape_cast %309 : vector<1x32x80xf32> to vector<32x80xf32>
      %311 = vector.extract_strided_slice %293 {offsets = [2, 0, 0], sizes = [1, 32, 32], strides = [1, 1, 1]} : vector<9x32x32xf32> to vector<1x32x32xf32>
      %312 = vector.shape_cast %311 : vector<1x32x32xf32> to vector<32x32xf32>
      %cst_218 = arith.constant dense<0.000000e+00> : vector<32x80xf32>
      %313 = tpu.matmul %312, %310, %cst_218 {dimension_numbers = #tpu.dot_dimension_numbers<[1], [0], [0], [1], [0, 0, 1, 1], [], []>} : vector<32x32xf32>, vector<32x80xf32>, vector<32x80xf32> -> vector<32x80xf32>
      %314 = arith.addf %308, %313 : vector<32x80xf32>
      %c0_219 = arith.constant 0 : index
      %c0_220 = arith.constant 0 : index
      %c127_221 = arith.constant 127 : index
      %315 = vector.load %arg6[%c0_219, %c0_220, %c127_221] : memref<2x32x256xf32, #tpu.memory_space<vmem>>, vector<1x32x80xf32>
      %316 = vector.shape_cast %315 : vector<1x32x80xf32> to vector<32x80xf32>
      %317 = vector.extract_strided_slice %293 {offsets = [3, 0, 0], sizes = [1, 32, 32], strides = [1, 1, 1]} : vector<9x32x32xf32> to vector<1x32x32xf32>
      %318 = vector.shape_cast %317 : vector<1x32x32xf32> to vector<32x32xf32>
      %cst_222 = arith.constant dense<0.000000e+00> : vector<32x80xf32>
      %319 = tpu.matmul %318, %316, %cst_222 {dimension_numbers = #tpu.dot_dimension_numbers<[1], [0], [0], [1], [0, 0, 1, 1], [], []>} : vector<32x32xf32>, vector<32x80xf32>, vector<32x80xf32> -> vector<32x80xf32>
      %320 = arith.addf %314, %319 : vector<32x80xf32>
      %c0_223 = arith.constant 0 : index
      %c0_224 = arith.constant 0 : index
      %c128_225 = arith.constant 128 : index
      %321 = vector.load %arg6[%c0_223, %c0_224, %c128_225] : memref<2x32x256xf32, #tpu.memory_space<vmem>>, vector<1x32x80xf32>
      %322 = vector.shape_cast %321 : vector<1x32x80xf32> to vector<32x80xf32>
      %323 = vector.extract_strided_slice %293 {offsets = [4, 0, 0], sizes = [1, 32, 32], strides = [1, 1, 1]} : vector<9x32x32xf32> to vector<1x32x32xf32>
      %324 = vector.shape_cast %323 : vector<1x32x32xf32> to vector<32x32xf32>
      %cst_226 = arith.constant dense<0.000000e+00> : vector<32x80xf32>
      %325 = tpu.matmul %324, %322, %cst_226 {dimension_numbers = #tpu.dot_dimension_numbers<[1], [0], [0], [1], [0, 0, 1, 1], [], []>} : vector<32x32xf32>, vector<32x80xf32>, vector<32x80xf32> -> vector<32x80xf32>
      %326 = arith.addf %320, %325 : vector<32x80xf32>
      %c0_227 = arith.constant 0 : index
      %c0_228 = arith.constant 0 : index
      %c129_229 = arith.constant 129 : index
      %327 = vector.load %arg6[%c0_227, %c0_228, %c129_229] : memref<2x32x256xf32, #tpu.memory_space<vmem>>, vector<1x32x80xf32>
      %328 = vector.shape_cast %327 : vector<1x32x80xf32> to vector<32x80xf32>
      %329 = vector.extract_strided_slice %293 {offsets = [5, 0, 0], sizes = [1, 32, 32], strides = [1, 1, 1]} : vector<9x32x32xf32> to vector<1x32x32xf32>
      %330 = vector.shape_cast %329 : vector<1x32x32xf32> to vector<32x32xf32>
      %cst_230 = arith.constant dense<0.000000e+00> : vector<32x80xf32>
      %331 = tpu.matmul %330, %328, %cst_230 {dimension_numbers = #tpu.dot_dimension_numbers<[1], [0], [0], [1], [0, 0, 1, 1], [], []>} : vector<32x32xf32>, vector<32x80xf32>, vector<32x80xf32> -> vector<32x80xf32>
      %332 = arith.addf %326, %331 : vector<32x80xf32>
      %c0_231 = arith.constant 0 : index
      %c0_232 = arith.constant 0 : index
      %c137_233 = arith.constant 137 : index
      %333 = vector.load %arg6[%c0_231, %c0_232, %c137_233] : memref<2x32x256xf32, #tpu.memory_space<vmem>>, vector<1x32x80xf32>
      %334 = vector.shape_cast %333 : vector<1x32x80xf32> to vector<32x80xf32>
      %335 = vector.extract_strided_slice %293 {offsets = [6, 0, 0], sizes = [1, 32, 32], strides = [1, 1, 1]} : vector<9x32x32xf32> to vector<1x32x32xf32>
      %336 = vector.shape_cast %335 : vector<1x32x32xf32> to vector<32x32xf32>
      %cst_234 = arith.constant dense<0.000000e+00> : vector<32x80xf32>
      %337 = tpu.matmul %336, %334, %cst_234 {dimension_numbers = #tpu.dot_dimension_numbers<[1], [0], [0], [1], [0, 0, 1, 1], [], []>} : vector<32x32xf32>, vector<32x80xf32>, vector<32x80xf32> -> vector<32x80xf32>
      %338 = arith.addf %332, %337 : vector<32x80xf32>
      %c0_235 = arith.constant 0 : index
      %c0_236 = arith.constant 0 : index
      %c138_237 = arith.constant 138 : index
      %339 = vector.load %arg6[%c0_235, %c0_236, %c138_237] : memref<2x32x256xf32, #tpu.memory_space<vmem>>, vector<1x32x80xf32>
      %340 = vector.shape_cast %339 : vector<1x32x80xf32> to vector<32x80xf32>
      %341 = vector.extract_strided_slice %293 {offsets = [7, 0, 0], sizes = [1, 32, 32], strides = [1, 1, 1]} : vector<9x32x32xf32> to vector<1x32x32xf32>
      %342 = vector.shape_cast %341 : vector<1x32x32xf32> to vector<32x32xf32>
      %cst_238 = arith.constant dense<0.000000e+00> : vector<32x80xf32>
      %343 = tpu.matmul %342, %340, %cst_238 {dimension_numbers = #tpu.dot_dimension_numbers<[1], [0], [0], [1], [0, 0, 1, 1], [], []>} : vector<32x32xf32>, vector<32x80xf32>, vector<32x80xf32> -> vector<32x80xf32>
      %344 = arith.addf %338, %343 : vector<32x80xf32>
      %c0_239 = arith.constant 0 : index
      %c0_240 = arith.constant 0 : index
      %c139_241 = arith.constant 139 : index
      %345 = vector.load %arg6[%c0_239, %c0_240, %c139_241] : memref<2x32x256xf32, #tpu.memory_space<vmem>>, vector<1x32x80xf32>
      %346 = vector.shape_cast %345 : vector<1x32x80xf32> to vector<32x80xf32>
      %347 = vector.extract_strided_slice %293 {offsets = [8, 0, 0], sizes = [1, 32, 32], strides = [1, 1, 1]} : vector<9x32x32xf32> to vector<1x32x32xf32>
      %348 = vector.shape_cast %347 : vector<1x32x32xf32> to vector<32x32xf32>
      %cst_242 = arith.constant dense<0.000000e+00> : vector<32x80xf32>
      %349 = tpu.matmul %348, %346, %cst_242 {dimension_numbers = #tpu.dot_dimension_numbers<[1], [0], [0], [1], [0, 0, 1, 1], [], []>} : vector<32x32xf32>, vector<32x80xf32>, vector<32x80xf32> -> vector<32x80xf32>
      %350 = arith.addf %344, %349 : vector<32x80xf32>
      %351 = vector.broadcast %297 : vector<32x1xf32> to vector<32x80xf32>
      %352 = arith.addf %350, %351 : vector<32x80xf32>
      %cst_243 = arith.constant 0.000000e+00 : f32
      %353 = vector.broadcast %cst_243 : f32 to vector<32x80xf32>
      %354 = arith.maximumf %352, %353 : vector<32x80xf32>
      %c0_244 = arith.constant 0 : index
      %c0_245 = arith.constant 0 : index
      %355 = vector.load %arg2[%c0_244, %c0_245] : memref<1x80xf32, #tpu.memory_space<vmem>>, vector<1x80xf32>
      %356 = vector.broadcast %355 : vector<1x80xf32> to vector<32x80xf32>
      %357 = arith.mulf %354, %356 : vector<32x80xf32>
      %c1_246 = arith.constant 1 : index
      %c0_247 = arith.constant 0 : index
      %c128_248 = arith.constant 128 : index
      %358 = vector.load %arg6[%c1_246, %c0_247, %c128_248] : memref<2x32x256xf32, #tpu.memory_space<vmem>>, vector<1x32x80xf32>
      %359 = vector.shape_cast %358 : vector<1x32x80xf32> to vector<32x80xf32>
      %360 = vector.shape_cast %357 : vector<32x80xf32> to vector<1x32x80xf32>
      tpu.vector_store %arg6[%c1_246, %c0_247, %c128_248], %360 {strides = array<i32>} : memref<2x32x256xf32, #tpu.memory_space<vmem>>, vector<1x32x80xf32>,
    }
    %c6_i32_58 = arith.constant 6 : i32
    %c13 = arith.constant 13 : index
    %c0_59 = arith.constant 0 : index
    %c0_60 = arith.constant 0 : index
    %c0_61 = arith.constant 0 : index
    %89 = vector.load %arg3[%c13, %c0_59, %c0_60, %c0_61] : memref<15x9x32x32xf32, #tpu.memory_space<vmem>>, vector<1x9x32x32xf32>
    %90 = vector.shape_cast %89 : vector<1x9x32x32xf32> to vector<9x32x32xf32>
    %c13_62 = arith.constant 13 : index
    %c0_63 = arith.constant 0 : index
    %c0_64 = arith.constant 0 : index
    %91 = vector.load %arg4[%c13_62, %c0_63, %c0_64] : memref<15x32x1xf32, #tpu.memory_space<vmem>>, vector<1x32x1xf32>
    %92 = vector.shape_cast %91 : vector<1x32x1xf32> to vector<32x1xf32>
    %c1_65 = arith.constant 1 : index
    %c0_66 = arith.constant 0 : index
    %c117_67 = arith.constant 117 : index
    %93 = vector.load %arg6[%c1_65, %c0_66, %c117_67] : memref<2x32x256xf32, #tpu.memory_space<vmem>>, vector<1x32x80xf32>
    %94 = vector.shape_cast %93 : vector<1x32x80xf32> to vector<32x80xf32>
    %95 = vector.extract_strided_slice %90 {offsets = [0, 0, 0], sizes = [1, 32, 32], strides = [1, 1, 1]} : vector<9x32x32xf32> to vector<1x32x32xf32>
    %96 = vector.shape_cast %95 : vector<1x32x32xf32> to vector<32x32xf32>
    %cst_68 = arith.constant dense<0.000000e+00> : vector<32x80xf32>
    %97 = tpu.matmul %96, %94, %cst_68 {dimension_numbers = #tpu.dot_dimension_numbers<[1], [0], [0], [1], [0, 0, 1, 1], [], []>} : vector<32x32xf32>, vector<32x80xf32>, vector<32x80xf32> -> vector<32x80xf32>
    %c1_69 = arith.constant 1 : index
    %c0_70 = arith.constant 0 : index
    %c118_71 = arith.constant 118 : index
    %98 = vector.load %arg6[%c1_69, %c0_70, %c118_71] : memref<2x32x256xf32, #tpu.memory_space<vmem>>, vector<1x32x80xf32>
    %99 = vector.shape_cast %98 : vector<1x32x80xf32> to vector<32x80xf32>
    %100 = vector.extract_strided_slice %90 {offsets = [1, 0, 0], sizes = [1, 32, 32], strides = [1, 1, 1]} : vector<9x32x32xf32> to vector<1x32x32xf32>
    %101 = vector.shape_cast %100 : vector<1x32x32xf32> to vector<32x32xf32>
    %cst_72 = arith.constant dense<0.000000e+00> : vector<32x80xf32>
    %102 = tpu.matmul %101, %99, %cst_72 {dimension_numbers = #tpu.dot_dimension_numbers<[1], [0], [0], [1], [0, 0, 1, 1], [], []>} : vector<32x32xf32>, vector<32x80xf32>, vector<32x80xf32> -> vector<32x80xf32>
    %103 = arith.addf %97, %102 : vector<32x80xf32>
    %c1_73 = arith.constant 1 : index
    %c0_74 = arith.constant 0 : index
    %c119_75 = arith.constant 119 : index
    %104 = vector.load %arg6[%c1_73, %c0_74, %c119_75] : memref<2x32x256xf32, #tpu.memory_space<vmem>>, vector<1x32x80xf32>
    %105 = vector.shape_cast %104 : vector<1x32x80xf32> to vector<32x80xf32>
    %106 = vector.extract_strided_slice %90 {offsets = [2, 0, 0], sizes = [1, 32, 32], strides = [1, 1, 1]} : vector<9x32x32xf32> to vector<1x32x32xf32>
    %107 = vector.shape_cast %106 : vector<1x32x32xf32> to vector<32x32xf32>
    %cst_76 = arith.constant dense<0.000000e+00> : vector<32x80xf32>
    %108 = tpu.matmul %107, %105, %cst_76 {dimension_numbers = #tpu.dot_dimension_numbers<[1], [0], [0], [1], [0, 0, 1, 1], [], []>} : vector<32x32xf32>, vector<32x80xf32>, vector<32x80xf32> -> vector<32x80xf32>
    %109 = arith.addf %103, %108 : vector<32x80xf32>
    %c1_77 = arith.constant 1 : index
    %c0_78 = arith.constant 0 : index
    %c127_79 = arith.constant 127 : index
    %110 = vector.load %arg6[%c1_77, %c0_78, %c127_79] : memref<2x32x256xf32, #tpu.memory_space<vmem>>, vector<1x32x80xf32>
    %111 = vector.shape_cast %110 : vector<1x32x80xf32> to vector<32x80xf32>
    %112 = vector.extract_strided_slice %90 {offsets = [3, 0, 0], sizes = [1, 32, 32], strides = [1, 1, 1]} : vector<9x32x32xf32> to vector<1x32x32xf32>
    %113 = vector.shape_cast %112 : vector<1x32x32xf32> to vector<32x32xf32>
    %cst_80 = arith.constant dense<0.000000e+00> : vector<32x80xf32>
    %114 = tpu.matmul %113, %111, %cst_80 {dimension_numbers = #tpu.dot_dimension_numbers<[1], [0], [0], [1], [0, 0, 1, 1], [], []>} : vector<32x32xf32>, vector<32x80xf32>, vector<32x80xf32> -> vector<32x80xf32>
    %115 = arith.addf %109, %114 : vector<32x80xf32>
    %c1_81 = arith.constant 1 : index
    %c0_82 = arith.constant 0 : index
    %c128_83 = arith.constant 128 : index
    %116 = vector.load %arg6[%c1_81, %c0_82, %c128_83] : memref<2x32x256xf32, #tpu.memory_space<vmem>>, vector<1x32x80xf32>
    %117 = vector.shape_cast %116 : vector<1x32x80xf32> to vector<32x80xf32>
    %118 = vector.extract_strided_slice %90 {offsets = [4, 0, 0], sizes = [1, 32, 32], strides = [1, 1, 1]} : vector<9x32x32xf32> to vector<1x32x32xf32>
    %119 = vector.shape_cast %118 : vector<1x32x32xf32> to vector<32x32xf32>
    %cst_84 = arith.constant dense<0.000000e+00> : vector<32x80xf32>
    %120 = tpu.matmul %119, %117, %cst_84 {dimension_numbers = #tpu.dot_dimension_numbers<[1], [0], [0], [1], [0, 0, 1, 1], [], []>} : vector<32x32xf32>, vector<32x80xf32>, vector<32x80xf32> -> vector<32x80xf32>
    %121 = arith.addf %115, %120 : vector<32x80xf32>
    %c1_85 = arith.constant 1 : index
    %c0_86 = arith.constant 0 : index
    %c129_87 = arith.constant 129 : index
    %122 = vector.load %arg6[%c1_85, %c0_86, %c129_87] : memref<2x32x256xf32, #tpu.memory_space<vmem>>, vector<1x32x80xf32>
    %123 = vector.shape_cast %122 : vector<1x32x80xf32> to vector<32x80xf32>
    %124 = vector.extract_strided_slice %90 {offsets = [5, 0, 0], sizes = [1, 32, 32], strides = [1, 1, 1]} : vector<9x32x32xf32> to vector<1x32x32xf32>
    %125 = vector.shape_cast %124 : vector<1x32x32xf32> to vector<32x32xf32>
    %cst_88 = arith.constant dense<0.000000e+00> : vector<32x80xf32>
    %126 = tpu.matmul %125, %123, %cst_88 {dimension_numbers = #tpu.dot_dimension_numbers<[1], [0], [0], [1], [0, 0, 1, 1], [], []>} : vector<32x32xf32>, vector<32x80xf32>, vector<32x80xf32> -> vector<32x80xf32>
    %127 = arith.addf %121, %126 : vector<32x80xf32>
    %c1_89 = arith.constant 1 : index
    %c0_90 = arith.constant 0 : index
    %c137_91 = arith.constant 137 : index
    %128 = vector.load %arg6[%c1_89, %c0_90, %c137_91] : memref<2x32x256xf32, #tpu.memory_space<vmem>>, vector<1x32x80xf32>
    %129 = vector.shape_cast %128 : vector<1x32x80xf32> to vector<32x80xf32>
    %130 = vector.extract_strided_slice %90 {offsets = [6, 0, 0], sizes = [1, 32, 32], strides = [1, 1, 1]} : vector<9x32x32xf32> to vector<1x32x32xf32>
    %131 = vector.shape_cast %130 : vector<1x32x32xf32> to vector<32x32xf32>
    %cst_92 = arith.constant dense<0.000000e+00> : vector<32x80xf32>
    %132 = tpu.matmul %131, %129, %cst_92 {dimension_numbers = #tpu.dot_dimension_numbers<[1], [0], [0], [1], [0, 0, 1, 1], [], []>} : vector<32x32xf32>, vector<32x80xf32>, vector<32x80xf32> -> vector<32x80xf32>
    %133 = arith.addf %127, %132 : vector<32x80xf32>
    %c1_93 = arith.constant 1 : index
    %c0_94 = arith.constant 0 : index
    %c138_95 = arith.constant 138 : index
    %134 = vector.load %arg6[%c1_93, %c0_94, %c138_95] : memref<2x32x256xf32, #tpu.memory_space<vmem>>, vector<1x32x80xf32>
    %135 = vector.shape_cast %134 : vector<1x32x80xf32> to vector<32x80xf32>
    %136 = vector.extract_strided_slice %90 {offsets = [7, 0, 0], sizes = [1, 32, 32], strides = [1, 1, 1]} : vector<9x32x32xf32> to vector<1x32x32xf32>
    %137 = vector.shape_cast %136 : vector<1x32x32xf32> to vector<32x32xf32>
    %cst_96 = arith.constant dense<0.000000e+00> : vector<32x80xf32>
    %138 = tpu.matmul %137, %135, %cst_96 {dimension_numbers = #tpu.dot_dimension_numbers<[1], [0], [0], [1], [0, 0, 1, 1], [], []>} : vector<32x32xf32>, vector<32x80xf32>, vector<32x80xf32> -> vector<32x80xf32>
    %139 = arith.addf %133, %138 : vector<32x80xf32>
    %c1_97 = arith.constant 1 : index
    %c0_98 = arith.constant 0 : index
    %c139_99 = arith.constant 139 : index
    %140 = vector.load %arg6[%c1_97, %c0_98, %c139_99] : memref<2x32x256xf32, #tpu.memory_space<vmem>>, vector<1x32x80xf32>
    %141 = vector.shape_cast %140 : vector<1x32x80xf32> to vector<32x80xf32>
    %142 = vector.extract_strided_slice %90 {offsets = [8, 0, 0], sizes = [1, 32, 32], strides = [1, 1, 1]} : vector<9x32x32xf32> to vector<1x32x32xf32>
    %143 = vector.shape_cast %142 : vector<1x32x32xf32> to vector<32x32xf32>
    %cst_100 = arith.constant dense<0.000000e+00> : vector<32x80xf32>
    %144 = tpu.matmul %143, %141, %cst_100 {dimension_numbers = #tpu.dot_dimension_numbers<[1], [0], [0], [1], [0, 0, 1, 1], [], []>} : vector<32x32xf32>, vector<32x80xf32>, vector<32x80xf32> -> vector<32x80xf32>
    %145 = arith.addf %139, %144 : vector<32x80xf32>
    %146 = vector.broadcast %92 : vector<32x1xf32> to vector<32x80xf32>
    %147 = arith.addf %145, %146 : vector<32x80xf32>
    %cst_101 = arith.constant 0.000000e+00 : f32
    %148 = vector.broadcast %cst_101 : f32 to vector<32x80xf32>
    %149 = arith.maximumf %147, %148 : vector<32x80xf32>
    %c0_102 = arith.constant 0 : index
    %c0_103 = arith.constant 0 : index
    %150 = vector.load %arg2[%c0_102, %c0_103] : memref<1x80xf32, #tpu.memory_space<vmem>>, vector<1x80xf32>
    %151 = vector.broadcast %150 : vector<1x80xf32> to vector<32x80xf32>
    %152 = arith.mulf %149, %151 : vector<32x80xf32>
    %c0_104 = arith.constant 0 : index
    %c0_105 = arith.constant 0 : index
    %c128_106 = arith.constant 128 : index
    %153 = vector.load %arg6[%c0_104, %c0_105, %c128_106] : memref<2x32x256xf32, #tpu.memory_space<vmem>>, vector<1x32x80xf32>
    %154 = vector.shape_cast %153 : vector<1x32x80xf32> to vector<32x80xf32>
    %155 = vector.shape_cast %152 : vector<32x80xf32> to vector<1x32x80xf32>
    tpu.vector_store %arg6[%c0_104, %c0_105, %c128_106], %155 {strides = array<i32>} : memref<2x32x256xf32, #tpu.memory_space<vmem>>, vector<1x32x80xf32>,
    %c14 = arith.constant 14 : index
    %c0_107 = arith.constant 0 : index
    %c0_108 = arith.constant 0 : index
    %c0_109 = arith.constant 0 : index
    %156 = vector.load %arg3[%c14, %c0_107, %c0_108, %c0_109] : memref<15x9x32x32xf32, #tpu.memory_space<vmem>>, vector<1x9x32x32xf32>
    %157 = vector.shape_cast %156 : vector<1x9x32x32xf32> to vector<9x32x32xf32>
    %c14_110 = arith.constant 14 : index
    %c0_111 = arith.constant 0 : index
    %c0_112 = arith.constant 0 : index
    %158 = vector.load %arg4[%c14_110, %c0_111, %c0_112] : memref<15x32x1xf32, #tpu.memory_space<vmem>>, vector<1x32x1xf32>
    %159 = vector.shape_cast %158 : vector<1x32x1xf32> to vector<32x1xf32>
    %c0_113 = arith.constant 0 : index
    %c0_114 = arith.constant 0 : index
    %c117_115 = arith.constant 117 : index
    %160 = vector.load %arg6[%c0_113, %c0_114, %c117_115] : memref<2x32x256xf32, #tpu.memory_space<vmem>>, vector<1x32x80xf32>
    %161 = vector.shape_cast %160 : vector<1x32x80xf32> to vector<32x80xf32>
    %162 = vector.extract_strided_slice %157 {offsets = [0, 0, 0], sizes = [1, 16, 32], strides = [1, 1, 1]} : vector<9x32x32xf32> to vector<1x16x32xf32>
    %163 = vector.shape_cast %162 : vector<1x16x32xf32> to vector<16x32xf32>
    %cst_116 = arith.constant dense<0.000000e+00> : vector<16x80xf32>
    %164 = tpu.matmul %163, %161, %cst_116 {dimension_numbers = #tpu.dot_dimension_numbers<[1], [0], [0], [1], [0, 0, 1, 1], [], []>} : vector<16x32xf32>, vector<32x80xf32>, vector<16x80xf32> -> vector<16x80xf32>
    %c0_117 = arith.constant 0 : index
    %c0_118 = arith.constant 0 : index
    %c118_119 = arith.constant 118 : index
    %165 = vector.load %arg6[%c0_117, %c0_118, %c118_119] : memref<2x32x256xf32, #tpu.memory_space<vmem>>, vector<1x32x80xf32>
    %166 = vector.shape_cast %165 : vector<1x32x80xf32> to vector<32x80xf32>
    %167 = vector.extract_strided_slice %157 {offsets = [1, 0, 0], sizes = [1, 16, 32], strides = [1, 1, 1]} : vector<9x32x32xf32> to vector<1x16x32xf32>
    %168 = vector.shape_cast %167 : vector<1x16x32xf32> to vector<16x32xf32>
    %cst_120 = arith.constant dense<0.000000e+00> : vector<16x80xf32>
    %169 = tpu.matmul %168, %166, %cst_120 {dimension_numbers = #tpu.dot_dimension_numbers<[1], [0], [0], [1], [0, 0, 1, 1], [], []>} : vector<16x32xf32>, vector<32x80xf32>, vector<16x80xf32> -> vector<16x80xf32>
    %170 = arith.addf %164, %169 : vector<16x80xf32>
    %c0_121 = arith.constant 0 : index
    %c0_122 = arith.constant 0 : index
    %c119_123 = arith.constant 119 : index
    %171 = vector.load %arg6[%c0_121, %c0_122, %c119_123] : memref<2x32x256xf32, #tpu.memory_space<vmem>>, vector<1x32x80xf32>
    %172 = vector.shape_cast %171 : vector<1x32x80xf32> to vector<32x80xf32>
    %173 = vector.extract_strided_slice %157 {offsets = [2, 0, 0], sizes = [1, 16, 32], strides = [1, 1, 1]} : vector<9x32x32xf32> to vector<1x16x32xf32>
    %174 = vector.shape_cast %173 : vector<1x16x32xf32> to vector<16x32xf32>
    %cst_124 = arith.constant dense<0.000000e+00> : vector<16x80xf32>
    %175 = tpu.matmul %174, %172, %cst_124 {dimension_numbers = #tpu.dot_dimension_numbers<[1], [0], [0], [1], [0, 0, 1, 1], [], []>} : vector<16x32xf32>, vector<32x80xf32>, vector<16x80xf32> -> vector<16x80xf32>
    %176 = arith.addf %170, %175 : vector<16x80xf32>
    %c0_125 = arith.constant 0 : index
    %c0_126 = arith.constant 0 : index
    %c127_127 = arith.constant 127 : index
    %177 = vector.load %arg6[%c0_125, %c0_126, %c127_127] : memref<2x32x256xf32, #tpu.memory_space<vmem>>, vector<1x32x80xf32>
    %178 = vector.shape_cast %177 : vector<1x32x80xf32> to vector<32x80xf32>
    %179 = vector.extract_strided_slice %157 {offsets = [3, 0, 0], sizes = [1, 16, 32], strides = [1, 1, 1]} : vector<9x32x32xf32> to vector<1x16x32xf32>
    %180 = vector.shape_cast %179 : vector<1x16x32xf32> to vector<16x32xf32>
    %cst_128 = arith.constant dense<0.000000e+00> : vector<16x80xf32>
    %181 = tpu.matmul %180, %178, %cst_128 {dimension_numbers = #tpu.dot_dimension_numbers<[1], [0], [0], [1], [0, 0, 1, 1], [], []>} : vector<16x32xf32>, vector<32x80xf32>, vector<16x80xf32> -> vector<16x80xf32>
    %182 = arith.addf %176, %181 : vector<16x80xf32>
    %c0_129 = arith.constant 0 : index
    %c0_130 = arith.constant 0 : index
    %c128_131 = arith.constant 128 : index
    %183 = vector.load %arg6[%c0_129, %c0_130, %c128_131] : memref<2x32x256xf32, #tpu.memory_space<vmem>>, vector<1x32x80xf32>
    %184 = vector.shape_cast %183 : vector<1x32x80xf32> to vector<32x80xf32>
    %185 = vector.extract_strided_slice %157 {offsets = [4, 0, 0], sizes = [1, 16, 32], strides = [1, 1, 1]} : vector<9x32x32xf32> to vector<1x16x32xf32>
    %186 = vector.shape_cast %185 : vector<1x16x32xf32> to vector<16x32xf32>
    %cst_132 = arith.constant dense<0.000000e+00> : vector<16x80xf32>
    %187 = tpu.matmul %186, %184, %cst_132 {dimension_numbers = #tpu.dot_dimension_numbers<[1], [0], [0], [1], [0, 0, 1, 1], [], []>} : vector<16x32xf32>, vector<32x80xf32>, vector<16x80xf32> -> vector<16x80xf32>
    %188 = arith.addf %182, %187 : vector<16x80xf32>
    %c0_133 = arith.constant 0 : index
    %c0_134 = arith.constant 0 : index
    %c129_135 = arith.constant 129 : index
    %189 = vector.load %arg6[%c0_133, %c0_134, %c129_135] : memref<2x32x256xf32, #tpu.memory_space<vmem>>, vector<1x32x80xf32>
    %190 = vector.shape_cast %189 : vector<1x32x80xf32> to vector<32x80xf32>
    %191 = vector.extract_strided_slice %157 {offsets = [5, 0, 0], sizes = [1, 16, 32], strides = [1, 1, 1]} : vector<9x32x32xf32> to vector<1x16x32xf32>
    %192 = vector.shape_cast %191 : vector<1x16x32xf32> to vector<16x32xf32>
    %cst_136 = arith.constant dense<0.000000e+00> : vector<16x80xf32>
    %193 = tpu.matmul %192, %190, %cst_136 {dimension_numbers = #tpu.dot_dimension_numbers<[1], [0], [0], [1], [0, 0, 1, 1], [], []>} : vector<16x32xf32>, vector<32x80xf32>, vector<16x80xf32> -> vector<16x80xf32>
    %194 = arith.addf %188, %193 : vector<16x80xf32>
    %c0_137 = arith.constant 0 : index
    %c0_138 = arith.constant 0 : index
    %c137_139 = arith.constant 137 : index
    %195 = vector.load %arg6[%c0_137, %c0_138, %c137_139] : memref<2x32x256xf32, #tpu.memory_space<vmem>>, vector<1x32x80xf32>
    %196 = vector.shape_cast %195 : vector<1x32x80xf32> to vector<32x80xf32>
    %197 = vector.extract_strided_slice %157 {offsets = [6, 0, 0], sizes = [1, 16, 32], strides = [1, 1, 1]} : vector<9x32x32xf32> to vector<1x16x32xf32>
    %198 = vector.shape_cast %197 : vector<1x16x32xf32> to vector<16x32xf32>
    %cst_140 = arith.constant dense<0.000000e+00> : vector<16x80xf32>
    %199 = tpu.matmul %198, %196, %cst_140 {dimension_numbers = #tpu.dot_dimension_numbers<[1], [0], [0], [1], [0, 0, 1, 1], [], []>} : vector<16x32xf32>, vector<32x80xf32>, vector<16x80xf32> -> vector<16x80xf32>
    %200 = arith.addf %194, %199 : vector<16x80xf32>
    %c0_141 = arith.constant 0 : index
    %c0_142 = arith.constant 0 : index
    %c138_143 = arith.constant 138 : index
    %201 = vector.load %arg6[%c0_141, %c0_142, %c138_143] : memref<2x32x256xf32, #tpu.memory_space<vmem>>, vector<1x32x80xf32>
    %202 = vector.shape_cast %201 : vector<1x32x80xf32> to vector<32x80xf32>
    %203 = vector.extract_strided_slice %157 {offsets = [7, 0, 0], sizes = [1, 16, 32], strides = [1, 1, 1]} : vector<9x32x32xf32> to vector<1x16x32xf32>
    %204 = vector.shape_cast %203 : vector<1x16x32xf32> to vector<16x32xf32>
    %cst_144 = arith.constant dense<0.000000e+00> : vector<16x80xf32>
    %205 = tpu.matmul %204, %202, %cst_144 {dimension_numbers = #tpu.dot_dimension_numbers<[1], [0], [0], [1], [0, 0, 1, 1], [], []>} : vector<16x32xf32>, vector<32x80xf32>, vector<16x80xf32> -> vector<16x80xf32>
    %206 = arith.addf %200, %205 : vector<16x80xf32>
    %c0_145 = arith.constant 0 : index
    %c0_146 = arith.constant 0 : index
    %c139_147 = arith.constant 139 : index
    %207 = vector.load %arg6[%c0_145, %c0_146, %c139_147] : memref<2x32x256xf32, #tpu.memory_space<vmem>>, vector<1x32x80xf32>
    %208 = vector.shape_cast %207 : vector<1x32x80xf32> to vector<32x80xf32>
    %209 = vector.extract_strided_slice %157 {offsets = [8, 0, 0], sizes = [1, 16, 32], strides = [1, 1, 1]} : vector<9x32x32xf32> to vector<1x16x32xf32>
    %210 = vector.shape_cast %209 : vector<1x16x32xf32> to vector<16x32xf32>
    %cst_148 = arith.constant dense<0.000000e+00> : vector<16x80xf32>
    %211 = tpu.matmul %210, %208, %cst_148 {dimension_numbers = #tpu.dot_dimension_numbers<[1], [0], [0], [1], [0, 0, 1, 1], [], []>} : vector<16x32xf32>, vector<32x80xf32>, vector<16x80xf32> -> vector<16x80xf32>
    %212 = arith.addf %206, %211 : vector<16x80xf32>
    %213 = vector.extract_strided_slice %159 {offsets = [0, 0], sizes = [16, 1], strides = [1, 1]} : vector<32x1xf32> to vector<16x1xf32>
    %214 = vector.broadcast %213 : vector<16x1xf32> to vector<16x80xf32>
    %215 = arith.addf %212, %214 : vector<16x80xf32>
    %c0_149 = arith.constant 0 : index
    %c0_150 = arith.constant 0 : index
    %c0_151 = arith.constant 0 : index
    %216 = vector.load %arg5[%c0_149, %c0_150, %c0_151] : memref<1x16x80xf32, #tpu.memory_space<vmem>>, vector<1x16x80xf32>
    %217 = vector.shape_cast %216 : vector<1x16x80xf32> to vector<16x80xf32>
    %218 = vector.shape_cast %215 : vector<16x80xf32> to vector<1x16x80xf32>
    tpu.vector_store %arg5[%c0_149, %c0_150, %c0_151], %218 {strides = array<i32>} : memref<1x16x80xf32, #tpu.memory_space<vmem>>, vector<1x16x80xf32>,
    return
  }
  func.func @transform_0(%arg0: i32) -> (i32, i32, i32) {
    %c0_i32 = arith.constant 0 : i32
    %c0_i32_0 = arith.constant 0 : i32
    %c0_i32_1 = arith.constant 0 : i32
    return %arg0, %c0_i32, %c0_i32_0 : i32, i32, i32
  }
  func.func @transform_1(%arg0: i32) -> (i32, i32) {
    %c0_i32 = arith.constant 0 : i32
    %c0_i32_0 = arith.constant 0 : i32
    %c0_i32_1 = arith.constant 0 : i32
    return %c0_i32, %c0_i32_0 : i32, i32
  }
  func.func @transform_2(%arg0: i32) -> (i32, i32, i32, i32) {
    %c0_i32 = arith.constant 0 : i32
    %c0_i32_0 = arith.constant 0 : i32
    %c0_i32_1 = arith.constant 0 : i32
    %c0_i32_2 = arith.constant 0 : i32
    %c0_i32_3 = arith.constant 0 : i32
    return %c0_i32, %c0_i32_0, %c0_i32_1, %c0_i32_2 : i32, i32, i32, i32
  }
  func.func @transform_3(%arg0: i32) -> (i32, i32, i32) {
    %c0_i32 = arith.constant 0 : i32
    %c0_i32_0 = arith.constant 0 : i32
    %c0_i32_1 = arith.constant 0 : i32
    %c0_i32_2 = arith.constant 0 : i32
    return %c0_i32, %c0_i32_0, %c0_i32_1 : i32, i32, i32
  }
  func.func @transform_4(%arg0: i32) -> (i32, i32, i32) {
    %c0_i32 = arith.constant 0 : i32
    %c0_i32_0 = arith.constant 0 : i32
    %c0_i32_1 = arith.constant 0 : i32
    return %arg0, %c0_i32, %c0_i32_0 : i32, i32, i32
  }
}

</mosaic_0001>

<bundles_post_ra>
// kernel: tpu_custom_call.1
= control target key start
LH: loop header
LB: loop body
LE: loop exit
PB: predicated region body
PF: predicated region fallthrough
CT: control target
= control target key end

     0   :  { %s9157_s0 = inlined_call_operand.hbm [shape: f32[2,16,256], index: 0, kind: input, shape index: {}]   ;;  %s9158_s1 = inlined_call_operand.hbm [shape: f32[1,80], index: 1, kind: input, shape index: {}]   ;;  %s9159_s2 = inlined_call_operand.hbm [shape: f32[15,9,32,32], index: 2, kind: input, shape index: {}]   ;;  %s9160_s3 = inlined_call_operand.vmem [shape: f32[15,32,1], index: 3, kind: input, shape index: {}]   ;;  %s9161_s4 = inlined_call_operand.hbm [shape: f32[2,16,80], index: 4, kind: output, shape index: {}]  }
   0x1   :  { %9179 = sst [smem:[#allocation13_spill]] %s9158_s1 }
   0x2   :  { %9 = vsyncpa [#allocation4], 0 }
   0x3   :  { %11 = vsyncpa [#allocation4 + $0x1], 0 }
   0x4   :  { %12 = vsyncpa [#allocation7], 0 }
   0x5   :  { %13 = vsyncpa [#allocation5], 0 }
   0x6   :  { %15 = vsyncpa [#allocation5 + $0x1], 0  ;;  %s8367_s15 = smov 0   ;;  %s8369_s16 = smov 0  }
   0x7   :  { %s8371_s17 = smov 0   ;;  %s8373_s18 = smov 0  }
   0x8 LB: > { %s8388_s19 = sadd.s32 4294967295, %s8307_s18   ;;  %s5858_s20 = sadd.s32 4294967294, %s8307_s18   ;;  %s8307_s18 = sphi %s8373_s18, %s9206_s18   ;;  %s8303_s17 = sphi %s8371_s17, %s9205_s17   ;;  %s8299_s16 = sphi %s8369_s16, %s9204_s16   ;;  %s8295_s15 = sphi %s8367_s15, %s9203_s15  }
   0x9   : > { %s8392_s21 = sadd.s32 1, %s8307_s18   ;;  %s28_s22 = sadd.s32 1, %s8303_s17 }
   0xa   : > { %s25_s23 = ssub.s32 %s8307_s18, %s8392_s21  ;;  %p35_p0 = scmp.ne.s32.totalorder %s8303_s17, %s8299_s16 }
   0xb   : > { %p26_p1 = scmp.eq.s32.totalorder %s25_s23, 0  ;;  %p36_p2 = scmp.eq.s32.totalorder %s8307_s18, 0 }
   0xc   : > { %p41_p3 = scmp.ne.s32.totalorder %s8299_s16, %s8295_s15  ;;  %p9162_p4 = scmp.eq.s32.totalorder %s8388_s19, 0 }
   0xd   : > { %s8404_s24 = scalar_select %p26_p1, %s8303_s17, %s28_s22  }
   0xe   : > { %p8406_p5 = por %p36_p2, %p35_p0  ;;  %p8412_p6 = por %p9162_p4, %p41_p3 }
   0xf   : > { %p128_p7 = scmp.eq.s32.totalorder %s8388_s19, 1  ;;  %p134_p8 = scmp.eq.s32.totalorder %s5858_s20, 1 }
  0x10   : > { %s9181_s26 = scalar_select %p8412_p6, 1, 0 }
  0x11   : > { %p5859_p9 = scmp.ge.s32.totalorder %s8307_s18, 1  ;;  %p141_p10 = scmp.lt.s32.totalorder %s8307_s18, 3 }
  0x12   : > { %p8419_p11 = por %p128_p7, %p35_p0  ;;  %p8423_p12 = por %p134_p8, %p41_p3 }
  0x13   : > { %p8427_p13 = pnand %p5859_p9, %p141_p10  ;;  %s8313_s30 = smov [#allocation6]  }
  0x14   : > { %s9182_s27 = scalar_select %p8419_p11, 1, 0 }
  0x15   : > { %s9183_s28 = scalar_select %p8423_p12, 1, 0 }
  0x16   : > { %s9184_s29 = scalar_select %p8427_p13, 1, 0 }
  0x17   : > { %p7513_p2 = pneg %p8427_p13  ;;  %s154_s5 = sshll.u32 %s8313_s30, 4  ;;  %s155_s5 = int_to_ptr.vmem [resolvable:$true] %s154_s5 }
  0x18   : > { %p7530_p4 = scmp.lt.s32.totalorder %s8307_s18, 2  ;;  %p9185_p0 = scmp.eq.s32.totalorder %s8388_s19, 0 }
  0x19   : > { %s8314_s8 = smov [#allocation8]   ;;  %s9188_s1 = sld [smem:[#allocation13_spill]] }
  0x1a   : > { %p8437_p7 = pnand %p7513_p2, %p9185_p0  ;;  %p8443_p3 = pnand %p7530_p4, %p8406_p5 }
  0x1b   : > { %s164_s9 = sshll.u32 %s8314_s8, 4  ;;  %s8447_s9 = int_to_ptr.vmem [resolvable:$true] %s164_s9 }
  0x1c   : > { %s9187_s7 = scalar_select %p8443_p3, 1, 0 }
  0x1d   : > { %p8149_p9 = pneg %p8437_p7 }
  0x1f   : > { %s8147_s12 = scalar_lea.hbm %s9188_s1, 16 }
  0x20   : > { %p8148_p8 = scmp.ne.s32.totalorder %s9188_s1, %s8147_s12  ;;  %p8154_p10 = scmp.lt.u32.totalorder %s8147_s12, %s9188_s1 }
  0x22   : > { %p8150_p4 = pnand %p8149_p9, %p8148_p8 }
  0x24   : > { %p8151_p5 = pneg %p8150_p4 }
  0x26   : > { %p8156_p2 = pnand %p8154_p10, %p8151_p5 }
  0x28   : > { %8159 = shalt.err (!%p8156_p2)
}
  0x29   : > { %s8160_s23 = scalar_lea.vmem %s155_s5, 16  ;;  %s8167_s25 = scalar_lea.vmem %s155_s5, 32 }
  0x2a   : > { %p8161_p0 = scmp.ne.s32.totalorder %s155_s5, %s8160_s23  ;;  %p8168_p11 = scmp.lt.s32.totalorder %s155_s5, %s155_s5 }
  0x2b   : > { %p8169_p6 = scmp.lt.s32.totalorder %s8167_s25, %s8160_s23 }
  0x2c   : > { %p8163_p1 = pnand %p8161_p0, %p8149_p9 }
  0x2d   : > { %p8170_p13 = por %p8169_p6, %p8168_p11 }
  0x2e   : > { %p8164_p12 = pneg %p8163_p1 }
  0x30   : > { %p8171_p3 = pnand %p8170_p13, %p8164_p12 }
  0x32   : > { %8174 = shalt.err (!%p8171_p3)
}
  0x33   : > { %7516 = dma.hbm_to_vmem [thread:$0]  (!%p8437_p7), %s9188_s1, 16, %s155_s5, [#allocation7]  }
  0x34   : > { %s181_s10 = sand.u32 1, %s8303_s17   ;;  %s8175_s13 = scalar_lea.hbm %s9159_s2, 69120 }
  0x35   : > { %p8176_p1 = scmp.ne.s32.totalorder %s9159_s2, %s8175_s13  ;;  %p8182_p12 = scmp.lt.u32.totalorder %s8175_s13, %s9159_s2 }
  0x37   : > { %p8178_p6 = pnand %p8176_p1, %p8149_p9 }
  0x39   : > { %p8179_p11 = pneg %p8178_p6 }
  0x3b   : > { %p8184_p13 = pnand %p8182_p12, %p8179_p11 }
  0x3d   : > { %8187 = shalt.err (!%p8184_p13)
}
  0x3e   : > { %s8188_s5 = scalar_lea.vmem %s8447_s9, 69120  ;;  %p8196_p5 = scmp.lt.s32.totalorder %s8447_s9, %s8447_s9 }
  0x3f   : > { %p8189_p3 = scmp.ne.s32.totalorder %s8447_s9, %s8188_s5  ;;  %p8197_p10 = scmp.lt.s32.totalorder %s8188_s5, %s8188_s5 }
  0x41   : > { %p8191_p8 = pnand %p8189_p3, %p8149_p9  ;;  %p8198_p2 = por %p8197_p10, %p8196_p5 }
  0x43   : > { %p8192_p4 = pneg %p8191_p8 }
  0x45   : > { %p8199_p0 = pnand %p8198_p2, %p8192_p4 }
  0x47   : > { %8202 = shalt.err (!%p8199_p0)
}
  0x48   : > { %s8315_s25 = smov 128   ;;  %s8316_s30 = smov 8  }
  0x49   : > { %7519 = dma.hbm_to_vmem [thread:$0]  (!%p8437_p7), %s9159_s2, 69120, %s8447_s9, [#allocation7], %s8315_s25, %s8315_s25, %s8316_s30  }
  0x4a   : > { %s5863_s12 = sshll.u32 %s181_s10, 5  ;;  %s6136_s13 = sshll.u32 %s8307_s18, 9 }
  0x4b   : > { %s8501_s22 = scalar_lea.hbm %s9157_s0, %s6136_s13  ;;  %s185_s23 = scalar_lea.vmem [#allocation3], %s5863_s12 }
  0x4c   : > { %s192_s5 = sshll.u32 %s185_s23, 4  ;;  %s8505_s6 = scalar_lea.sflag [#allocation4], %s181_s10  ;;  %s8503_s5 = int_to_ptr.vmem [resolvable:$true] %s192_s5 }
  0x4d   : > { %s8203_s1 = scalar_lea.hbm %s8501_s22, 512  ;;  %p9189_p7 = scmp.ne.s32.totalorder %s9187_s7, 0 }
  0x4e   : > { %p8204_p9 = scmp.ne.s32.totalorder %s8501_s22, %s8203_s1  ;;  %s8208_s30 = scalar_lea.hbm %s9157_s0, 1024 }
  0x4f   : > { %p8205_p1 = pneg %p9189_p7  ;;  %p8209_p12 = scmp.lt.u32.totalorder %s8501_s22, %s9157_s0 }
  0x50   : > { %p8210_p13 = scmp.lt.u32.totalorder %s8208_s30, %s8203_s1  ;;  %p8212_p8 = scmp.lt.u32.totalorder %s8203_s1, %s8501_s22 }
  0x51   : > { %p8206_p6 = pnand %p8205_p1, %p8204_p9 }
  0x52   : > { %p8211_p3 = por %p8210_p13, %p8209_p12 }
  0x53   : > { %p8207_p11 = pneg %p8206_p6 }
  0x54   : > { %p8213_p4 = por %p8212_p8, %p8211_p3 }
  0x56   : > { %p8214_p5 = pnand %p8213_p4, %p8207_p11 }
  0x58   : > { %8217 = shalt.err (!%p8214_p5)
}
  0x59   : > { %s8218_s10 = scalar_lea.vmem %s8503_s5, 512  ;;  %s8317_s12 = smov [#allocation3]  }
  0x5a   : > { %p8219_p10 = scmp.ne.s32.totalorder %s8503_s5, %s8218_s10  ;;  %s8223_s13 = sshll.u32 %s8317_s12, 4  ;;  %s8224_s13 = int_to_ptr.vmem [resolvable:$false] %s8223_s13 }
  0x5b   : > { %s8225_s14 = scalar_lea.vmem %s8224_s13, 1024  ;;  %p8226_p9 = scmp.lt.s32.totalorder %s8503_s5, %s8224_s13 }
  0x5c   : > { %p8221_p2 = pnand %p8219_p10, %p8205_p1  ;;  %p8227_p6 = scmp.lt.s32.totalorder %s8225_s14, %s8218_s10 }
  0x5e   : > { %p8222_p0 = pneg %p8221_p2  ;;  %p8228_p12 = por %p8227_p6, %p8226_p9 }
  0x60   : > { %p8229_p13 = pnand %p8228_p12, %p8222_p0 }
  0x62   : > { %8232 = shalt.err (!%p8229_p13)
}
  0x63   : > { %s8318_s1 = smov 256   ;;  %s8319_s20 = smov 16  }
  0x64   : > { %7523 = dma.hbm_to_vmem [thread:$0]  (!%p9189_p7), %s8501_s22, 512, %s8503_s5, %s8505_s6, %s8318_s1, %s8318_s1, %s8319_s20  }
  0x65   : > { %p9190_p1 = scmp.ne.s32.totalorder %s9184_s29, 0 }
  0x66   : > { %s8536_s23 = sand.u32 (!%p9190_p1), 1, %s8299_s16   ;;  %p9191_p11 = scmp.ne.s32.totalorder (!%p9190_p1), %s9181_s26, 0 }
  0x67   : > { %204 = sbr.rel (%p9190_p1) target bundleno = 2201 (0x899), region = 36  ;;  %s5867_s9 = sshll.u32 (!%p9190_p1), %s8536_s23, 5 }
  0x68   : > { %s207_s25 = scalar_lea.sflag (!%p9190_p1), [#allocation4], %s8536_s23  ;;  %s210_s30 = scalar_lea.vmem (!%p9190_p1), [#allocation3], %s5867_s9 }
  0x6e   : > { %8282 = dma.done.wait (%p9191_p11), %s207_s25, 512  }
  0x6f   : > { %8284 = vsyncadd (%p9191_p11), %s207_s25, 4294966784  ;;  %p9192_p3 = scmp.eq.s32.totalorder %s8388_s19, 0 }
  0x71   : > { %8286 = dma.done.wait (%p9192_p3), [#allocation7], 69136   ;;  %p9193_p7 = pmov %p9192_p3 }
  0x72   : > { %vm247_vm0 = vcmask 1048192   ;;  %v8320_v0 = vmov 0.0   ;;  %vm330_vm1 = vcmask 130048   ;;  %v261_v1 = vld [vmem:[%s210_s30] sm:$0xff]  ;;  %v262_v2 = vld [vmem:[%s210_s30 + $0x8] sm:$0xff]  ;;  %v263_v3 = vld [vmem:[%s210_s30 + $0x10] sm:$0xff] }
  0x73   : > { %8288 = vsyncadd (%p9193_p7), [#allocation7], 4294898160  ;;  %245 = vst [vmem:[#allocation2 + $0x20] sm:$0xff] %v8320_v0  ;;  %s5870_s26 = sshll.u32 %s8536_s23, 4  ;;  %v7611_v4 = vpack.i.bf16 %v262_v2, %v261_v1  ;;  %v264_v5 = vld [vmem:[%s210_s30 + $0x18] sm:$0xff]  ;;  %v285_v6 = vld [vmem:[#allocation8 + $0x80] sm:$0xff] }
  0x74   : > { %246 = vst [vmem:[#allocation2 + $0x30] sm:$0xff] %v8320_v0  ;;  %248 = vst.msk [vmem:[#allocation2 + $0x8] sm:$0xff] %vm247_vm0, %v8320_v0  ;;  %v8549_v7 = vpack.c.bf16 %v264_v5, %v262_v2  ;;  %6508 = vmatprep.mubr.msk.f32.mxu0 %vm330_vm1, %v285_v6  ;;  %v273_v8 = vld [vmem:[#allocation8 + $0x20] sm:$0xff]  ;;  %s8321_s29 = smov 11   ;;  %s8322_s7 = smov 10   ;;  %v7616_v9 = vpack.i.bf16 %v264_v5, %v263_v3  ;;  %v286_v10 = vld [vmem:[#allocation8 + $0x88] sm:$0xff]  ;;  %v7621_v12 = vpack.i.bf16 %v264_v5, %v262_v2 }
  0x75   : > { %250 = vst.msk [vmem:[#allocation2 + $0x28] sm:$0xff] %vm247_vm0, %v8320_v0  ;;  %251 = vst.msk [vmem:[#allocation2 + $0x38] sm:$0xff] %vm247_vm0, %v8320_v0  ;;  %7612 = vrot.lane.b32.xlu1 %v7611_v4, %s8321_s29  ;;  %7602 = vrot.lane.b32.xlu0 %v7611_v4, %s8322_s7  ;;  %v289_v11 = vld [vmem:[#allocation8 + $0xa0] sm:$0xff]  ;;  %s9173_s22 = smov 127   ;;  %s9177_s5 = smov 9   ;;  %v8329_v15 = vmov 0  }
  0x76   : > { %253 = vst [vmem:[#allocation2 + $0x40] sm:$0xff] %v8320_v0  ;;  %254 = vst [vmem:[#allocation2 + $0x50] sm:$0xff] %v8320_v0  ;;  %7048 = vmatprep.subr.bf16.mxu0 %v8549_v7  ;;  %6468 = vmatprep.mubr.msk.f32.mxu1 %vm330_vm1, %v273_v8  ;;  %s9171_s6 = smov 119   ;;  %s9175_s8 = smov 1   ;;  %v306_v13 = vld [vmem:[%s9160_s3 + $0x8] sm:$0xff]  ;;  %v305_v14 = vld [vmem:[%s9160_s3] sm:$0xff] }
  0x77   : > { %255 = vst [vmem:[#allocation2 + $0x60] sm:$0xff] %v8320_v0  ;;  %256 = vst [vmem:[#allocation2 + $0x70] sm:$0xff] %v8320_v0  ;;  %7050 = vmatpush3.bf16.msra.mxu0 %v8549_v7  ;;  %s9169_s11 = smov 118   ;;  %s9167_s10 = smov 117   ;;  %7662 = vset.pattern.permute.xlu1 %v8329_v15  ;;  %v307_v16 = vld [vmem:[%s9160_s3 + $0x10] sm:$0xff]  ;;  %v308_v17 = vld [vmem:[%s9160_s3 + $0x18] sm:$0xff] }
  0x78   : > { %249 = vst.msk [vmem:[#allocation2 + $0x18] sm:$0xff] %vm247_vm0, %v8320_v0  ;;  %257 = vst.msk [vmem:[#allocation2 + $0x48] sm:$0xff] %vm247_vm0, %v8320_v0  ;;  %7661 = vset.pattern.permute.xlu0 %v8329_v15  ;;  %vm436_vm2 = vcmask 89088   ;;  %vm325_vm3 = vcmask 80896   ;;  %vm546_vm4 = vcmask 72704   ;;  %v274_v43 = vld [vmem:[#allocation8 + $0x28] sm:$0xff] }
  0x79   : > { %258 = vst.msk [vmem:[#allocation2 + $0x58] sm:$0xff] %vm247_vm0, %v8320_v0  ;;  %259 = vst.msk [vmem:[#allocation2 + $0x68] sm:$0xff] %vm247_vm0, %v8320_v0  ;;  %7617 = vrot.lane.b32.xlu1 %v7616_v9, %s8321_s29  ;;  %7607 = vrot.lane.b32.xlu0 %v7616_v9, %s8322_s7  ;;  %v275_v46 = vld [vmem:[#allocation8 + $0x30] sm:$0xff]  ;;  %v290_v52 = vld [vmem:[#allocation8 + $0xa8] sm:$0xff]  ;;  %vm660_vm5 = vcmask 7168   ;;  %vm1334_vm6 = vcmask 654336  }
  0x7a   : > { %260 = vst.msk [vmem:[#allocation2 + $0x78] sm:$0xff] %vm247_vm0, %v8320_v0  ;;  %265 = vst [vmem:[#allocation2] sm:$0xff] %v261_v1  ;;  %6509 = vmatmul.mubr.msk.f32.vlgmr.msra.gmra.mrb[0].mxu0 %vm330_vm1, %v286_v10  ;;  %v276_v54 = vld [vmem:[#allocation8 + $0x38] sm:$0xff]  ;;  %v291_v58 = vld [vmem:[#allocation8 + $0xb0] sm:$0xff]  ;;  %s8631_s12 = scalar_lea.vmem [#allocation9], %s5870_s26  ;;  %s8633_s13 = smov 0  }
  0x7b   : > { %266 = vst [vmem:[#allocation2 + $0x8] sm:$0xff] %v262_v2  ;;  %267 = vst [vmem:[#allocation2 + $0x10] sm:$0xff] %v263_v3  ;;  %6518 = vmatprep.mubr.msk.f32.mxu0 %vm330_vm1, %v289_v11  ;;  %v269_v60 = vld [vmem:[#allocation8] sm:$0xff]  ;;  %v292_v1 = vld [vmem:[#allocation8 + $0xb8] sm:$0xff] }
  0x7c   : > { %268 = vst [vmem:[#allocation2 + $0x18] sm:$0xff] %v264_v5  ;;  %v270_v2 = vld [vmem:[#allocation8 + $0x8] sm:$0xff]  ;;  %v293_v3 = vld [vmem:[#allocation8 + $0xc0] sm:$0xff]  ;;  %v271_v8 = vld [vmem:[#allocation8 + $0x10] sm:$0xff] }
  0x7d   : > { %7622 = vrot.lane.b32.xlu0 %v7621_v12, %s9173_s22  ;;  %7627 = vrot.lane.b32.xlu1 %v7611_v4, %s9177_s5 }
  0x81   : > { %7632 = vrot.lane.b32.xlu0 %v7616_v9, %s9177_s5  ;;  %7637 = vrot.lane.b32.xlu1 %v7621_v12, %s9171_s6 }
  0x85   : > { %7642 = vrot.lane.b32.xlu0 %v7611_v4, %s9175_s8  ;;  %7647 = vrot.lane.b32.xlu1 %v7616_v9, %s9175_s8 }
  0x89   : > { %7652 = vrot.lane.b32.xlu0 %v7621_v12, %s9169_s11  ;;  %7657 = vrot.lane.b32.xlu1 %v7621_v12, %s9167_s10 }
  0x8d   : > { %1302 = vperm.xlu1 %7662, %v306_v13   ;;  %1297 = vperm.xlu0 %7661, %v305_v14  }
  0x91   : > { %1307 = vperm.xlu1 %7662, %v307_v16   ;;  %1312 = vperm.xlu0 %7661, %v308_v17   ;;  %v294_v16 = vld [vmem:[#allocation8 + $0xc8] sm:$0xff] }
  0xe7   : > { %v7613_v18 = vpop.permute.xlu1 %7612  ;;  %v7603_v19 = vpop.permute.xlu0 %7602 }
  0xe8   : > { %v7615_v20 = vunpack.i.h.bf16 %v7613_v18  ;;  %v7614_v21 = vunpack.i.l.bf16 %v7613_v18  ;;  %v7605_v22 = vunpack.i.h.bf16 %v7603_v19  ;;  %v7604_v23 = vunpack.i.l.bf16 %v7603_v19  ;;  %v272_v18 = vld [vmem:[#allocation8 + $0x18] sm:$0xff]  ;;  %v295_v19 = vld [vmem:[#allocation8 + $0xd0] sm:$0xff] }
  0xea   : > { %v437_v26 = vsel %vm436_vm2, %v7614_v21, %v7615_v20  ;;  %v326_v31 = vsel %vm325_vm3, %v7604_v23, %v7605_v22  ;;  %v277_v20 = vld [vmem:[#allocation8 + $0x40] sm:$0xff]  ;;  %v296_v22 = vld [vmem:[#allocation8 + $0xd8] sm:$0xff]  ;;  %v278_v23 = vld [vmem:[#allocation8 + $0x48] sm:$0xff] }
  0xeb   : > { %v7618_v24 = vpop.permute.xlu1 %7617  ;;  %v7608_v25 = vpop.permute.xlu0 %7607 }
  0xec   : > { %v7620_v27 = vunpack.i.h.bf16 %v7618_v24  ;;  %v7619_v28 = vunpack.i.l.bf16 %v7618_v24  ;;  %v7610_v29 = vunpack.i.h.bf16 %v7608_v25  ;;  %v7609_v30 = vunpack.i.l.bf16 %v7608_v25  ;;  %v297_v24 = vld [vmem:[#allocation8 + $0xe0] sm:$0xff]  ;;  %v279_v25 = vld [vmem:[#allocation8 + $0x50] sm:$0xff] }
  0xee   : > { %v327_v32 = vsel %vm325_vm3, %v7609_v30, %v7610_v29  ;;  %v438_v33 = vsel %vm436_vm2, %v7619_v28, %v7620_v27  ;;  %v280_v27 = vld [vmem:[#allocation8 + $0x58] sm:$0xff]  ;;  %v299_v28 = vld [vmem:[#allocation8 + $0xf0] sm:$0xff]  ;;  %v281_v29 = vld [vmem:[#allocation8 + $0x60] sm:$0xff] }
  0xef   : > { %v7623_v34 = vpop.permute.xlu0 %7622  ;;  %v7031_v35 = vpack.c.bf16 %v327_v32, %v326_v31  ;;  %v7628_v36 = vpop.permute.xlu1 %7627  ;;  %v7035_v37 = vpack.c.bf16 %v438_v33, %v437_v26  ;;  %v298_v26 = vld [vmem:[#allocation8 + $0xe8] sm:$0xff]  ;;  %v300_v30 = vld [vmem:[#allocation8 + $0xf8] sm:$0xff]  ;;  %v301_v32 = vld [vmem:[#allocation8 + $0x100] sm:$0xff] }
  0xf0   : > { %v7625_v38 = vunpack.i.h.bf16 %v7623_v34  ;;  %v7624_v39 = vunpack.i.l.bf16 %v7623_v34  ;;  %v7630_v40 = vunpack.i.h.bf16 %v7628_v36  ;;  %v7629_v41 = vunpack.i.l.bf16 %v7628_v36  ;;  %v282_v31 = vld [vmem:[#allocation8 + $0x68] sm:$0xff]  ;;  %v283_v33 = vld [vmem:[#allocation8 + $0x70] sm:$0xff] }
  0xf1   : > { %7032 = vmatprep.subr.bf16.mxu1 %v7031_v35  ;;  %v302_v34 = vld [vmem:[#allocation8 + $0x108] sm:$0xff]  ;;  %v303_v36 = vld [vmem:[#allocation8 + $0x110] sm:$0xff] }
  0xf2   : > { %v7051_v42 = vpack.c.bf16 %v7625_v38, %v7624_v39  ;;  %7034 = vmatpush3.bf16.msra.mxu1 %v7031_v35  ;;  %v547_v47 = vsel %vm546_vm4, %v7629_v41, %v7630_v40  ;;  %v284_v35 = vld [vmem:[#allocation8 + $0x78] sm:$0xff] }
  0xf3   : > { %7036 = vmatprep.subr.bf16.mxu1 %v7035_v37  ;;  %v7633_v44 = vpop.permute.xlu0 %7632  ;;  %v7638_v45 = vpop.permute.xlu1 %7637  ;;  %v304_v38 = vld [vmem:[#allocation8 + $0x118] sm:$0xff] }
  0xf4   : > { %v7635_v48 = vunpack.i.h.bf16 %v7633_v44  ;;  %v7634_v49 = vunpack.i.l.bf16 %v7633_v44  ;;  %7052 = vmatprep.subr.bf16.mxu0 %v7051_v42  ;;  %v7640_v50 = vunpack.i.h.bf16 %v7638_v45  ;;  %v7639_v51 = vunpack.i.l.bf16 %v7638_v45  ;;  %v288_v39 = vld [vmem:[#allocation8 + $0x98] sm:$0xff] }
  0xf5   : > { %6469 = vmatmul.mubr.msk.f32.vlgmr.msra.gmra.mrb[0].mxu1 %vm330_vm1, %v274_v43  ;;  %7054 = vmatpush3.bf16.msra.mxu0 %v7051_v42 }
  0xf6   : > { %7038 = vmatpush3.bf16.msra.mxu1 %v7035_v37  ;;  %v7055_v53 = vpack.c.bf16 %v7640_v50, %v7639_v51  ;;  %6471 = vmatprep.mubr.msk.f32.mxu1 %vm330_vm1, %v275_v46  ;;  %v548_v55 = vsel %vm546_vm4, %v7634_v49, %v7635_v48  ;;  %v287_v37 = vld [vmem:[#allocation8 + $0x90] sm:$0xff]  ;;  %v5907_v48 = vld [vmem:[#allocation6] ss:$0 sm:$0xff] }
  0xf7   : > { %v7039_v56 = vpack.c.bf16 %v548_v55, %v547_v47  ;;  %v7643_v57 = vpop.permute.xlu0 %7642  ;;  %v7648_v59 = vpop.permute.xlu1 %7647 }
  0xf8   : > { %6519 = vmatmul.mubr.msk.f32.vlgmr.msra.gmra.mrb[0].mxu0 %vm330_vm1, %v290_v52  ;;  %v7645_v61 = vunpack.i.h.bf16 %v7643_v57  ;;  %v7644_v62 = vunpack.i.l.bf16 %v7643_v57  ;;  %v7650_v63 = vunpack.i.h.bf16 %v7648_v59  ;;  %v7649_v0 = vunpack.i.l.bf16 %v7648_v59  ;;  %7056 = vmatprep.subr.bf16.mxu0 %v7055_v53 }
  0xf9   : > { %6472 = vmatmul.mubr.msk.f32.gmra.mrb[2].mxu1 %vm330_vm1, %v276_v54  ;;  %7040 = vmatprep.subr.bf16.mxu1 %v7039_v56 }
  0xfa   : > { %6521 = vmatprep.mubr.msk.f32.mxu0 %vm330_vm1, %v291_v58  ;;  %6478 = vmatprep.mubr.msk.f32.mxu1 %vm330_vm1, %v269_v60  ;;  %v661_v4 = vsel %vm660_vm5, %v7644_v62, %v7645_v61  ;;  %v662_v5 = vsel %vm660_vm5, %v7649_v0, %v7650_v63 }
  0xfb   : > { %7058 = vmatpush3.bf16.msra.mxu0 %v7055_v53  ;;  %v7653_v6 = vpop.permute.xlu0 %7652  ;;  %v7043_v9 = vpack.c.bf16 %v662_v5, %v661_v4  ;;  %v7658_v10 = vpop.permute.xlu1 %7657 }
  0xfc   : > { %6522 = vmatmul.mubr.msk.f32.gmra.mrb[2].mxu0 %vm330_vm1, %v292_v1  ;;  %v7655_v11 = vunpack.i.h.bf16 %v7653_v6  ;;  %v7654_v12 = vunpack.i.l.bf16 %v7653_v6  ;;  %v7660_v13 = vunpack.i.h.bf16 %v7658_v10  ;;  %v7659_v14 = vunpack.i.l.bf16 %v7658_v10 }
  0xfd   : > { %6479 = vmatmul.mubr.msk.f32.vlgmr.msra.gmra.mrb[0].mxu1 %vm330_vm1, %v270_v2  ;;  %6528 = vmatprep.mubr.msk.f32.mxu0 %vm330_vm1, %v293_v3 }
  0xfe   : > { %7042 = vmatpush3.bf16.msra.mxu1 %v7039_v56  ;;  %v7059_v17 = vpack.c.bf16 %v7655_v11, %v7654_v12  ;;  %6481 = vmatprep.mubr.msk.f32.mxu1 %vm330_vm1, %v271_v8  ;;  %v7063_v21 = vpack.c.bf16 %v7660_v13, %v7659_v14 }
  0xff   : > { %7044 = vmatprep.subr.bf16.mxu1 %v7043_v9 }
 0x100   : > { %6529 = vmatmul.mubr.msk.f32.vlgmr.msra.gmra.mrb[0].mxu0 %vm330_vm1, %v294_v16  ;;  %7060 = vmatprep.subr.bf16.mxu0 %v7059_v17 }
 0x101   : > { %6482 = vmatmul.mubr.msk.f32.gmra.mrb[2].mxu1 %vm330_vm1, %v272_v18  ;;  %6531 = vmatprep.mubr.msk.f32.mxu0 %vm330_vm1, %v295_v19 }
 0x102   : > { %6488 = vmatprep.mubr.msk.f32.mxu1 %vm330_vm1, %v277_v20  ;;  %7062 = vmatpush3.bf16.msra.mxu0 %v7059_v17 }
 0x103   : > { %7064 = vmatprep.subr.bf16.mxu0 %v7063_v21 }
 0x104   : > { %6532 = vmatmul.mubr.msk.f32.gmra.mrb[2].mxu0 %vm330_vm1, %v296_v22 }
 0x105   : > { %6489 = vmatmul.mubr.msk.f32.vlgmr.msra.gmra.mrb[0].mxu1 %vm330_vm1, %v278_v23  ;;  %6538 = vmatprep.mubr.msk.f32.mxu0 %vm330_vm1, %v297_v24 }
 0x106   : > { %7046 = vmatpush3.bf16.msra.mxu1 %v7043_v9  ;;  %6491 = vmatprep.mubr.msk.f32.mxu1 %vm330_vm1, %v279_v25 }
 0x107   : > { %7355 = vmatprep.subr.bf16.mxu1 %v8549_v7 }
 0x108   : > { %6539 = vmatmul.mubr.msk.f32.vlgmr.msra.gmra.mrb[0].mxu0 %vm330_vm1, %v298_v26 }
 0x109   : > { %6492 = vmatmul.mubr.msk.f32.gmra.mrb[2].mxu1 %vm330_vm1, %v280_v27  ;;  %6541 = vmatprep.mubr.msk.f32.mxu0 %vm330_vm1, %v299_v28 }
 0x10a   : > { %6498 = vmatprep.mubr.msk.f32.mxu1 %vm330_vm1, %v281_v29  ;;  %7066 = vmatpush3.bf16.msra.mxu0 %v7063_v21 }
 0x10c   : > { %6542 = vmatmul.mubr.msk.f32.gmra.mrb[2].mxu0 %vm330_vm1, %v300_v30  ;;  %v1303_v42 = vpop.permute.xlu1 %1302  ;;  %v1298_v45 = vpop.permute.xlu0 %1297 }
 0x10d   : > { %6499 = vmatmul.mubr.msk.f32.vlgmr.msra.gmra.mrb[0].mxu1 %vm330_vm1, %v282_v31  ;;  %6548 = vmatprep.mubr.msk.f32.mxu0 %vm330_vm1, %v301_v32 }
 0x10e   : > { %7356 = vmatpush3.bf16.msra.mxu1 %v8549_v7  ;;  %6501 = vmatprep.mubr.msk.f32.mxu1 %vm330_vm1, %v283_v33 }
 0x110   : > { %6549 = vmatmul.mubr.msk.f32.vlgmr.msra.gmra.mrb[0].mxu0 %vm330_vm1, %v302_v34  ;;  %v1313_v59 = vpop.permute.xlu0 %1312  ;;  %v1308_v61 = vpop.permute.xlu1 %1307 }
 0x111   : > { %6502 = vmatmul.mubr.msk.f32.gmra.mrb[2].mxu1 %vm330_vm1, %v284_v35  ;;  %6551 = vmatprep.mubr.msk.f32.mxu0 %vm330_vm1, %v303_v36 }
 0x112   : > { %6511 = vmatprep.mubr.msk.f32.mxu1 %vm330_vm1, %v287_v37 }
 0x114   : > { %6552 = vmatmul.mubr.msk.f32.gmra.mrb[2].mxu0 %vm330_vm1, %v304_v38 }
 0x119   : > { %6512 = vmatmul.mubr.msk.f32.vlgmr.msra.gmra.mrb[2].mxu1 %vm330_vm1, %v288_v39 }
 0x1e0   : > { %v6500_v7 = vpop.f32.mrb[0].mxu1 }
 0x1e1   : > { %v743_v40 = vpop.f32.mrb[1].mxu1 }
 0x1e3   : > { %v6550_v41 = vpop.f32.mrb[0].mxu0 }
 0x1e4   : > { %v7357_v43 = vadd.f32 %v6550_v41, %v6500_v7  ;;  %v1272_v44 = vpop.f32.mrb[1].mxu0 }
 0x1e5   : > { %v7358_v46 = vadd.f32 %v1272_v44, %v743_v40 }
 0x1e6   : > { %v1316_v47 = vadd.f32 %v7357_v43, %v1303_v42 }
 0x1e7   : > { %v1315_v49 = vadd.f32 %v7358_v46, %v1298_v45  ;;  %v6553_v50 = vpop.f32.mrb[2].mxu0 }
 0x1e8   : > { %v1320_v51 = vmax.f32 %v1316_v47, 0.0  ;;  %v1282_v52 = vpop.f32.mrb[3].mxu0 }
 0x1e9   : > { %v1319_v53 = vmax.f32 %v1315_v49, 0.0 }
 0x1ea   : > { %v1331_v54 = vmul.f32 %v5907_v48, %v1320_v51 }
 0x1eb   : > { %v1330_v55 = vmul.f32 %v5907_v48, %v1319_v53 }
 0x1ec   : > { %1336 = vst.msk [vmem:[#allocation2 + $0x58] sm:$0xff] %vm1334_vm6, %v1331_v54  ;;  %v6513_v56 = vpop.f32.mrb[2].mxu1 }
 0x1ed   : > { %1335 = vst.msk [vmem:[#allocation2 + $0x48] sm:$0xff] %vm1334_vm6, %v1330_v55  ;;  %v7359_v57 = vadd.f32 %v6553_v50, %v6513_v56  ;;  %v854_v58 = vpop.f32.mrb[3].mxu1 }
 0x1ee   : > { %v7360_v60 = vadd.f32 %v1282_v52, %v854_v58 }
 0x1ef   : > { %v1318_v62 = vadd.f32 %v7359_v57, %v1313_v59 }
 0x1f0   : > { %v1317_v63 = vadd.f32 %v7360_v60, %v1308_v61 }
 0x1f1   : > { %v1322_v0 = vmax.f32 %v1318_v62, 0.0 }
 0x1f2   : > { %v1321_v1 = vmax.f32 %v1317_v63, 0.0 }
 0x1f3   : > { %v1333_v2 = vmul.f32 %v5907_v48, %v1322_v0 }
 0x1f4   : > { %v1332_v3 = vmul.f32 %v5907_v48, %v1321_v1 }
 0x1f5   : > { %1338 = vst.msk [vmem:[#allocation2 + $0x78] sm:$0xff] %vm1334_vm6, %v1333_v2 }
 0x1f6   : > { %1337 = vst.msk [vmem:[#allocation2 + $0x68] sm:$0xff] %vm1334_vm6, %v1332_v3 }
 0x1f7 LB: >> { %v1395_v4 = vld [vmem:[#allocation2 + $0x60] sm:$0xff]  ;;  %v8641_v9 = vld [vmem:[#allocation2 + $0x48] sm:$0xff]  ;;  %v1397_v10 = vld [vmem:[#allocation2 + $0x70] sm:$0xff]  ;;  %s8330_s26 = smov 10   ;;  %s5909_s14 = smul.u32 576, %s8311_s13  ;;  %vm1431_vm7 = vcmask 261120   ;;  %s8311_s13 = sphi %s8633_s13, %s1344_s13  }
 0x1f8   : >> { %v1391_v6 = vld [vmem:[#allocation2 + $0x40] sm:$0xff]  ;;  %v1393_v13 = vld [vmem:[#allocation2 + $0x50] sm:$0xff]  ;;  %v8646_v14 = vld [vmem:[#allocation2 + $0x58] sm:$0xff]  ;;  %s8331_s20 = smov 11   ;;  %s8332_s9 = smov 9   ;;  %v8338_v21 = vmov 0  }
 0x1f9   : >> { %v7663_v12 = vpack.i.bf16 %v8641_v9, %v1391_v6  ;;  %v7668_v17 = vpack.i.bf16 %v8646_v14, %v1393_v13  ;;  %s8655_s1 = scalar_lea.vmem [#allocation8], %s5909_s14  ;;  %s8333_s25 = smov 1   ;;  %v7743_v20 = vpack.i.bf16 %v8646_v14, %v8641_v9  ;;  %7784 = vset.pattern.permute.xlu1 %v8338_v21  ;;  %7783 = vset.pattern.permute.xlu0 %v8338_v21 }
 0x1fa   : >> { %v5914_v18 = vld [vmem:[%s8655_s1 + $0x140] sm:$0xff]  ;;  %s8334_s30 = smov 127   ;;  %s8335_s14 = smov 119   ;;  %v5915_v60 = vld [vmem:[%s8655_s1 + $0x148] sm:$0xff]  ;;  %v5916_v1 = vld [vmem:[%s8655_s1 + $0x150] sm:$0xff] }
 0x1fb   : >> { %7664 = vrot.lane.b32.xlu0 %v7663_v12, %s8330_s26  ;;  %6562 = vmatprep.mubr.msk.f32.mxu0 %vm1431_vm7, %v5914_v18  ;;  %s8336_s10 = smov 118   ;;  %s8337_s11 = smov 117   ;;  %v5910_v18 = vld [vmem:[%s8655_s1 + $0x120] sm:$0xff] }
 0x1fc   : >> { %v8643_v11 = vld [vmem:[#allocation2 + $0x78] sm:$0xff]  ;;  %s6137_s6 = sshll.u32 %s8311_s13, 6  ;;  %s1344_s13 = sadd.s32 1, %s8311_s13  }
 0x1fd   : >> { %v8638_v5 = vld [vmem:[#allocation2 + $0x68] sm:$0xff]  ;;  %v7678_v16 = vpack.i.bf16 %v8643_v11, %v1397_v10  ;;  %s8687_s5 = scalar_lea.vmem %s9160_s3, %s6137_s6  ;;  %v5917_v10 = vld [vmem:[%s8655_s1 + $0x158] sm:$0xff]  ;;  %p1341_p8 = scmp.ge.s32.totalorder %s1344_s13, 6  }
 0x1fe   : >> { %v7673_v8 = vpack.i.bf16 %v8638_v5, %v1395_v4  ;;  %v7748_v19 = vpack.i.bf16 %v8643_v11, %v8638_v5  ;;  %v5949_v22 = vld [vmem:[%s8687_s5 + $0x28] sm:$0xff]  ;;  %v5948_v23 = vld [vmem:[%s8687_s5 + $0x20] sm:$0xff]  ;;  %v5950_v24 = vld [vmem:[%s8687_s5 + $0x30] sm:$0xff]  ;;  %s9194_s22 = smov (%p1341_p8), 9   ;;  %s9196_s6 = smov (%p1341_p8), 127  }
 0x1ff   : >> { %7669 = vrot.lane.b32.xlu0 %v7668_v17, %s8330_s26  ;;  %v5951_v25 = vld [vmem:[%s8687_s5 + $0x38] sm:$0xff]  ;;  %s9197_s8 = smov (%p1341_p8), 119   ;;  %p9200_p5 = scmp.ne.s32.totalorder (%p1341_p8), %s9182_s27, 0 }
 0x200   : >> { %7674 = vrot.lane.b32.xlu1 %v7673_v8, %s8330_s26 }
 0x203   : >> { %7684 = vrot.lane.b32.xlu0 %v7663_v12, %s8331_s20 }
 0x204   : >> { %7679 = vrot.lane.b32.xlu1 %v7678_v16, %s8330_s26 }
 0x207   : >> { %7694 = vrot.lane.b32.xlu0 %v7673_v8, %s8331_s20 }
 0x208   : >> { %7689 = vrot.lane.b32.xlu1 %v7668_v17, %s8331_s20 }
 0x20b   : >> { %7704 = vrot.lane.b32.xlu0 %v7663_v12, %s8332_s9 }
 0x20c   : >> { %7699 = vrot.lane.b32.xlu1 %v7678_v16, %s8331_s20 }
 0x20f   : >> { %7714 = vrot.lane.b32.xlu0 %v7673_v8, %s8332_s9 }
 0x210   : >> { %7709 = vrot.lane.b32.xlu1 %v7668_v17, %s8332_s9 }
 0x213   : >> { %7724 = vrot.lane.b32.xlu0 %v7663_v12, %s8333_s25 }
 0x214   : >> { %7719 = vrot.lane.b32.xlu1 %v7678_v16, %s8332_s9 }
 0x217   : >> { %7734 = vrot.lane.b32.xlu0 %v7673_v8, %s8333_s25 }
 0x218   : >> { %7729 = vrot.lane.b32.xlu1 %v7668_v17, %s8333_s25 }
 0x21b   : >> { %7744 = vrot.lane.b32.xlu0 %v7743_v20, %s8334_s30 }
 0x21c   : >> { %7739 = vrot.lane.b32.xlu1 %v7678_v16, %s8333_s25 }
 0x21f   : >> { %7754 = vrot.lane.b32.xlu0 %v7743_v20, %s8335_s14 }
 0x220   : >> { %7749 = vrot.lane.b32.xlu1 %v7748_v19, %s8334_s30 }
 0x223   : >> { %7764 = vrot.lane.b32.xlu0 %v7743_v20, %s8336_s10 }
 0x224   : >> { %7759 = vrot.lane.b32.xlu1 %v7748_v19, %s8335_s14 }
 0x227   : >> { %7774 = vrot.lane.b32.xlu0 %v7743_v20, %s8337_s11 }
 0x228   : >> { %7769 = vrot.lane.b32.xlu1 %v7748_v19, %s8336_s10 }
 0x22b   : >> { %2455 = vperm.xlu0 %7783, %v5948_v23  }
 0x22c   : >> { %7779 = vrot.lane.b32.xlu1 %v7748_v19, %s8337_s11 }
 0x22f   : >> { %2470 = vperm.xlu0 %7783, %v5951_v25  }
 0x230   : >> { %2460 = vperm.xlu1 %7784, %v5949_v22  }
 0x234   : >> { %2465 = vperm.xlu1 %7784, %v5950_v24   ;;  %v5911_v24 = vld [vmem:[%s8655_s1 + $0x128] sm:$0xff] }
 0x26d   : >> { %v7665_v27 = vpop.permute.xlu0 %7664 }
 0x26e   : >> { %v7667_v30 = vunpack.i.h.bf16 %v7665_v27  ;;  %v7666_v31 = vunpack.i.l.bf16 %v7665_v27 }
 0x270   : >> { %v1423_v7 = vsel %vm325_vm3, %v7666_v31, %v7667_v30 }
 0x271   : >> { %v7670_v35 = vpop.permute.xlu0 %7669 }
 0x272   : >> { %v7675_v26 = vpop.permute.xlu1 %7674  ;;  %v7672_v36 = vunpack.i.h.bf16 %v7670_v35  ;;  %v7671_v37 = vunpack.i.l.bf16 %v7670_v35  ;;  %v5913_v35 = vld [vmem:[%s8655_s1 + $0x138] sm:$0xff] }
 0x273   : >> { %v7677_v28 = vunpack.i.h.bf16 %v7675_v26  ;;  %v7676_v29 = vunpack.i.l.bf16 %v7675_v26 }
 0x274   : >> { %v1424_v40 = vsel %vm325_vm3, %v7671_v37, %v7672_v36 }
 0x275   : >> { %v1425_v38 = vsel %vm325_vm3, %v7676_v29, %v7677_v28  ;;  %v7067_v42 = vpack.c.bf16 %v1424_v40, %v1423_v7  ;;  %v7685_v45 = vpop.permute.xlu0 %7684  ;;  %v5912_v29 = vld [vmem:[%s8655_s1 + $0x130] sm:$0xff]  ;;  %v5918_v7 = vld [vmem:[%s8655_s1 + $0x160] sm:$0xff] }
 0x276   : >> { %v7680_v32 = vpop.permute.xlu1 %7679  ;;  %v7687_v46 = vunpack.i.h.bf16 %v7685_v45  ;;  %v7686_v47 = vunpack.i.l.bf16 %v7685_v45  ;;  %v5919_v45 = vld [vmem:[%s8655_s1 + $0x168] sm:$0xff] }
 0x277   : >> { %v7682_v33 = vunpack.i.h.bf16 %v7680_v32  ;;  %v7681_v34 = vunpack.i.l.bf16 %v7680_v32  ;;  %7068 = vmatprep.subr.bf16.mxu0 %v7067_v42 }
 0x278   : >> { %7070 = vmatpush3.bf16.msra.mxu0 %v7067_v42  ;;  %v1545_v50 = vsel %vm436_vm2, %v7686_v47, %v7687_v46  ;;  %v5920_v46 = vld [vmem:[%s8655_s1 + $0x170] sm:$0xff] }
 0x279   : >> { %v1426_v39 = vsel %vm325_vm3, %v7681_v34, %v7682_v33  ;;  %v7695_v54 = vpop.permute.xlu0 %7694 }
 0x27a   : >> { %v7690_v41 = vpop.permute.xlu1 %7689  ;;  %v7071_v49 = vpack.c.bf16 %v1426_v39, %v1425_v38  ;;  %v7697_v56 = vunpack.i.h.bf16 %v7695_v54  ;;  %v7696_v57 = vunpack.i.l.bf16 %v7695_v54 }
 0x27b   : >> { %v7692_v43 = vunpack.i.h.bf16 %v7690_v41  ;;  %v7691_v44 = vunpack.i.l.bf16 %v7690_v41 }
 0x27c   : >> { %7072 = vmatprep.subr.bf16.mxu0 %v7071_v49  ;;  %v1547_v59 = vsel %vm436_vm2, %v7696_v57, %v7697_v56  ;;  %v7103_v56 = vpack.c.bf16 %v8643_v11, %v8638_v5  ;;  %v5927_v5 = vld [vmem:[%s8655_s1 + $0x1a8] sm:$0xff] }
 0x27d   : >> { %v1546_v48 = vsel %vm436_vm2, %v7691_v44, %v7692_v43  ;;  %7074 = vmatpush3.bf16.msra.mxu0 %v7071_v49  ;;  %v7705_v0 = vpop.permute.xlu0 %7704  ;;  %v5922_v49 = vld [vmem:[%s8655_s1 + $0x180] sm:$0xff] }
 0x27e   : >> { %v7700_v51 = vpop.permute.xlu1 %7699  ;;  %v7075_v55 = vpack.c.bf16 %v1546_v48, %v1545_v50  ;;  %v7707_v3 = vunpack.i.h.bf16 %v7705_v0  ;;  %v7706_v4 = vunpack.i.l.bf16 %v7705_v0  ;;  %v5921_v48 = vld [vmem:[%s8655_s1 + $0x178] sm:$0xff]  ;;  %v7099_v50 = vpack.c.bf16 %v8646_v14, %v8641_v9  ;;  %v5928_v0 = vld [vmem:[%s8655_s1 + $0x1b0] sm:$0xff] }
 0x27f   : >> { %v7702_v52 = vunpack.i.h.bf16 %v7700_v51  ;;  %v7701_v53 = vunpack.i.l.bf16 %v7700_v51  ;;  %v5925_v9 = vld [vmem:[%s8655_s1 + $0x198] sm:$0xff] }
 0x280   : >> { %7076 = vmatprep.subr.bf16.mxu0 %v7075_v55  ;;  %6563 = vmatmul.mubr.msk.f32.vlgmr.msra.gmra.mrb[0].mxu0 %vm1431_vm7, %v5915_v60  ;;  %v1666_v8 = vsel %vm546_vm4, %v7706_v4, %v7707_v3  ;;  %v5926_v60 = vld [vmem:[%s8655_s1 + $0x1a0] sm:$0xff] }
 0x281   : >> { %v1548_v58 = vsel %vm436_vm2, %v7701_v53, %v7702_v52  ;;  %7078 = vmatpush3.bf16.msra.mxu0 %v7075_v55  ;;  %6565 = vmatprep.mubr.msk.f32.mxu0 %vm1431_vm7, %v5916_v1  ;;  %v7715_v17 = vpop.permute.xlu0 %7714  ;;  %v5923_v52 = vld [vmem:[%s8655_s1 + $0x188] sm:$0xff]  ;;  %v5924_v55 = vld [vmem:[%s8655_s1 + $0x190] sm:$0xff] }
 0x282   : >> { %v7710_v61 = vpop.permute.xlu1 %7709  ;;  %v7079_v2 = vpack.c.bf16 %v1548_v58, %v1547_v59  ;;  %v7717_v20 = vunpack.i.h.bf16 %v7715_v17  ;;  %v7716_v21 = vunpack.i.l.bf16 %v7715_v17 }
 0x283   : >> { %v7712_v62 = vunpack.i.h.bf16 %v7710_v61  ;;  %v7711_v63 = vunpack.i.l.bf16 %v7710_v61 }
 0x284   : >> { %7080 = vmatprep.subr.bf16.mxu0 %v7079_v2  ;;  %6566 = vmatmul.mubr.msk.f32.gmra.mrb[2].mxu0 %vm1431_vm7, %v5917_v10  ;;  %v1668_v23 = vsel %vm546_vm4, %v7716_v21, %v7717_v20  ;;  %v5933_v20 = vld [vmem:[%s8655_s1 + $0x1d8] sm:$0xff] }
 0x285   : >> { %v1667_v6 = vsel %vm546_vm4, %v7711_v63, %v7712_v62  ;;  %7082 = vmatpush3.bf16.msra.mxu0 %v7079_v2  ;;  %6576 = vmatprep.mubr.msk.f32.mxu0 %vm1431_vm7, %v5910_v18  ;;  %v7725_v28 = vpop.permute.xlu0 %7724  ;;  %v5929_v2 = vld [vmem:[%s8655_s1 + $0x1b8] sm:$0xff]  ;;  %v5932_v18 = vld [vmem:[%s8655_s1 + $0x1d0] sm:$0xff] }
 0x286   : >> { %v7720_v12 = vpop.permute.xlu1 %7719  ;;  %v7083_v19 = vpack.c.bf16 %v1667_v6, %v1666_v8  ;;  %v7727_v31 = vunpack.i.h.bf16 %v7725_v28  ;;  %v7726_v32 = vunpack.i.l.bf16 %v7725_v28  ;;  %v5930_v8 = vld [vmem:[%s8655_s1 + $0x1c0] sm:$0xff] }
 0x287   : >> { %v7722_v13 = vunpack.i.h.bf16 %v7720_v12  ;;  %v7721_v16 = vunpack.i.l.bf16 %v7720_v12  ;;  %v5931_v12 = vld [vmem:[%s8655_s1 + $0x1c8] sm:$0xff] }
 0x288   : >> { %7084 = vmatprep.subr.bf16.mxu0 %v7083_v19  ;;  %6577 = vmatmul.mubr.msk.f32.vlgmr.msra.gmra.mrb[0].mxu0 %vm1431_vm7, %v5911_v24  ;;  %v1791_v34 = vsel %vm660_vm5, %v7726_v32, %v7727_v31  ;;  %v5934_v24 = vld [vmem:[%s8655_s1 + $0x1e0] sm:$0xff]  ;;  %v5937_v32 = vld [vmem:[%s8655_s1 + $0x1f8] sm:$0xff] }
 0x289   : >> { %v1669_v22 = vsel %vm546_vm4, %v7721_v16, %v7722_v13  ;;  %7086 = vmatpush3.bf16.msra.mxu0 %v7083_v19  ;;  %6579 = vmatprep.mubr.msk.f32.mxu0 %vm1431_vm7, %v5912_v29  ;;  %v7735_v39 = vpop.permute.xlu0 %7734 }
 0x28a   : >> { %v7730_v25 = vpop.permute.xlu1 %7729  ;;  %v7087_v30 = vpack.c.bf16 %v1669_v22, %v1668_v23  ;;  %v7737_v41 = vunpack.i.h.bf16 %v7735_v39  ;;  %v7736_v42 = vunpack.i.l.bf16 %v7735_v39  ;;  %v5940_v39 = vld [vmem:[%s8655_s1 + $0x210] sm:$0xff] }
 0x28b   : >> { %v7732_v26 = vunpack.i.h.bf16 %v7730_v25  ;;  %v7731_v27 = vunpack.i.l.bf16 %v7730_v25 }
 0x28c   : >> { %7088 = vmatprep.subr.bf16.mxu0 %v7087_v30  ;;  %6580 = vmatmul.mubr.msk.f32.gmra.mrb[2].mxu0 %vm1431_vm7, %v5913_v35  ;;  %v1793_v44 = vsel %vm660_vm5, %v7736_v42, %v7737_v41  ;;  %v5943_v41 = vld [vmem:[%s8655_s1 + $0x228] sm:$0xff]  ;;  %v5944_v42 = vld [vmem:[%s8655_s1 + $0x230] sm:$0xff] }
 0x28d   : >> { %v1792_v33 = vsel %vm660_vm5, %v7731_v27, %v7732_v26  ;;  %7090 = vmatpush3.bf16.msra.mxu0 %v7087_v30  ;;  %6590 = vmatprep.mubr.msk.f32.mxu0 %vm1431_vm7, %v5918_v7  ;;  %v7745_v51 = vpop.permute.xlu0 %7744  ;;  %v5935_v26 = vld [vmem:[%s8655_s1 + $0x1e8] sm:$0xff]  ;;  %v5936_v30 = vld [vmem:[%s8655_s1 + $0x1f0] sm:$0xff]  ;;  %v5941_v7 = vld [vmem:[%s8655_s1 + $0x218] sm:$0xff] }
 0x28e   : >> { %v7740_v36 = vpop.permute.xlu1 %7739  ;;  %v7091_v40 = vpack.c.bf16 %v1792_v33, %v1791_v34  ;;  %v7747_v53 = vunpack.i.h.bf16 %v7745_v51  ;;  %v7746_v54 = vunpack.i.l.bf16 %v7745_v51 }
 0x28f   : >> { %v7742_v37 = vunpack.i.h.bf16 %v7740_v36  ;;  %v7741_v38 = vunpack.i.l.bf16 %v7740_v36  ;;  %v5938_v36 = vld [vmem:[%s8655_s1 + $0x200] sm:$0xff] }
 0x290   : >> { %7092 = vmatprep.subr.bf16.mxu0 %v7091_v40  ;;  %6591 = vmatmul.mubr.msk.f32.vlgmr.msra.gmra.mrb[0].mxu0 %vm1431_vm7, %v5919_v45  ;;  %v7107_v14 = vpack.c.bf16 %v7747_v53, %v7746_v54 }
 0x291   : >> { %v1794_v43 = vsel %vm660_vm5, %v7741_v38, %v7742_v37  ;;  %7094 = vmatpush3.bf16.msra.mxu0 %v7091_v40  ;;  %6593 = vmatprep.mubr.msk.f32.mxu0 %vm1431_vm7, %v5920_v46  ;;  %v7755_v61 = vpop.permute.xlu0 %7754  ;;  %v5939_v37 = vld [vmem:[%s8655_s1 + $0x208] sm:$0xff]  ;;  %v5942_v40 = vld [vmem:[%s8655_s1 + $0x220] sm:$0xff] }
 0x292   : >> { %v7095_v47 = vpack.c.bf16 %v1794_v43, %v1793_v44  ;;  %v7750_v57 = vpop.permute.xlu1 %7749  ;;  %v7757_v62 = vunpack.i.h.bf16 %v7755_v61  ;;  %v7756_v63 = vunpack.i.l.bf16 %v7755_v61  ;;  %v5945_v43 = vld [vmem:[%s8655_s1 + $0x238] sm:$0xff] }
 0x293   : >> { %v7752_v58 = vunpack.i.h.bf16 %v7750_v57  ;;  %v7751_v59 = vunpack.i.l.bf16 %v7750_v57 }
 0x294   : >> { %7096 = vmatprep.subr.bf16.mxu0 %v7095_v47  ;;  %6594 = vmatmul.mubr.msk.f32.gmra.mrb[2].mxu0 %vm1431_vm7, %v5921_v48  ;;  %v7115_v3 = vpack.c.bf16 %v7757_v62, %v7756_v63  ;;  %v2541_v62 = vld [vmem:[#allocation2] sm:$0xff] }
 0x295   : >> { %7098 = vmatpush3.bf16.msra.mxu0 %v7095_v47  ;;  %6604 = vmatprep.mubr.msk.f32.mxu0 %vm1431_vm7, %v5922_v49  ;;  %v7111_v11 = vpack.c.bf16 %v7752_v58, %v7751_v59  ;;  %v7765_v10 = vpop.permute.xlu0 %7764  ;;  %v8783_v49 = vld [vmem:[#allocation6] ss:$0 sm:$0xff] }
 0x296   : >> { %7100 = vmatprep.subr.bf16.mxu0 %v7099_v50  ;;  %v7760_v1 = vpop.permute.xlu1 %7759  ;;  %v7767_v16 = vunpack.i.h.bf16 %v7765_v10  ;;  %v7766_v17 = vunpack.i.l.bf16 %v7765_v10 }
 0x297   : >> { %v7762_v4 = vunpack.i.h.bf16 %v7760_v1  ;;  %v7761_v6 = vunpack.i.l.bf16 %v7760_v1 }
 0x298   : >> { %6605 = vmatmul.mubr.msk.f32.vlgmr.msra.gmra.mrb[0].mxu0 %vm1431_vm7, %v5923_v52  ;;  %v7123_v21 = vpack.c.bf16 %v7767_v16, %v7766_v17 }
 0x299   : >> { %7102 = vmatpush3.bf16.msra.mxu0 %v7099_v50  ;;  %6607 = vmatprep.mubr.msk.f32.mxu0 %vm1431_vm7, %v5924_v55  ;;  %v7119_v13 = vpack.c.bf16 %v7762_v4, %v7761_v6  ;;  %v7775_v25 = vpop.permute.xlu0 %7774  ;;  %v2545_v4 = vld [vmem:[#allocation2 + $0x20] sm:$0xff] }
 0x29a   : >> { %7104 = vmatprep.subr.bf16.mxu0 %v7103_v56  ;;  %v7770_v19 = vpop.permute.xlu1 %7769  ;;  %v7777_v28 = vunpack.i.h.bf16 %v7775_v25  ;;  %v7776_v29 = vunpack.i.l.bf16 %v7775_v25  ;;  %v5995_v6 = vld [vmem:[%s8655_s1 + $0x260] sm:$0xff] }
 0x29b   : >> { %v7772_v22 = vunpack.i.h.bf16 %v7770_v19  ;;  %v7771_v23 = vunpack.i.l.bf16 %v7770_v19  ;;  %6688 = vmatprep.mubr.msk.f32.mxu1 %vm1431_vm7, %v5995_v6  ;;  %v5992_v6 = vld [vmem:[%s8655_s1 + $0x248] sm:$0xff] }
 0x29c   : >> { %6608 = vmatmul.mubr.msk.f32.gmra.mrb[2].mxu0 %vm1431_vm7, %v5925_v9  ;;  %v7131_v33 = vpack.c.bf16 %v7777_v28, %v7776_v29 }
 0x29d   : >> { %7106 = vmatpush3.bf16.msra.mxu0 %v7103_v56  ;;  %6618 = vmatprep.mubr.msk.f32.mxu0 %vm1431_vm7, %v5926_v60  ;;  %v7127_v27 = vpack.c.bf16 %v7772_v22, %v7771_v23  ;;  %v6032_v22 = vld [vmem:[%s8687_s5 + $0x58] sm:$0xff]  ;;  %v6031_v23 = vld [vmem:[%s8687_s5 + $0x50] sm:$0xff] }
 0x29e   : >> { %7108 = vmatprep.subr.bf16.mxu0 %v7107_v14  ;;  %v7780_v31 = vpop.permute.xlu1 %7779 }
 0x29f   : >> { %v7782_v34 = vunpack.i.h.bf16 %v7780_v31  ;;  %v7781_v35 = vunpack.i.l.bf16 %v7780_v31 }
 0x2a0   : >> { %6619 = vmatmul.mubr.msk.f32.vlgmr.msra.gmra.mrb[0].mxu0 %vm1431_vm7, %v5927_v5 }
 0x2a1   : >> { %7110 = vmatpush3.bf16.msra.mxu0 %v7107_v14  ;;  %6621 = vmatprep.mubr.msk.f32.mxu0 %vm1431_vm7, %v5928_v0  ;;  %v7135_v38 = vpack.c.bf16 %v7782_v34, %v7781_v35 }
 0x2a2   : >> { %7112 = vmatprep.subr.bf16.mxu0 %v7111_v11 }
 0x2a4   : >> { %6622 = vmatmul.mubr.msk.f32.gmra.mrb[2].mxu0 %vm1431_vm7, %v5929_v2 }
 0x2a5   : >> { %7114 = vmatpush3.bf16.msra.mxu0 %v7111_v11  ;;  %6632 = vmatprep.mubr.msk.f32.mxu0 %vm1431_vm7, %v5930_v8  ;;  %v2543_v11 = vld [vmem:[#allocation2 + $0x10] sm:$0xff] }
 0x2a6   : >> { %7116 = vmatprep.subr.bf16.mxu0 %v7115_v3 }
 0x2a8   : >> { %6633 = vmatmul.mubr.msk.f32.vlgmr.msra.gmra.mrb[0].mxu0 %vm1431_vm7, %v5931_v12 }
 0x2a9   : >> { %7118 = vmatpush3.bf16.msra.mxu0 %v7115_v3  ;;  %6635 = vmatprep.mubr.msk.f32.mxu0 %vm1431_vm7, %v5932_v18  ;;  %v2547_v3 = vld [vmem:[#allocation2 + $0x30] sm:$0xff] }
 0x2aa   : >> { %7120 = vmatprep.subr.bf16.mxu0 %v7119_v13  ;;  %v2456_v44 = vpop.permute.xlu0 %2455 }
 0x2ac   : >> { %6636 = vmatmul.mubr.msk.f32.gmra.mrb[2].mxu0 %vm1431_vm7, %v5933_v20  ;;  %v6030_v20 = vld [vmem:[%s8687_s5 + $0x48] sm:$0xff] }
 0x2ad   : >> { %7122 = vmatpush3.bf16.msra.mxu0 %v7119_v13  ;;  %6646 = vmatprep.mubr.msk.f32.mxu0 %vm1431_vm7, %v5934_v24 }
 0x2ae   : >> { %7124 = vmatprep.subr.bf16.mxu0 %v7123_v21  ;;  %v2471_v52 = vpop.permute.xlu0 %2470 }
 0x2af   : >> { %v2461_v45 = vpop.permute.xlu1 %2460 }
 0x2b0   : >> { %6647 = vmatmul.mubr.msk.f32.vlgmr.msra.gmra.mrb[0].mxu0 %vm1431_vm7, %v5935_v26 }
 0x2b1   : >> { %7126 = vmatpush3.bf16.msra.mxu0 %v7123_v21  ;;  %6649 = vmatprep.mubr.msk.f32.mxu0 %vm1431_vm7, %v5936_v30  ;;  %v6029_v21 = vld [vmem:[%s8687_s5 + $0x40] sm:$0xff]  ;;  %s9195_s5 = smov (%p1341_p8), 1  }
 0x2b2   : >> { %7128 = vmatprep.subr.bf16.mxu0 %v7127_v27 }
 0x2b3   : >> { %v2466_v56 = vpop.permute.xlu1 %2465 }
 0x2b4   : >> { %6650 = vmatmul.mubr.msk.f32.gmra.mrb[2].mxu0 %vm1431_vm7, %v5937_v32 }
 0x2b5   : >> { %7130 = vmatpush3.bf16.msra.mxu0 %v7127_v27  ;;  %6660 = vmatprep.mubr.msk.f32.mxu0 %vm1431_vm7, %v5938_v36 }
 0x2b6   : >> { %7132 = vmatprep.subr.bf16.mxu0 %v7131_v33 }
 0x2b8   : >> { %6661 = vmatmul.mubr.msk.f32.vlgmr.msra.gmra.mrb[0].mxu0 %vm1431_vm7, %v5939_v37 }
 0x2b9   : >> { %7134 = vmatpush3.bf16.msra.mxu0 %v7131_v33  ;;  %6663 = vmatprep.mubr.msk.f32.mxu0 %vm1431_vm7, %v5940_v39 }
 0x2ba   : >> { %7136 = vmatprep.subr.bf16.mxu0 %v7135_v38 }
 0x2bc   : >> { %6664 = vmatmul.mubr.msk.f32.gmra.mrb[2].mxu0 %vm1431_vm7, %v5941_v7 }
 0x2bd   : >> { %7138 = vmatpush3.bf16.msra.mxu0 %v7135_v38  ;;  %6674 = vmatprep.mubr.msk.f32.mxu0 %vm1431_vm7, %v5942_v40 }
 0x2c0   : >> { %6675 = vmatmul.mubr.msk.f32.vlgmr.msra.gmra.mrb[0].mxu0 %vm1431_vm7, %v5943_v41 }
 0x2c1   : >> { %6677 = vmatprep.mubr.msk.f32.mxu0 %vm1431_vm7, %v5944_v42 }
 0x2c4   : >> { %6678 = vmatmul.mubr.msk.f32.gmra.mrb[2].mxu0 %vm1431_vm7, %v5945_v43 }
 0x393   : >> { %v6676_v46 = vpop.f32.mrb[0].mxu0 }
 0x394   : >> { %v2474_v47 = vadd.f32 %v6676_v46, %v2461_v45  ;;  %v2430_v48 = vpop.f32.mrb[1].mxu0 }
 0x395   : >> { %v2473_v50 = vadd.f32 %v2456_v44, %v2430_v48 }
 0x396   : >> { %v2478_v51 = vmax.f32 %v2474_v47, 0.0 }
 0x397   : >> { %v2477_v53 = vmax.f32 %v2473_v50, 0.0  ;;  %v6679_v54 = vpop.f32.mrb[2].mxu0 }
 0x398   : >> { %v2489_v55 = vmul.f32 %v8783_v49, %v2478_v51  ;;  %v2476_v57 = vadd.f32 %v6679_v54, %v2471_v52  ;;  %v2440_v9 = vpop.f32.mrb[3].mxu0  ;;  %v5996_v51 = vld [vmem:[%s8655_s1 + $0x268] sm:$0xff] }
 0x399   : >> { %v2488_v14 = vmul.f32 %v8783_v49, %v2477_v53  ;;  %v2475_v58 = vadd.f32 %v2466_v56, %v2440_v9  ;;  %v5997_v56 = vld [vmem:[%s8655_s1 + $0x270] sm:$0xff] }
 0x39a   : >> { %2493 = vst.msk [vmem:[#allocation2 + $0x18] sm:$0xff] %vm1334_vm6, %v2489_v55  ;;  %v2480_v59 = vmax.f32 %v2476_v57, 0.0 }
 0x39b   : >> { %2492 = vst.msk [vmem:[#allocation2 + $0x8] sm:$0xff] %vm1334_vm6, %v2488_v14  ;;  %v2479_v60 = vmax.f32 %v2475_v58, 0.0 }
 0x39c   : >> { %v2491_v61 = vmul.f32 %v8783_v49, %v2480_v59 }
 0x39d   : >> { %v2490_v5 = vmul.f32 %v8783_v49, %v2479_v60  ;;  %v5998_v60 = vld [vmem:[%s8655_s1 + $0x278] sm:$0xff] }
 0x39e   : >> { %2495 = vst.msk [vmem:[#allocation2 + $0x38] sm:$0xff] %vm1334_vm6, %v2491_v61 }
 0x39f   : >> { %2494 = vst.msk [vmem:[#allocation2 + $0x28] sm:$0xff] %vm1334_vm6, %v2490_v5 }
 0x3a1   : >> { %v2544_v63 = vld [vmem:[#allocation2 + $0x18] sm:$0xff] }
 0x3a2   : >> { %v7785_v0 = vpack.i.bf16 %v2544_v63, %v2543_v11  ;;  %v2542_v1 = vld [vmem:[#allocation2 + $0x8] sm:$0xff] }
 0x3a3   : >> { %v7790_v2 = vpack.i.bf16 %v2542_v1, %v2541_v62  ;;  %v8797_v10 = vpack.c.bf16 %v2544_v63, %v2542_v1  ;;  %v7865_v19 = vpack.i.bf16 %v2544_v63, %v2542_v1  ;;  %v5991_v63 = vld [vmem:[%s8655_s1 + $0x240] sm:$0xff] }
 0x3a4   : >> { %7786 = vrot.lane.b32.xlu0 %v7785_v0, %s8330_s26 }
 0x3a5   : >> { %7791 = vrot.lane.b32.xlu1 %v7790_v2, %s8330_s26  ;;  %v2548_v8 = vld [vmem:[#allocation2 + $0x38] sm:$0xff] }
 0x3a6   : >> { %v7795_v12 = vpack.i.bf16 %v2548_v8, %v2547_v3  ;;  %v2546_v13 = vld [vmem:[#allocation2 + $0x28] sm:$0xff] }
 0x3a7   : >> { %v7800_v16 = vpack.i.bf16 %v2546_v13, %v2545_v4  ;;  %v8801_v17 = vpack.c.bf16 %v2548_v8, %v2546_v13  ;;  %v7870_v18 = vpack.i.bf16 %v2548_v8, %v2546_v13 }
 0x3a8   : >> { %7796 = vrot.lane.b32.xlu0 %v7795_v12, %s8330_s26 }
 0x3a9   : >> { %7801 = vrot.lane.b32.xlu1 %v7800_v16, %s8330_s26 }
 0x3ac   : >> { %7811 = vrot.lane.b32.xlu0 %v7785_v0, %s8331_s20 }
 0x3ad   : >> { %7806 = vrot.lane.b32.xlu1 %v7790_v2, %s8331_s20 }
 0x3b0   : >> { %7816 = vrot.lane.b32.xlu0 %v7795_v12, %s8331_s20 }
 0x3b1   : >> { %7821 = vrot.lane.b32.xlu1 %v7800_v16, %s8331_s20 }
 0x3b4   : >> { %7831 = vrot.lane.b32.xlu0 %v7785_v0, %s8332_s9 }
 0x3b5   : >> { %7826 = vrot.lane.b32.xlu1 %v7790_v2, %s8332_s9 }
 0x3b8   : >> { %7836 = vrot.lane.b32.xlu0 %v7795_v12, %s8332_s9 }
 0x3b9   : >> { %7841 = vrot.lane.b32.xlu1 %v7800_v16, %s8332_s9 }
 0x3bc   : >> { %7851 = vrot.lane.b32.xlu0 %v7785_v0, %s8333_s25 }
 0x3bd   : >> { %7846 = vrot.lane.b32.xlu1 %v7790_v2, %s8333_s25 }
 0x3c0   : >> { %7861 = vrot.lane.b32.xlu0 %v7795_v12, %s8333_s25 }
 0x3c1   : >> { %7856 = vrot.lane.b32.xlu1 %v7800_v16, %s8333_s25 }
 0x3c4   : >> { %7871 = vrot.lane.b32.xlu0 %v7870_v18, %s8334_s30 }
 0x3c5   : >> { %7866 = vrot.lane.b32.xlu1 %v7865_v19, %s8334_s30 }
 0x3c8   : >> { %7881 = vrot.lane.b32.xlu0 %v7870_v18, %s8335_s14 }
 0x3c9   : >> { %7876 = vrot.lane.b32.xlu1 %v7865_v19, %s8335_s14 }
 0x3cc   : >> { %7891 = vrot.lane.b32.xlu0 %v7870_v18, %s8336_s10 }
 0x3cd   : >> { %7886 = vrot.lane.b32.xlu1 %v7865_v19, %s8336_s10  ;;  %s9199_s10 = smov (%p1341_p8), 117  }
 0x3d0   : >> { %7901 = vrot.lane.b32.xlu0 %v7870_v18, %s8337_s11  ;;  %v5993_v18 = vld [vmem:[%s8655_s1 + $0x250] sm:$0xff] }
 0x3d1   : >> { %7896 = vrot.lane.b32.xlu1 %v7865_v19, %s8337_s11  ;;  %s9198_s11 = smov (%p1341_p8), 118  }
 0x3d4   : >> { %3609 = vperm.xlu0 %7783, %v6030_v20  }
 0x3d5   : >> { %3604 = vperm.xlu1 %7784, %v6029_v21  }
 0x3d8   : >> { %3619 = vperm.xlu0 %7783, %v6032_v22  }
 0x3d9   : >> { %3614 = vperm.xlu1 %7784, %v6031_v23  }
 0x3dc   : > { %8025 = vset.pattern.permute.xlu0 (%p1341_p8), %v8329_v15 }
 0x3dd   : > { %8026 = vset.pattern.permute.xlu1 (%p1341_p8), %v8329_v15 }
 0x416   : >> { %v7787_v24 = vpop.permute.xlu0 %7786 }
 0x417   : >> { %v7789_v25 = vunpack.i.h.bf16 %v7787_v24  ;;  %v7788_v26 = vunpack.i.l.bf16 %v7787_v24  ;;  %v7792_v27 = vpop.permute.xlu1 %7791  ;;  %v5994_v24 = vld [vmem:[%s8655_s1 + $0x258] sm:$0xff] }
 0x418   : >> { %v7794_v28 = vunpack.i.h.bf16 %v7792_v27  ;;  %v7793_v29 = vunpack.i.l.bf16 %v7792_v27 }
 0x419   : >> { %v2574_v30 = vsel %vm325_vm3, %v7788_v26, %v7789_v25 }
 0x41a   : >> { %v7797_v31 = vpop.permute.xlu0 %7796  ;;  %v2573_v32 = vsel %vm325_vm3, %v7793_v29, %v7794_v28  ;;  %v5999_v29 = vld [vmem:[%s8655_s1 + $0x280] sm:$0xff] }
 0x41b   : >> { %v7799_v33 = vunpack.i.h.bf16 %v7797_v31  ;;  %v7798_v34 = vunpack.i.l.bf16 %v7797_v31  ;;  %v7802_v35 = vpop.permute.xlu1 %7801  ;;  %v7139_v36 = vpack.c.bf16 %v2574_v30, %v2573_v32 }
 0x41c   : >> { %v7804_v37 = vunpack.i.h.bf16 %v7802_v35  ;;  %v7803_v38 = vunpack.i.l.bf16 %v7802_v35  ;;  %v6000_v35 = vld [vmem:[%s8655_s1 + $0x288] sm:$0xff] }
 0x41d   : >> { %v2576_v39 = vsel %vm325_vm3, %v7798_v34, %v7799_v33  ;;  %7140 = vmatprep.subr.bf16.mxu1 %v7139_v36 }
 0x41e   : >> { %v2575_v7 = vsel %vm325_vm3, %v7803_v38, %v7804_v37  ;;  %7142 = vmatpush3.bf16.msra.mxu1 %v7139_v36  ;;  %v7812_v40 = vpop.permute.xlu0 %7811 }
 0x41f   : >> { %v7814_v41 = vunpack.i.h.bf16 %v7812_v40  ;;  %v7813_v42 = vunpack.i.l.bf16 %v7812_v40  ;;  %v7807_v43 = vpop.permute.xlu1 %7806  ;;  %v7143_v44 = vpack.c.bf16 %v2576_v39, %v2575_v7  ;;  %v6001_v7 = vld [vmem:[%s8655_s1 + $0x290] sm:$0xff] }
 0x420   : >> { %v7809_v45 = vunpack.i.h.bf16 %v7807_v43  ;;  %v7808_v46 = vunpack.i.l.bf16 %v7807_v43 }
 0x421   : >> { %v2695_v47 = vsel %vm436_vm2, %v7813_v42, %v7814_v41  ;;  %7144 = vmatprep.subr.bf16.mxu1 %v7143_v44 }
 0x422   : >> { %v2694_v48 = vsel %vm436_vm2, %v7808_v46, %v7809_v45  ;;  %v7817_v50 = vpop.permute.xlu0 %7816  ;;  %7146 = vmatpush3.bf16.msra.mxu1 %v7143_v44  ;;  %v6002_v44 = vld [vmem:[%s8655_s1 + $0x298] sm:$0xff]  ;;  %v6003_v46 = vld [vmem:[%s8655_s1 + $0x2a0] sm:$0xff] }
 0x423   : >> { %v7819_v52 = vunpack.i.h.bf16 %v7817_v50  ;;  %v7818_v53 = vunpack.i.l.bf16 %v7817_v50  ;;  %v7822_v54 = vpop.permute.xlu1 %7821  ;;  %v7147_v55 = vpack.c.bf16 %v2695_v47, %v2694_v48  ;;  %v6004_v48 = vld [vmem:[%s8655_s1 + $0x2a8] sm:$0xff]  ;;  %v6005_v50 = vld [vmem:[%s8655_s1 + $0x2b0] sm:$0xff] }
 0x424   : >> { %v7824_v57 = vunpack.i.h.bf16 %v7822_v54  ;;  %v7823_v9 = vunpack.i.l.bf16 %v7822_v54  ;;  %v6006_v54 = vld [vmem:[%s8655_s1 + $0x2b8] sm:$0xff] }
 0x425   : >> { %v2697_v14 = vsel %vm436_vm2, %v7818_v53, %v7819_v52  ;;  %6689 = vmatmul.mubr.msk.f32.vlgmr.msra.gmra.mrb[0].mxu1 %vm1431_vm7, %v5996_v51  ;;  %7148 = vmatprep.subr.bf16.mxu1 %v7147_v55 }
 0x426   : >> { %v2696_v58 = vsel %vm436_vm2, %v7823_v9, %v7824_v57  ;;  %v7832_v59 = vpop.permute.xlu0 %7831  ;;  %7150 = vmatpush3.bf16.msra.mxu1 %v7147_v55  ;;  %6691 = vmatprep.mubr.msk.f32.mxu1 %vm1431_vm7, %v5997_v56  ;;  %v6007_v55 = vld [vmem:[%s8655_s1 + $0x2c0] sm:$0xff] }
 0x427   : >> { %v7834_v61 = vunpack.i.h.bf16 %v7832_v59  ;;  %v7833_v5 = vunpack.i.l.bf16 %v7832_v59  ;;  %v7827_v11 = vpop.permute.xlu1 %7826  ;;  %v7151_v62 = vpack.c.bf16 %v2697_v14, %v2696_v58  ;;  %v6008_v58 = vld [vmem:[%s8655_s1 + $0x2c8] sm:$0xff] }
 0x428   : >> { %v7829_v0 = vunpack.i.h.bf16 %v7827_v11  ;;  %v7828_v1 = vunpack.i.l.bf16 %v7827_v11  ;;  %v6010_v11 = vld [vmem:[%s8655_s1 + $0x2d8] sm:$0xff] }
 0x429   : >> { %v2816_v2 = vsel %vm546_vm4, %v7833_v5, %v7834_v61  ;;  %6692 = vmatmul.mubr.msk.f32.gmra.mrb[2].mxu1 %vm1431_vm7, %v5998_v60  ;;  %7152 = vmatprep.subr.bf16.mxu1 %v7151_v62 }
 0x42a   : >> { %v2815_v3 = vsel %vm546_vm4, %v7828_v1, %v7829_v0  ;;  %v7837_v4 = vpop.permute.xlu0 %7836  ;;  %7154 = vmatpush3.bf16.msra.mxu1 %v7151_v62  ;;  %6702 = vmatprep.mubr.msk.f32.mxu1 %vm1431_vm7, %v5991_v63  ;;  %v6011_v62 = vld [vmem:[%s8655_s1 + $0x2e0] sm:$0xff] }
 0x42b   : >> { %v7839_v8 = vunpack.i.h.bf16 %v7837_v4  ;;  %v7838_v12 = vunpack.i.l.bf16 %v7837_v4  ;;  %v7842_v13 = vpop.permute.xlu1 %7841  ;;  %v7155_v16 = vpack.c.bf16 %v2816_v2, %v2815_v3  ;;  %v6012_v2 = vld [vmem:[%s8655_s1 + $0x2e8] sm:$0xff]  ;;  %v6013_v3 = vld [vmem:[%s8655_s1 + $0x2f0] sm:$0xff] }
 0x42c   : >> { %v7844_v19 = vunpack.i.h.bf16 %v7842_v13  ;;  %v7843_v20 = vunpack.i.l.bf16 %v7842_v13  ;;  %v6014_v13 = vld [vmem:[%s8655_s1 + $0x2f8] sm:$0xff] }
 0x42d   : >> { %v2818_v21 = vsel %vm546_vm4, %v7838_v12, %v7839_v8  ;;  %6703 = vmatmul.mubr.msk.f32.vlgmr.msra.gmra.mrb[0].mxu1 %vm1431_vm7, %v5992_v6  ;;  %7156 = vmatprep.subr.bf16.mxu1 %v7155_v16 }
 0x42e   : >> { %v2817_v22 = vsel %vm546_vm4, %v7843_v20, %v7844_v19  ;;  %v7852_v23 = vpop.permute.xlu0 %7851  ;;  %7158 = vmatpush3.bf16.msra.mxu1 %v7155_v16  ;;  %6705 = vmatprep.mubr.msk.f32.mxu1 %vm1431_vm7, %v5993_v18  ;;  %v6015_v16 = vld [vmem:[%s8655_s1 + $0x300] sm:$0xff] }
 0x42f   : >> { %v7854_v25 = vunpack.i.h.bf16 %v7852_v23  ;;  %v7853_v26 = vunpack.i.l.bf16 %v7852_v23  ;;  %v7847_v27 = vpop.permute.xlu1 %7846  ;;  %v7159_v28 = vpack.c.bf16 %v2818_v21, %v2817_v22  ;;  %v6016_v22 = vld [vmem:[%s8655_s1 + $0x308] sm:$0xff]  ;;  %v6017_v23 = vld [vmem:[%s8655_s1 + $0x310] sm:$0xff] }
 0x430   : >> { %v7849_v30 = vunpack.i.h.bf16 %v7847_v27  ;;  %v7848_v31 = vunpack.i.l.bf16 %v7847_v27 }
 0x431   : >> { %v2941_v32 = vsel %vm660_vm5, %v7853_v26, %v7854_v25  ;;  %6706 = vmatmul.mubr.msk.f32.gmra.mrb[2].mxu1 %vm1431_vm7, %v5994_v24  ;;  %7160 = vmatprep.subr.bf16.mxu1 %v7159_v28 }
 0x432   : >> { %v2940_v33 = vsel %vm660_vm5, %v7848_v31, %v7849_v30  ;;  %v7862_v34 = vpop.permute.xlu0 %7861  ;;  %7162 = vmatpush3.bf16.msra.mxu1 %v7159_v28  ;;  %6716 = vmatprep.mubr.msk.f32.mxu1 %vm1431_vm7, %v5999_v29  ;;  %v6018_v28 = vld [vmem:[%s8655_s1 + $0x318] sm:$0xff]  ;;  %v6019_v29 = vld [vmem:[%s8655_s1 + $0x320] sm:$0xff] }
 0x433   : >> { %v7864_v36 = vunpack.i.h.bf16 %v7862_v34  ;;  %v7863_v37 = vunpack.i.l.bf16 %v7862_v34  ;;  %v7857_v38 = vpop.permute.xlu1 %7856  ;;  %v7163_v39 = vpack.c.bf16 %v2941_v32, %v2940_v33  ;;  %v6020_v33 = vld [vmem:[%s8655_s1 + $0x328] sm:$0xff]  ;;  %v6021_v34 = vld [vmem:[%s8655_s1 + $0x330] sm:$0xff] }
 0x434   : >> { %v7859_v40 = vunpack.i.h.bf16 %v7857_v38  ;;  %v7858_v41 = vunpack.i.l.bf16 %v7857_v38  ;;  %v6024_v38 = vld [vmem:[%s8655_s1 + $0x348] sm:$0xff] }
 0x435   : >> { %v2943_v42 = vsel %vm660_vm5, %v7863_v37, %v7864_v36  ;;  %6717 = vmatmul.mubr.msk.f32.vlgmr.msra.gmra.mrb[0].mxu1 %vm1431_vm7, %v6000_v35  ;;  %7164 = vmatprep.subr.bf16.mxu1 %v7163_v39  ;;  %v6022_v36 = vld [vmem:[%s8655_s1 + $0x338] sm:$0xff]  ;;  %v6023_v37 = vld [vmem:[%s8655_s1 + $0x340] sm:$0xff] }
 0x436   : >> { %v2942_v43 = vsel %vm660_vm5, %v7858_v41, %v7859_v40  ;;  %7166 = vmatpush3.bf16.msra.mxu1 %v7163_v39  ;;  %6719 = vmatprep.mubr.msk.f32.mxu1 %vm1431_vm7, %v6001_v7  ;;  %v7872_v53 = vpop.permute.xlu0 %7871  ;;  %v6025_v39 = vld [vmem:[%s8655_s1 + $0x350] sm:$0xff]  ;;  %v6026_v7 = vld [vmem:[%s8655_s1 + $0x358] sm:$0xff] }
 0x437   : >> { %v7167_v45 = vpack.c.bf16 %v2943_v42, %v2942_v43  ;;  %v7867_v47 = vpop.permute.xlu1 %7866  ;;  %v7874_v56 = vunpack.i.h.bf16 %v7872_v53  ;;  %v7873_v57 = vunpack.i.l.bf16 %v7872_v53 }
 0x438   : >> { %v7869_v51 = vunpack.i.h.bf16 %v7867_v47  ;;  %v7868_v52 = vunpack.i.l.bf16 %v7867_v47 }
 0x439   : >> { %6720 = vmatmul.mubr.msk.f32.gmra.mrb[2].mxu1 %vm1431_vm7, %v6002_v44  ;;  %7168 = vmatprep.subr.bf16.mxu1 %v7167_v45  ;;  %v7183_v59 = vpack.c.bf16 %v7874_v56, %v7873_v57 }
 0x43a   : >> { %7170 = vmatpush3.bf16.msra.mxu1 %v7167_v45  ;;  %6730 = vmatprep.mubr.msk.f32.mxu1 %vm1431_vm7, %v6003_v46  ;;  %v7179_v9 = vpack.c.bf16 %v7869_v51, %v7868_v52  ;;  %v7882_v5 = vpop.permute.xlu0 %7881 }
 0x43b   : >> { %7172 = vmatprep.subr.bf16.mxu1 %v8797_v10  ;;  %v7877_v14 = vpop.permute.xlu1 %7876  ;;  %v7883_v63 = vunpack.i.l.bf16 %v7882_v5 }
 0x43c   : >> { %v7879_v60 = vunpack.i.h.bf16 %v7877_v14  ;;  %v7878_v61 = vunpack.i.l.bf16 %v7877_v14 }
 0x43d   : >> { %6731 = vmatmul.mubr.msk.f32.vlgmr.msra.gmra.mrb[0].mxu1 %vm1431_vm7, %v6004_v48 }
 0x43e   : >> { %7174 = vmatpush3.bf16.msra.mxu1 %v8797_v10  ;;  %6733 = vmatprep.mubr.msk.f32.mxu1 %vm1431_vm7, %v6005_v50  ;;  %v6009_v10 = vld [vmem:[%s8655_s1 + $0x2d0] sm:$0xff]  ;;  %v7187_v0 = vpack.c.bf16 %v7879_v60, %v7878_v61  ;;  %v7892_v12 = vpop.permute.xlu0 %7891  ;;  %v3687_v60 = vld [vmem:[#allocation2 + $0x40] sm:$0xff] (%p1341_p8)  ;;  %s8339_s1 = smov (%p1341_p8), [#allocation9]  }
 0x43f   : >> { %7176 = vmatprep.subr.bf16.mxu1 %v8801_v17  ;;  %v7887_v1 = vpop.permute.xlu1 %7886  ;;  %v7894_v18 = vunpack.i.h.bf16 %v7892_v12  ;;  %v7893_v19 = vunpack.i.l.bf16 %v7892_v12  ;;  %v6070_v12 = vld [vmem:[%s9160_s3 + $0x1a0] sm:$0xff] (%p1341_p8)  ;;  %s8237_s20 = sshll.u32 (%p1341_p8), %s8339_s1, 4  ;;  %s8238_s20 = int_to_ptr.vmem [resolvable:$false] %s8237_s20 }
 0x440   : >> { %v7889_v6 = vunpack.i.h.bf16 %v7887_v1  ;;  %v7888_v8 = vunpack.i.l.bf16 %v7887_v1  ;;  %s8239_s9 = scalar_lea.vmem (%p1341_p8), %s8238_s20, 512 }
 0x441   : >> { %6734 = vmatmul.mubr.msk.f32.gmra.mrb[2].mxu1 %vm1431_vm7, %v6006_v54  ;;  %v7199_v24 = vpack.c.bf16 %v7894_v18, %v7893_v19 }
 0x442   : >> { %7178 = vmatpush3.bf16.msra.mxu1 %v8801_v17  ;;  %6744 = vmatprep.mubr.msk.f32.mxu1 %vm1431_vm7, %v6007_v55  ;;  %v7884_v17 = vunpack.i.h.bf16 %v7882_v5  ;;  %v7195_v20 = vpack.c.bf16 %v7889_v6, %v7888_v8  ;;  %v7902_v27 = vpop.permute.xlu0 %7901  ;;  %v6071_v8 = vld [vmem:[%s9160_s3 + $0x1a8] sm:$0xff] (%p1341_p8) }
 0x443   : >> { %7180 = vmatprep.subr.bf16.mxu1 %v7179_v9  ;;  %v7897_v21 = vpop.permute.xlu1 %7896  ;;  %v7904_v30 = vunpack.i.h.bf16 %v7902_v27  ;;  %v7903_v31 = vunpack.i.l.bf16 %v7902_v27 }
 0x444   : >> { %v7191_v4 = vpack.c.bf16 %v7884_v17, %v7883_v63  ;;  %v7899_v25 = vunpack.i.h.bf16 %v7897_v21  ;;  %v7898_v26 = vunpack.i.l.bf16 %v7897_v21  ;;  %v3689_v17 = vld [vmem:[#allocation2 + $0x50] sm:$0xff] (%p1341_p8) }
 0x445   : >> { %6745 = vmatmul.mubr.msk.f32.vlgmr.msra.gmra.mrb[0].mxu1 %vm1431_vm7, %v6008_v58  ;;  %v7207_v35 = vpack.c.bf16 %v7904_v30, %v7903_v31 }
 0x446   : >> { %7182 = vmatpush3.bf16.msra.mxu1 %v7179_v9  ;;  %6747 = vmatprep.mubr.msk.f32.mxu1 %vm1431_vm7, %v6009_v10  ;;  %v7203_v32 = vpack.c.bf16 %v7899_v25, %v7898_v26  ;;  %v3691_v10 = vld [vmem:[#allocation2 + $0x60] sm:$0xff] (%p1341_p8) }
 0x447   : >> { %7184 = vmatprep.subr.bf16.mxu1 %v7183_v59 }
 0x449   : >> { %6748 = vmatmul.mubr.msk.f32.gmra.mrb[2].mxu1 %vm1431_vm7, %v6010_v11 }
 0x44a   : >> { %7186 = vmatpush3.bf16.msra.mxu1 %v7183_v59  ;;  %6758 = vmatprep.mubr.msk.f32.mxu1 %vm1431_vm7, %v6011_v62 }
 0x44b   : >> { %7188 = vmatprep.subr.bf16.mxu1 %v7187_v0 }
 0x44d   : >> { %6759 = vmatmul.mubr.msk.f32.vlgmr.msra.gmra.mrb[0].mxu1 %vm1431_vm7, %v6012_v2  ;;  %v3650_v2 = vld [vmem:[#allocation8 + $0xec0] sm:$0xff] (%p1341_p8) }
 0x44e   : >> { %7190 = vmatpush3.bf16.msra.mxu1 %v7187_v0  ;;  %6761 = vmatprep.mubr.msk.f32.mxu1 %vm1431_vm7, %v6013_v3 }
 0x44f   : >> { %7192 = vmatprep.subr.bf16.mxu1 %v7191_v4  ;;  %6814 = vmatprep.mubr.msk.f32.mxu0 (%p1341_p8), %vm1431_vm7, %v3650_v2 }
 0x451   : >> { %6762 = vmatmul.mubr.msk.f32.gmra.mrb[2].mxu1 %vm1431_vm7, %v6014_v13  ;;  %v6072_v13 = vld [vmem:[%s9160_s3 + $0x1b0] sm:$0xff] (%p1341_p8) }
 0x452   : >> { %7194 = vmatpush3.bf16.msra.mxu1 %v7191_v4  ;;  %6772 = vmatprep.mubr.msk.f32.mxu1 %vm1431_vm7, %v6015_v16  ;;  %v6073_v16 = vld [vmem:[%s9160_s3 + $0x1b8] sm:$0xff] (%p1341_p8) }
 0x453   : >> { %7196 = vmatprep.subr.bf16.mxu1 %v7195_v20  ;;  %v3610_v40 = vpop.permute.xlu0 %3609 }
 0x454   : >> { %v3605_v41 = vpop.permute.xlu1 %3604 }
 0x455   : >> { %6773 = vmatmul.mubr.msk.f32.vlgmr.msra.gmra.mrb[0].mxu1 %vm1431_vm7, %v6016_v22 }
 0x456   : >> { %7198 = vmatpush3.bf16.msra.mxu1 %v7195_v20  ;;  %6775 = vmatprep.mubr.msk.f32.mxu1 %vm1431_vm7, %v6017_v23 }
 0x457   : >> { %7200 = vmatprep.subr.bf16.mxu1 %v7199_v24  ;;  %v3620_v47 = vpop.permute.xlu0 %3619 }
 0x458   : >> { %v3615_v51 = vpop.permute.xlu1 %3614 }
 0x459   : >> { %6776 = vmatmul.mubr.msk.f32.gmra.mrb[2].mxu1 %vm1431_vm7, %v6018_v28 }
 0x45a   : >> { %7202 = vmatpush3.bf16.msra.mxu1 %v7199_v24  ;;  %6786 = vmatprep.mubr.msk.f32.mxu1 %vm1431_vm7, %v6019_v29 }
 0x45b   : >> { %7204 = vmatprep.subr.bf16.mxu1 %v7203_v32 }
 0x45d   : >> { %6787 = vmatmul.mubr.msk.f32.vlgmr.msra.gmra.mrb[0].mxu1 %vm1431_vm7, %v6020_v33 }
 0x45e   : >> { %7206 = vmatpush3.bf16.msra.mxu1 %v7203_v32  ;;  %6789 = vmatprep.mubr.msk.f32.mxu1 %vm1431_vm7, %v6021_v34 }
 0x45f   : >> { %7208 = vmatprep.subr.bf16.mxu1 %v7207_v35 }
 0x461   : >> { %6790 = vmatmul.mubr.msk.f32.gmra.mrb[2].mxu1 %vm1431_vm7, %v6022_v36 }
 0x462   : >> { %7210 = vmatpush3.bf16.msra.mxu1 %v7207_v35  ;;  %6800 = vmatprep.mubr.msk.f32.mxu1 %vm1431_vm7, %v6023_v37 }
 0x465   : >> { %6801 = vmatmul.mubr.msk.f32.vlgmr.msra.gmra.mrb[0].mxu1 %vm1431_vm7, %v6024_v38 }
 0x466   : >> { %6803 = vmatprep.mubr.msk.f32.mxu1 %vm1431_vm7, %v6025_v39 }
 0x469   : >> { %6804 = vmatmul.mubr.msk.f32.gmra.mrb[2].mxu1 %vm1431_vm7, %v6026_v7 }
 0x538   : >> { %v6802_v42 = vpop.f32.mrb[0].mxu1 }
 0x539   : >> { %v3623_v43 = vadd.f32 %v6802_v42, %v3610_v40  ;;  %v3579_v44 = vpop.f32.mrb[1].mxu1 }
 0x53a   : >> { %v3622_v45 = vadd.f32 %v3605_v41, %v3579_v44 }
 0x53b   : >> { %v3627_v46 = vmax.f32 %v3623_v43, 0.0 }
 0x53c   : >> { %v3626_v48 = vmax.f32 %v3622_v45, 0.0  ;;  %v6805_v50 = vpop.f32.mrb[2].mxu1 }
 0x53d   : >> { %v3638_v52 = vmul.f32 %v8783_v49, %v3627_v46  ;;  %v3625_v53 = vadd.f32 %v6805_v50, %v3620_v47  ;;  %v3589_v54 = vpop.f32.mrb[3].mxu1 }
 0x53e   : >> { %v3637_v55 = vmul.f32 %v8783_v49, %v3626_v48  ;;  %v3624_v56 = vadd.f32 %v3615_v51, %v3589_v54 }
 0x53f   : >> { %3642 = vst.msk [vmem:[#allocation2 + $0x58] sm:$0xff] %vm1334_vm6, %v3638_v52  ;;  %v3629_v57 = vmax.f32 %v3625_v53, 0.0  ;;  %v3651_v53 = vld [vmem:[#allocation8 + $0xec8] sm:$0xff] (%p1341_p8) }
 0x540   : >> { %3641 = vst.msk [vmem:[#allocation2 + $0x48] sm:$0xff] %vm1334_vm6, %v3637_v55  ;;  %v3628_v9 = vmax.f32 %v3624_v56, 0.0 }
 0x541   : >> { %v3640_v14 = vmul.f32 %v8783_v49, %v3629_v57 }
 0x542   : >> { %v3639_v58 = vmul.f32 %v8783_v49, %v3628_v9  ;;  %v3693_v49 = vld [vmem:[#allocation2 + $0x70] sm:$0xff] (%p1341_p8) }
 0x543   : >> { %3644 = vst.msk [vmem:[#allocation2 + $0x78] sm:$0xff] %vm1334_vm6, %v3640_v14  ;;  %1343 = sbr.rel (!%p1341_p8) target bundleno = 503 (0x1f7), region = 105  ;;  %v3652_v9 = vld [vmem:[#allocation8 + $0xed0] sm:$0xff] (%p1341_p8) }
 0x544   : >> { %3643 = vst.msk [vmem:[#allocation2 + $0x68] sm:$0xff] %vm1334_vm6, %v3639_v58 }
 0x546   : > { %v3690_v63 = vld [vmem:[#allocation2 + $0x58] sm:$0xff] (%p1341_p8) }
 0x547   : > { %v3688_v5 = vld [vmem:[#allocation2 + $0x48] sm:$0xff] (%p1341_p8)  ;;  %v7910_v1 = vpack.i.bf16 (%p1341_p8), %v3690_v63, %v3689_v17 }
 0x548   : > { %v7905_v62 = vpack.i.bf16 (%p1341_p8), %v3688_v5, %v3687_v60  ;;  %v8945_v15 = vpack.c.bf16 (%p1341_p8), %v3690_v63, %v3688_v5  ;;  %v7985_v4 = vpack.i.bf16 (%p1341_p8), %v3690_v63, %v3688_v5  ;;  %v3646_v17 = vld [vmem:[#allocation8 + $0xea0] sm:$0xff] (%p1341_p8) }
 0x54a   : > { %v3694_v11 = vld [vmem:[#allocation2 + $0x78] sm:$0xff]  ;;  %7906 = vrot.lane.b32.xlu0 %v7905_v62, %s8322_s7 }
 0x54b   : > { %v3692_v59 = vld [vmem:[#allocation2 + $0x68] sm:$0xff]  ;;  %v7920_v0 = vpack.i.bf16 %v3694_v11, %v3693_v49 }
 0x54c   : > { %v7915_v61 = vpack.i.bf16 %v3692_v59, %v3691_v10  ;;  %v7990_v3 = vpack.i.bf16 %v3694_v11, %v3692_v59  ;;  %v8949_v6 = vpack.c.bf16 %v3694_v11, %v3692_v59 }
 0x54e   : > { %7916 = vrot.lane.b32.xlu1 %v7915_v61, %s8322_s7  ;;  %7911 = vrot.lane.b32.xlu0 %v7910_v1, %s8322_s7 }
 0x552   : > { %7921 = vrot.lane.b32.xlu1 %v7920_v0, %s8322_s7  ;;  %7926 = vrot.lane.b32.xlu0 %v7905_v62, %s8321_s29 }
 0x556   : > { %7931 = vrot.lane.b32.xlu1 %v7910_v1, %s8321_s29  ;;  %7936 = vrot.lane.b32.xlu0 %v7915_v61, %s8321_s29 }
 0x55a   : > { %7941 = vrot.lane.b32.xlu1 %v7920_v0, %s8321_s29  ;;  %7946 = vrot.lane.b32.xlu0 %v7905_v62, %s9194_s22 }
 0x55e   : > { %7951 = vrot.lane.b32.xlu1 %v7910_v1, %s9194_s22  ;;  %7956 = vrot.lane.b32.xlu0 %v7915_v61, %s9194_s22 }
 0x562   : > { %7961 = vrot.lane.b32.xlu1 %v7920_v0, %s9194_s22  ;;  %7966 = vrot.lane.b32.xlu0 %v7905_v62, %s9195_s5 }
 0x566   : > { %7971 = vrot.lane.b32.xlu1 %v7910_v1, %s9195_s5  ;;  %7976 = vrot.lane.b32.xlu0 %v7915_v61, %s9195_s5  ;;  %v3653_v61 = vld [vmem:[#allocation8 + $0xed8] sm:$0xff] }
 0x56a   : > { %7981 = vrot.lane.b32.xlu1 %v7920_v0, %s9195_s5  ;;  %7986 = vrot.lane.b32.xlu0 %v7985_v4, %s9196_s6 }
 0x56e   : > { %7991 = vrot.lane.b32.xlu1 %v7990_v3, %s9196_s6  ;;  %7996 = vrot.lane.b32.xlu0 %v7985_v4, %s9197_s8 }
 0x572   : > { %8001 = vrot.lane.b32.xlu1 %v7990_v3, %s9197_s8  ;;  %8006 = vrot.lane.b32.xlu0 %v7985_v4, %s9198_s11 }
 0x576   : > { %8011 = vrot.lane.b32.xlu1 %v7990_v3, %s9198_s11  ;;  %8016 = vrot.lane.b32.xlu0 %v7985_v4, %s9199_s10  ;;  %v3647_v4 = vld [vmem:[#allocation8 + $0xea8] sm:$0xff] }
 0x57a   : > { %8021 = vrot.lane.b32.xlu1 %v7990_v3, %s9199_s10  ;;  %4751 = vperm.xlu0 %8025, %v6070_v12  }
 0x57e   : > { %4756 = vperm.xlu1 %8026, %v6071_v8   ;;  %4766 = vperm.xlu0 %8025, %v6073_v16  }
 0x582   : > { %4761 = vperm.xlu1 %8026, %v6072_v13  }
 0x5bc   : > { %v7907_v19 = vpop.permute.xlu0 %7906 }
 0x5bd   : > { %v7909_v22 = vunpack.i.h.bf16 %v7907_v19  ;;  %v7908_v23 = vunpack.i.l.bf16 %v7907_v19 }
 0x5bf   : > { %v3719_v32 = vsel %vm325_vm3, %v7908_v23, %v7909_v22 }
 0x5c0   : > { %v7917_v18 = vpop.permute.xlu1 %7916  ;;  %v7912_v27 = vpop.permute.xlu0 %7911 }
 0x5c1   : > { %v7919_v20 = vunpack.i.h.bf16 %v7917_v18  ;;  %v7918_v21 = vunpack.i.l.bf16 %v7917_v18  ;;  %v7914_v28 = vunpack.i.h.bf16 %v7912_v27  ;;  %v7913_v29 = vunpack.i.l.bf16 %v7912_v27  ;;  %v3648_v18 = vld [vmem:[#allocation8 + $0xeb0] sm:$0xff] }
 0x5c3   : > { %v3721_v30 = vsel %vm325_vm3, %v7918_v21, %v7919_v20  ;;  %v3720_v33 = vsel %vm325_vm3, %v7913_v29, %v7914_v28  ;;  %v3654_v29 = vld [vmem:[#allocation8 + $0xee0] sm:$0xff] }
 0x5c4   : > { %v7922_v24 = vpop.permute.xlu1 %7921  ;;  %v7211_v35 = vpack.c.bf16 %v3720_v33, %v3719_v32  ;;  %v7927_v38 = vpop.permute.xlu0 %7926 }
 0x5c5   : > { %v7924_v25 = vunpack.i.h.bf16 %v7922_v24  ;;  %v7923_v26 = vunpack.i.l.bf16 %v7922_v24  ;;  %v7929_v39 = vunpack.i.h.bf16 %v7927_v38  ;;  %v7928_v7 = vunpack.i.l.bf16 %v7927_v38  ;;  %v3649_v24 = vld [vmem:[#allocation8 + $0xeb8] sm:$0xff] }
 0x5c6   : > { %7212 = vmatprep.subr.bf16.mxu0 %v7211_v35  ;;  %v3657_v38 = vld [vmem:[#allocation8 + $0xef8] sm:$0xff] }
 0x5c7   : > { %v3722_v31 = vsel %vm325_vm3, %v7923_v26, %v7924_v25  ;;  %7214 = vmatpush3.bf16.msra.mxu0 %v7211_v35  ;;  %v3841_v42 = vsel %vm436_vm2, %v7928_v7, %v7929_v39  ;;  %v3655_v35 = vld [vmem:[#allocation8 + $0xee8] sm:$0xff]  ;;  %v3658_v39 = vld [vmem:[#allocation8 + $0xf00] sm:$0xff] }
 0x5c8   : > { %v7932_v34 = vpop.permute.xlu1 %7931  ;;  %v7215_v41 = vpack.c.bf16 %v3722_v31, %v3721_v30  ;;  %v7937_v46 = vpop.permute.xlu0 %7936 }
 0x5c9   : > { %v7934_v36 = vunpack.i.h.bf16 %v7932_v34  ;;  %v7933_v37 = vunpack.i.l.bf16 %v7932_v34  ;;  %v7939_v48 = vunpack.i.h.bf16 %v7937_v46  ;;  %v7938_v50 = vunpack.i.l.bf16 %v7937_v46 }
 0x5ca   : > { %7216 = vmatprep.subr.bf16.mxu0 %v7215_v41 }
 0x5cb   : > { %v3842_v40 = vsel %vm436_vm2, %v7933_v37, %v7934_v36  ;;  %7218 = vmatpush3.bf16.msra.mxu0 %v7215_v41  ;;  %v3843_v52 = vsel %vm436_vm2, %v7938_v50, %v7939_v48  ;;  %v3656_v36 = vld [vmem:[#allocation8 + $0xef0] sm:$0xff]  ;;  %v3662_v50 = vld [vmem:[#allocation8 + $0xf20] sm:$0xff] }
 0x5cc   : > { %v7942_v43 = vpop.permute.xlu1 %7941  ;;  %v7219_v47 = vpack.c.bf16 %v3842_v40, %v3841_v42  ;;  %v7947_v57 = vpop.permute.xlu0 %7946  ;;  %v3659_v40 = vld [vmem:[#allocation8 + $0xf08] sm:$0xff] }
 0x5cd   : > { %v7944_v44 = vunpack.i.h.bf16 %v7942_v43  ;;  %v7943_v45 = vunpack.i.l.bf16 %v7942_v43  ;;  %v7949_v58 = vunpack.i.h.bf16 %v7947_v57  ;;  %v7948_v10 = vunpack.i.l.bf16 %v7947_v57  ;;  %v3660_v43 = vld [vmem:[#allocation8 + $0xf10] sm:$0xff]  ;;  %v3665_v57 = vld [vmem:[#allocation8 + $0xf38] sm:$0xff] }
 0x5ce   : > { %7220 = vmatprep.subr.bf16.mxu0 %v7219_v47  ;;  %6815 = vmatmul.mubr.msk.f32.vlgmr.msra.gmra.mrb[0].mxu0 %vm1431_vm7, %v3651_v53 }
 0x5cf   : > { %v3844_v51 = vsel %vm436_vm2, %v7943_v45, %v7944_v44  ;;  %7222 = vmatpush3.bf16.msra.mxu0 %v7219_v47  ;;  %v3962_v60 = vsel %vm546_vm4, %v7948_v10, %v7949_v58  ;;  %6817 = vmatprep.mubr.msk.f32.mxu0 %vm1431_vm7, %v3652_v9  ;;  %v3661_v45 = vld [vmem:[#allocation8 + $0xf18] sm:$0xff] }
 0x5d0   : > { %v7952_v54 = vpop.permute.xlu1 %7951  ;;  %v7223_v14 = vpack.c.bf16 %v3844_v51, %v3843_v52  ;;  %v7957_v62 = vpop.permute.xlu0 %7956  ;;  %v3663_v52 = vld [vmem:[#allocation8 + $0xf28] sm:$0xff] }
 0x5d1   : > { %v7954_v55 = vunpack.i.h.bf16 %v7952_v54  ;;  %v7953_v56 = vunpack.i.l.bf16 %v7952_v54  ;;  %v7959_v0 = vunpack.i.h.bf16 %v7957_v62  ;;  %v7958_v1 = vunpack.i.l.bf16 %v7957_v62  ;;  %v3669_v62 = vld [vmem:[#allocation8 + $0xf58] sm:$0xff] }
 0x5d2   : > { %7224 = vmatprep.subr.bf16.mxu0 %v7223_v14  ;;  %6818 = vmatmul.mubr.msk.f32.gmra.mrb[2].mxu0 %vm1431_vm7, %v3653_v61 }
 0x5d3   : > { %v3963_v59 = vsel %vm546_vm4, %v7953_v56, %v7954_v55  ;;  %7226 = vmatpush3.bf16.msra.mxu0 %v7223_v14  ;;  %v3964_v3 = vsel %vm546_vm4, %v7958_v1, %v7959_v0  ;;  %6828 = vmatprep.mubr.msk.f32.mxu0 %vm1431_vm7, %v3646_v17  ;;  %v3664_v55 = vld [vmem:[#allocation8 + $0xf30] sm:$0xff]  ;;  %v3670_v1 = vld [vmem:[#allocation8 + $0xf60] sm:$0xff] }
 0x5d4   : > { %v7962_v5 = vpop.permute.xlu1 %7961  ;;  %v7227_v63 = vpack.c.bf16 %v3963_v59, %v3962_v60  ;;  %v7967_v16 = vpop.permute.xlu0 %7966  ;;  %v3667_v59 = vld [vmem:[#allocation8 + $0xf48] sm:$0xff] }
 0x5d5   : > { %v7964_v49 = vunpack.i.h.bf16 %v7962_v5  ;;  %v7963_v11 = vunpack.i.l.bf16 %v7962_v5  ;;  %v7969_v20 = vunpack.i.h.bf16 %v7967_v16  ;;  %v7968_v21 = vunpack.i.l.bf16 %v7967_v16 }
 0x5d6   : > { %7228 = vmatprep.subr.bf16.mxu0 %v7227_v63  ;;  %6829 = vmatmul.mubr.msk.f32.vlgmr.msra.gmra.mrb[0].mxu0 %vm1431_vm7, %v3647_v4 }
 0x5d7   : > { %v3965_v2 = vsel %vm546_vm4, %v7963_v11, %v7964_v49  ;;  %7230 = vmatpush3.bf16.msra.mxu0 %v7227_v63  ;;  %v4087_v23 = vsel %vm660_vm5, %v7968_v21, %v7969_v20  ;;  %6831 = vmatprep.mubr.msk.f32.mxu0 %vm1431_vm7, %v3648_v18  ;;  %v3668_v49 = vld [vmem:[#allocation8 + $0xf50] sm:$0xff]  ;;  %v3673_v18 = vld [vmem:[#allocation8 + $0xf78] sm:$0xff] }
 0x5d8   : > { %v7972_v8 = vpop.permute.xlu1 %7971  ;;  %v7231_v19 = vpack.c.bf16 %v3965_v2, %v3964_v3  ;;  %v7977_v28 = vpop.permute.xlu0 %7976  ;;  %v3671_v3 = vld [vmem:[#allocation8 + $0xf68] sm:$0xff] }
 0x5d9   : > { %v7974_v12 = vunpack.i.h.bf16 %v7972_v8  ;;  %v7973_v13 = vunpack.i.l.bf16 %v7972_v8  ;;  %v7979_v31 = vunpack.i.h.bf16 %v7977_v28  ;;  %v7978_v32 = vunpack.i.l.bf16 %v7977_v28  ;;  %v3679_v28 = vld [vmem:[#allocation8 + $0xfa8] sm:$0xff] }
 0x5da   : > { %7232 = vmatprep.subr.bf16.mxu0 %v7231_v19  ;;  %6832 = vmatmul.mubr.msk.f32.gmra.mrb[2].mxu0 %vm1431_vm7, %v3649_v24 }
 0x5db   : > { %v4088_v22 = vsel %vm660_vm5, %v7973_v13, %v7974_v12  ;;  %7234 = vmatpush3.bf16.msra.mxu0 %v7231_v19  ;;  %v4089_v34 = vsel %vm660_vm5, %v7978_v32, %v7979_v31  ;;  %6842 = vmatprep.mubr.msk.f32.mxu0 %vm1431_vm7, %v3654_v29  ;;  %v3672_v13 = vld [vmem:[#allocation8 + $0xf70] sm:$0xff] }
 0x5dc   : > { %v7982_v25 = vpop.permute.xlu1 %7981  ;;  %v7235_v30 = vpack.c.bf16 %v4088_v22, %v4087_v23  ;;  %v7987_v7 = vpop.permute.xlu0 %7986  ;;  %v3674_v22 = vld [vmem:[#allocation8 + $0xf80] sm:$0xff]  ;;  %v3675_v23 = vld [vmem:[#allocation8 + $0xf88] sm:$0xff]  ;;  %v3680_v29 = vld [vmem:[#allocation8 + $0xfb0] sm:$0xff] }
 0x5dd   : > { %v7984_v26 = vunpack.i.h.bf16 %v7982_v25  ;;  %v7983_v27 = vunpack.i.l.bf16 %v7982_v25  ;;  %v7989_v41 = vunpack.i.h.bf16 %v7987_v7  ;;  %v7988_v42 = vunpack.i.l.bf16 %v7987_v7  ;;  %v3676_v25 = vld [vmem:[#allocation8 + $0xf90] sm:$0xff] }
 0x5de   : > { %7236 = vmatprep.subr.bf16.mxu0 %v7235_v30  ;;  %6843 = vmatmul.mubr.msk.f32.vlgmr.msra.gmra.mrb[0].mxu0 %vm1431_vm7, %v3655_v35 }
 0x5df   : > { %v4090_v33 = vsel %vm660_vm5, %v7983_v27, %v7984_v26  ;;  %7238 = vmatpush3.bf16.msra.mxu0 %v7235_v30  ;;  %6845 = vmatprep.mubr.msk.f32.mxu0 %vm1431_vm7, %v3656_v36  ;;  %v7251_v46 = vpack.c.bf16 %v7989_v41, %v7988_v42  ;;  %v3677_v26 = vld [vmem:[#allocation8 + $0xf98] sm:$0xff]  ;;  %v3678_v27 = vld [vmem:[#allocation8 + $0xfa0] sm:$0xff] }
 0x5e0   : > { %v7239_v37 = vpack.c.bf16 %v4090_v33, %v4089_v34  ;;  %v7992_v44 = vpop.permute.xlu1 %7991  ;;  %v7997_v51 = vpop.permute.xlu0 %7996  ;;  %v3681_v30 = vld [vmem:[#allocation8 + $0xfb8] sm:$0xff] }
 0x5e1   : > { %v7994_v47 = vunpack.i.h.bf16 %v7992_v44  ;;  %v7993_v48 = vunpack.i.l.bf16 %v7992_v44  ;;  %v7998_v54 = vunpack.i.l.bf16 %v7997_v51  ;;  %v6110_v36 = vld [vmem:[#allocation6] ss:$0 sm:$0xff] }
 0x5e2   : > { %7240 = vmatprep.subr.bf16.mxu0 %v7239_v37  ;;  %6846 = vmatmul.mubr.msk.f32.gmra.mrb[2].mxu0 %vm1431_vm7, %v3657_v38 }
 0x5e3   : > { %7242 = vmatpush3.bf16.msra.mxu0 %v7239_v37  ;;  %6856 = vmatprep.mubr.msk.f32.mxu0 %vm1431_vm7, %v3658_v39  ;;  %v7255_v53 = vpack.c.bf16 %v7994_v47, %v7993_v48 }
 0x5e4   : > { %7244 = vmatprep.subr.bf16.mxu0 %v8945_v15  ;;  %v8002_v56 = vpop.permute.xlu1 %8001  ;;  %v8007_v10 = vpop.permute.xlu0 %8006 }
 0x5e5   : > { %v8004_v14 = vunpack.i.h.bf16 %v8002_v56  ;;  %v8003_v58 = vunpack.i.l.bf16 %v8002_v56  ;;  %v8009_v61 = vunpack.i.h.bf16 %v8007_v10  ;;  %v8008_v5 = vunpack.i.l.bf16 %v8007_v10 }
 0x5e6   : > { %6857 = vmatmul.mubr.msk.f32.vlgmr.msra.gmra.mrb[0].mxu0 %vm1431_vm7, %v3659_v40 }
 0x5e7   : > { %7246 = vmatpush3.bf16.msra.mxu0 %v8945_v15  ;;  %6859 = vmatprep.mubr.msk.f32.mxu0 %vm1431_vm7, %v3660_v43  ;;  %v7999_v15 = vunpack.i.h.bf16 %v7997_v51  ;;  %v7263_v60 = vpack.c.bf16 %v8004_v14, %v8003_v58  ;;  %v7267_v17 = vpack.c.bf16 %v8009_v61, %v8008_v5  ;;  %v4795_v14 = vld [vmem:[#allocation8 + $0xfe0] sm:$0xff] }
 0x5e8   : > { %7248 = vmatprep.subr.bf16.mxu0 %v8949_v6  ;;  %v8012_v11 = vpop.permute.xlu1 %8011  ;;  %v8017_v2 = vpop.permute.xlu0 %8016  ;;  %6940 = vmatprep.mubr.msk.f32.mxu1 %vm1431_vm7, %v4795_v14 }
 0x5e9   : > { %v7259_v9 = vpack.c.bf16 %v7999_v15, %v7998_v54  ;;  %v8014_v63 = vunpack.i.h.bf16 %v8012_v11  ;;  %v8013_v0 = vunpack.i.l.bf16 %v8012_v11  ;;  %v8019_v8 = vunpack.i.h.bf16 %v8017_v2  ;;  %v6112_v11 = vld [vmem:[%s9160_s3 + $0x1c8] sm:$0xff] }
 0x5ea   : > { %6860 = vmatmul.mubr.msk.f32.gmra.mrb[2].mxu0 %vm1431_vm7, %v3661_v45  ;;  %v8018_v12 = vunpack.i.l.bf16 %v8017_v2 }
 0x5eb   : > { %7250 = vmatpush3.bf16.msra.mxu0 %v8949_v6  ;;  %6870 = vmatprep.mubr.msk.f32.mxu0 %vm1431_vm7, %v3662_v50  ;;  %v3666_v6 = vld [vmem:[#allocation8 + $0xf40] sm:$0xff]  ;;  %v7271_v4 = vpack.c.bf16 %v8014_v63, %v8013_v0 }
 0x5ec   : > { %7252 = vmatprep.subr.bf16.mxu0 %v7251_v46  ;;  %v8022_v16 = vpop.permute.xlu1 %8021  ;;  %v7275_v19 = vpack.c.bf16 %v8019_v8, %v8018_v12 }
 0x5ed   : > { %v8024_v20 = vunpack.i.h.bf16 %v8022_v16  ;;  %v8023_v21 = vunpack.i.l.bf16 %v8022_v16 }
 0x5ee   : > { %6871 = vmatmul.mubr.msk.f32.vlgmr.msra.gmra.mrb[0].mxu0 %vm1431_vm7, %v3663_v52  ;;  %v4816_v52 = vld [vmem:[#allocation2 + $0x10] sm:$0xff] }
 0x5ef   : > { %7254 = vmatpush3.bf16.msra.mxu0 %v7251_v46  ;;  %6873 = vmatprep.mubr.msk.f32.mxu0 %vm1431_vm7, %v3664_v55  ;;  %v7279_v24 = vpack.c.bf16 %v8024_v20, %v8023_v21 }
 0x5f0   : > { %7256 = vmatprep.subr.bf16.mxu0 %v7255_v53 }
 0x5f2   : > { %6874 = vmatmul.mubr.msk.f32.gmra.mrb[2].mxu0 %vm1431_vm7, %v3665_v57  ;;  %v4820_v57 = vld [vmem:[#allocation2 + $0x30] sm:$0xff] }
 0x5f3   : > { %7258 = vmatpush3.bf16.msra.mxu0 %v7255_v53  ;;  %6884 = vmatprep.mubr.msk.f32.mxu0 %vm1431_vm7, %v3666_v6  ;;  %v4814_v53 = vld [vmem:[#allocation2] sm:$0xff] }
 0x5f4   : > { %7260 = vmatprep.subr.bf16.mxu0 %v7259_v9 }
 0x5f6   : > { %6885 = vmatmul.mubr.msk.f32.vlgmr.msra.gmra.mrb[0].mxu0 %vm1431_vm7, %v3667_v59 }
 0x5f7   : > { %7262 = vmatpush3.bf16.msra.mxu0 %v7259_v9  ;;  %6887 = vmatprep.mubr.msk.f32.mxu0 %vm1431_vm7, %v3668_v49  ;;  %v4818_v9 = vld [vmem:[#allocation2 + $0x20] sm:$0xff] }
 0x5f8   : > { %7264 = vmatprep.subr.bf16.mxu0 %v7263_v60 }
 0x5f9   : > { %v4752_v31 = vpop.permute.xlu0 %4751 }
 0x5fa   : > { %6888 = vmatmul.mubr.msk.f32.gmra.mrb[2].mxu0 %vm1431_vm7, %v3669_v62  ;;  %v6111_v62 = vld [vmem:[%s9160_s3 + $0x1c0] sm:$0xff] }
 0x5fb   : > { %7266 = vmatpush3.bf16.msra.mxu0 %v7263_v60  ;;  %6898 = vmatprep.mubr.msk.f32.mxu0 %vm1431_vm7, %v3670_v1 }
 0x5fc   : > { %7268 = vmatprep.subr.bf16.mxu0 %v7267_v17 }
 0x5fd   : > { %v4757_v32 = vpop.permute.xlu1 %4756  ;;  %v4767_v39 = vpop.permute.xlu0 %4766 }
 0x5fe   : > { %6899 = vmatmul.mubr.msk.f32.vlgmr.msra.gmra.mrb[0].mxu0 %vm1431_vm7, %v3671_v3 }
 0x5ff   : > { %7270 = vmatpush3.bf16.msra.mxu0 %v7267_v17  ;;  %6901 = vmatprep.mubr.msk.f32.mxu0 %vm1431_vm7, %v3672_v13 }
 0x600   : > { %7272 = vmatprep.subr.bf16.mxu0 %v7271_v4 }
 0x601   : > { %v4762_v42 = vpop.permute.xlu1 %4761 }
 0x602   : > { %6902 = vmatmul.mubr.msk.f32.gmra.mrb[2].mxu0 %vm1431_vm7, %v3673_v18 }
 0x603   : > { %7274 = vmatpush3.bf16.msra.mxu0 %v7271_v4  ;;  %6912 = vmatprep.mubr.msk.f32.mxu0 %vm1431_vm7, %v3674_v22 }
 0x604   : > { %7276 = vmatprep.subr.bf16.mxu0 %v7275_v19 }
 0x606   : > { %6913 = vmatmul.mubr.msk.f32.vlgmr.msra.gmra.mrb[0].mxu0 %vm1431_vm7, %v3675_v23 }
 0x607   : > { %7278 = vmatpush3.bf16.msra.mxu0 %v7275_v19  ;;  %6915 = vmatprep.mubr.msk.f32.mxu0 %vm1431_vm7, %v3676_v25 }
 0x608   : > { %7280 = vmatprep.subr.bf16.mxu0 %v7279_v24 }
 0x60a   : > { %6916 = vmatmul.mubr.msk.f32.gmra.mrb[2].mxu0 %vm1431_vm7, %v3677_v26 }
 0x60b   : > { %7282 = vmatpush3.bf16.msra.mxu0 %v7279_v24  ;;  %6926 = vmatprep.mubr.msk.f32.mxu0 %vm1431_vm7, %v3678_v27 }
 0x60e   : > { %6927 = vmatmul.mubr.msk.f32.vlgmr.msra.gmra.mrb[0].mxu0 %vm1431_vm7, %v3679_v28 }
 0x60f   : > { %6929 = vmatprep.mubr.msk.f32.mxu0 %vm1431_vm7, %v3680_v29 }
 0x612   : > { %6930 = vmatmul.mubr.msk.f32.gmra.mrb[2].mxu0 %vm1431_vm7, %v3681_v30 }
 0x6e1   : > { %v6928_v33 = vpop.f32.mrb[0].mxu0 }
 0x6e2   : > { %v4770_v34 = vadd.f32 %v6928_v33, %v4757_v32  ;;  %v4726_v35 = vpop.f32.mrb[1].mxu0 }
 0x6e3   : > { %v4769_v37 = vadd.f32 %v4752_v31, %v4726_v35 }
 0x6e4   : > { %v4774_v38 = vmax.f32 %v4770_v34, 0.0  ;;  %v4796_v34 = vld [vmem:[#allocation8 + $0xfe8] sm:$0xff] }
 0x6e5   : > { %v4773_v7 = vmax.f32 %v4769_v37, 0.0  ;;  %v6931_v40 = vpop.f32.mrb[2].mxu0 }
 0x6e6   : > { %v4785_v41 = vmul.f32 %v6110_v36, %v4774_v38  ;;  %v4772_v43 = vadd.f32 %v6931_v40, %v4767_v39  ;;  %v4736_v44 = vpop.f32.mrb[3].mxu0  ;;  %v4793_v39 = vld [vmem:[#allocation8 + $0xfc0] sm:$0xff] }
 0x6e7   : > { %v4784_v45 = vmul.f32 %v6110_v36, %v4773_v7  ;;  %v4771_v46 = vadd.f32 %v4762_v42, %v4736_v44 }
 0x6e8   : > { %4789 = vst.msk [vmem:[#allocation2 + $0x18] sm:$0xff] %vm1334_vm6, %v4785_v41  ;;  %v4776_v47 = vmax.f32 %v4772_v43, 0.0 }
 0x6e9   : > { %4788 = vst.msk [vmem:[#allocation2 + $0x8] sm:$0xff] %vm1334_vm6, %v4784_v45  ;;  %v4775_v48 = vmax.f32 %v4771_v46, 0.0 }
 0x6ea   : > { %v4787_v50 = vmul.f32 %v6110_v36, %v4776_v47 }
 0x6eb   : > { %v4786_v51 = vmul.f32 %v6110_v36, %v4775_v48 }
 0x6ec   : > { %4791 = vst.msk [vmem:[#allocation2 + $0x38] sm:$0xff] %vm1334_vm6, %v4787_v50 }
 0x6ed   : > { %4790 = vst.msk [vmem:[#allocation2 + $0x28] sm:$0xff] %vm1334_vm6, %v4786_v51 }
 0x6ef   : > { %v4817_v15 = vld [vmem:[#allocation2 + $0x18] sm:$0xff] }
 0x6f0   : > { %v8027_v54 = vpack.i.bf16 %v4817_v15, %v4816_v52  ;;  %v4815_v55 = vld [vmem:[#allocation2 + $0x8] sm:$0xff] }
 0x6f1   : > { %v8032_v56 = vpack.i.bf16 %v4815_v55, %v4814_v53  ;;  %v9033_v6 = vpack.c.bf16 %v4817_v15, %v4815_v55  ;;  %v8107_v49 = vpack.i.bf16 %v4817_v15, %v4815_v55  ;;  %v4794_v15 = vld [vmem:[#allocation8 + $0xfc8] sm:$0xff] }
 0x6f2   : > { %8028 = vrot.lane.b32.xlu0 %v8027_v54, %s8322_s7 }
 0x6f3   : > { %8033 = vrot.lane.b32.xlu1 %v8032_v56, %s8322_s7  ;;  %v4821_v58 = vld [vmem:[#allocation2 + $0x38] sm:$0xff] }
 0x6f4   : > { %v8037_v10 = vpack.i.bf16 %v4821_v58, %v4820_v57  ;;  %v4819_v59 = vld [vmem:[#allocation2 + $0x28] sm:$0xff] }
 0x6f5   : > { %v8042_v60 = vpack.i.bf16 %v4819_v59, %v4818_v9  ;;  %v9037_v61 = vpack.c.bf16 %v4821_v58, %v4819_v59  ;;  %v8112_v5 = vpack.i.bf16 %v4821_v58, %v4819_v59  ;;  %v4797_v9 = vld [vmem:[#allocation8 + $0x1000] sm:$0xff] }
 0x6f6   : > { %8038 = vrot.lane.b32.xlu0 %v8037_v10, %s8322_s7 }
 0x6f7   : > { %8043 = vrot.lane.b32.xlu1 %v8042_v60, %s8322_s7 }
 0x6fa   : > { %8053 = vrot.lane.b32.xlu0 %v8027_v54, %s8321_s29 }
 0x6fb   : > { %8048 = vrot.lane.b32.xlu1 %v8032_v56, %s8321_s29 }
 0x6fe   : > { %8058 = vrot.lane.b32.xlu0 %v8037_v10, %s8321_s29 }
 0x6ff   : > { %8063 = vrot.lane.b32.xlu1 %v8042_v60, %s8321_s29 }
 0x702   : > { %8073 = vrot.lane.b32.xlu0 %v8027_v54, %s9194_s22 }
 0x703   : > { %8068 = vrot.lane.b32.xlu1 %v8032_v56, %s9194_s22 }
 0x706   : > { %8078 = vrot.lane.b32.xlu0 %v8037_v10, %s9194_s22 }
 0x707   : > { %8083 = vrot.lane.b32.xlu1 %v8042_v60, %s9194_s22 }
 0x70a   : > { %8093 = vrot.lane.b32.xlu0 %v8027_v54, %s9195_s5 }
 0x70b   : > { %8088 = vrot.lane.b32.xlu1 %v8032_v56, %s9195_s5 }
 0x70e   : > { %8103 = vrot.lane.b32.xlu0 %v8037_v10, %s9195_s5 }
 0x70f   : > { %8098 = vrot.lane.b32.xlu1 %v8042_v60, %s9195_s5 }
 0x712   : > { %8113 = vrot.lane.b32.xlu0 %v8112_v5, %s9196_s6 }
 0x713   : > { %8108 = vrot.lane.b32.xlu1 %v8107_v49, %s9196_s6  ;;  %s6139_s6 = sshll.u32 %s8388_s19, 8  ;;  %s5732_s19 = scalar_lea.sflag [#allocation5], %s8536_s23 }
 0x714   : > { %s9107_s13 = scalar_lea.hbm %s9161_s4, %s6139_s6 }
 0x716   : > { %8123 = vrot.lane.b32.xlu0 %v8112_v5, %s9197_s8 }
 0x717   : > { %8118 = vrot.lane.b32.xlu1 %v8107_v49, %s9197_s8  ;;  %s5745_s8 = sshll.u32 %s8631_s12, 4  ;;  %s9109_s8 = int_to_ptr.vmem [resolvable:$true] %s5745_s8 }
 0x718   : > { %s8233_s26 = scalar_lea.vmem %s9109_s8, 256  ;;  %p8240_p0 = scmp.lt.s32.totalorder %s9109_s8, %s8238_s20 }
 0x719   : > { %p8234_p4 = scmp.ne.s32.totalorder %s9109_s8, %s8233_s26  ;;  %p8241_p9 = scmp.lt.s32.totalorder %s8239_s9, %s8233_s26 }
 0x71a   : > { %8133 = vrot.lane.b32.xlu0 %v8112_v5, %s9198_s11 }
 0x71b   : > { %8128 = vrot.lane.b32.xlu1 %v8107_v49, %s9198_s11  ;;  %p8235_p10 = pnand %p8234_p4, %p9200_p5  ;;  %p8242_p6 = por %p8241_p9, %p8240_p0 }
 0x71d   : > { %p8236_p2 = pneg %p8235_p10 }
 0x71e   : > { %8143 = vrot.lane.b32.xlu0 %v8112_v5, %s9199_s10 }
 0x71f   : > { %8138 = vrot.lane.b32.xlu1 %v8107_v49, %s9199_s10  ;;  %p8243_p12 = pnand %p8242_p6, %p8236_p2 }
 0x722   : > { %5724 = vperm.xlu0 %8025, %v6112_v11  }
 0x723   : > { %5719 = vperm.xlu1 %8026, %v6111_v62  }
 0x764   : > { %v8029_v17 = vpop.permute.xlu0 %8028 }
 0x765   : > { %v8031_v63 = vunpack.i.h.bf16 %v8029_v17  ;;  %v8030_v0 = vunpack.i.l.bf16 %v8029_v17  ;;  %v8034_v1 = vpop.permute.xlu1 %8033 }
 0x766   : > { %v8036_v2 = vunpack.i.h.bf16 %v8034_v1  ;;  %v8035_v3 = vunpack.i.l.bf16 %v8034_v1 }
 0x767   : > { %v4847_v4 = vsel %vm325_vm3, %v8030_v0, %v8031_v63 }
 0x768   : > { %v8039_v8 = vpop.permute.xlu0 %8038  ;;  %v4846_v12 = vsel %vm325_vm3, %v8035_v3, %v8036_v2  ;;  %v4798_v3 = vld [vmem:[#allocation8 + $0x1008] sm:$0xff] }
 0x769   : > { %v8041_v13 = vunpack.i.h.bf16 %v8039_v8  ;;  %v8040_v16 = vunpack.i.l.bf16 %v8039_v8  ;;  %v8044_v18 = vpop.permute.xlu1 %8043  ;;  %v7283_v19 = vpack.c.bf16 %v4847_v4, %v4846_v12 }
 0x76a   : > { %v8046_v20 = vunpack.i.h.bf16 %v8044_v18  ;;  %v8045_v21 = vunpack.i.l.bf16 %v8044_v18 }
 0x76b   : > { %v4849_v22 = vsel %vm325_vm3, %v8040_v16, %v8041_v13  ;;  %7284 = vmatprep.subr.bf16.mxu1 %v7283_v19  ;;  %v4799_v16 = vld [vmem:[#allocation8 + $0x1020] sm:$0xff] }
 0x76c   : > { %v4848_v23 = vsel %vm325_vm3, %v8045_v21, %v8046_v20  ;;  %7286 = vmatpush3.bf16.msra.mxu1 %v7283_v19  ;;  %v8054_v24 = vpop.permute.xlu0 %8053 }
 0x76d   : > { %v8056_v25 = vunpack.i.h.bf16 %v8054_v24  ;;  %v8055_v26 = vunpack.i.l.bf16 %v8054_v24  ;;  %v8049_v27 = vpop.permute.xlu1 %8048  ;;  %v7287_v28 = vpack.c.bf16 %v4849_v22, %v4848_v23  ;;  %v4800_v24 = vld [vmem:[#allocation8 + $0x1028] sm:$0xff] }
 0x76e   : > { %v8051_v29 = vunpack.i.h.bf16 %v8049_v27  ;;  %v8050_v30 = vunpack.i.l.bf16 %v8049_v27 }
 0x76f   : > { %v4952_v31 = vsel %vm436_vm2, %v8055_v26, %v8056_v25  ;;  %7288 = vmatprep.subr.bf16.mxu1 %v7287_v28  ;;  %v4801_v25 = vld [vmem:[#allocation8 + $0x1040] sm:$0xff] }
 0x770   : > { %v4951_v32 = vsel %vm436_vm2, %v8050_v30, %v8051_v29  ;;  %v8059_v33 = vpop.permute.xlu0 %8058  ;;  %7290 = vmatpush3.bf16.msra.mxu1 %v7287_v28 }
 0x771   : > { %v8061_v35 = vunpack.i.h.bf16 %v8059_v33  ;;  %v8060_v36 = vunpack.i.l.bf16 %v8059_v33  ;;  %v8064_v37 = vpop.permute.xlu1 %8063  ;;  %v7291_v38 = vpack.c.bf16 %v4952_v31, %v4951_v32  ;;  %v4802_v33 = vld [vmem:[#allocation8 + $0x1048] sm:$0xff] }
 0x772   : > { %v8066_v7 = vunpack.i.h.bf16 %v8064_v37  ;;  %v8065_v40 = vunpack.i.l.bf16 %v8064_v37 }
 0x773   : > { %v4954_v41 = vsel %vm436_vm2, %v8060_v36, %v8061_v35  ;;  %6941 = vmatmul.mubr.msk.f32.vlgmr.msra.gmra.mrb[0].mxu1 %vm1431_vm7, %v4796_v34  ;;  %7292 = vmatprep.subr.bf16.mxu1 %v7291_v38  ;;  %v4803_v34 = vld [vmem:[#allocation8 + $0x1060] sm:$0xff] }
 0x774   : > { %v4953_v42 = vsel %vm436_vm2, %v8065_v40, %v8066_v7  ;;  %v8074_v43 = vpop.permute.xlu0 %8073  ;;  %7294 = vmatpush3.bf16.msra.mxu1 %v7291_v38  ;;  %6951 = vmatprep.mubr.msk.f32.mxu1 %vm1431_vm7, %v4793_v39 }
 0x775   : > { %v8076_v44 = vunpack.i.h.bf16 %v8074_v43  ;;  %v8075_v45 = vunpack.i.l.bf16 %v8074_v43  ;;  %v8069_v46 = vpop.permute.xlu1 %8068  ;;  %v7295_v47 = vpack.c.bf16 %v4954_v41, %v4953_v42  ;;  %v4804_v41 = vld [vmem:[#allocation8 + $0x1068] sm:$0xff] }
 0x776   : > { %v8071_v48 = vunpack.i.h.bf16 %v8069_v46  ;;  %v8070_v50 = vunpack.i.l.bf16 %v8069_v46 }
 0x777   : > { %v5057_v51 = vsel %vm546_vm4, %v8075_v45, %v8076_v44  ;;  %7296 = vmatprep.subr.bf16.mxu1 %v7295_v47 }
 0x778   : > { %v5056_v52 = vsel %vm546_vm4, %v8070_v50, %v8071_v48  ;;  %v8079_v53 = vpop.permute.xlu0 %8078  ;;  %7298 = vmatpush3.bf16.msra.mxu1 %v7295_v47 }
 0x779   : > { %v8081_v54 = vunpack.i.h.bf16 %v8079_v53  ;;  %v8080_v55 = vunpack.i.l.bf16 %v8079_v53  ;;  %v8084_v56 = vpop.permute.xlu1 %8083  ;;  %v7299_v57 = vpack.c.bf16 %v5057_v51, %v5056_v52  ;;  %v4806_v51 = vld [vmem:[#allocation8 + $0x1088] sm:$0xff]  ;;  %v4807_v52 = vld [vmem:[#allocation8 + $0x10a0] sm:$0xff] }
 0x77a   : > { %v8086_v14 = vunpack.i.h.bf16 %v8084_v56  ;;  %v8085_v58 = vunpack.i.l.bf16 %v8084_v56 }
 0x77b   : > { %v5059_v10 = vsel %vm546_vm4, %v8080_v55, %v8081_v54  ;;  %6952 = vmatmul.mubr.msk.f32.vlgmr.msra.gmra.mrb[0].mxu1 %vm1431_vm7, %v4794_v15  ;;  %7300 = vmatprep.subr.bf16.mxu1 %v7299_v57 }
 0x77c   : > { %v5058_v59 = vsel %vm546_vm4, %v8085_v58, %v8086_v14  ;;  %v8094_v60 = vpop.permute.xlu0 %8093  ;;  %7302 = vmatpush3.bf16.msra.mxu1 %v7299_v57  ;;  %6962 = vmatprep.mubr.msk.f32.mxu1 %vm1431_vm7, %v4797_v9  ;;  %v4808_v14 = vld [vmem:[#allocation8 + $0x10a8] sm:$0xff]  ;;  %v4809_v58 = vld [vmem:[#allocation8 + $0x10c0] sm:$0xff] }
 0x77d   : > { %v8096_v5 = vunpack.i.h.bf16 %v8094_v60  ;;  %v8095_v49 = vunpack.i.l.bf16 %v8094_v60  ;;  %v8089_v11 = vpop.permute.xlu1 %8088  ;;  %v7303_v62 = vpack.c.bf16 %v5059_v10, %v5058_v59  ;;  %v4810_v59 = vld [vmem:[#allocation8 + $0x10c8] sm:$0xff] }
 0x77e   : > { %v8091_v17 = vunpack.i.h.bf16 %v8089_v11  ;;  %v8090_v63 = vunpack.i.l.bf16 %v8089_v11 }
 0x77f   : > { %v5164_v0 = vsel %vm660_vm5, %v8095_v49, %v8096_v5  ;;  %7304 = vmatprep.subr.bf16.mxu1 %v7303_v62 }
 0x780   : > { %v5163_v1 = vsel %vm660_vm5, %v8090_v63, %v8091_v17  ;;  %v8104_v2 = vpop.permute.xlu0 %8103  ;;  %7306 = vmatpush3.bf16.msra.mxu1 %v7303_v62 }
 0x781   : > { %v8106_v4 = vunpack.i.h.bf16 %v8104_v2  ;;  %v8105_v8 = vunpack.i.l.bf16 %v8104_v2  ;;  %v8099_v12 = vpop.permute.xlu1 %8098  ;;  %v7307_v13 = vpack.c.bf16 %v5164_v0, %v5163_v1 }
 0x782   : > { %v8101_v18 = vunpack.i.h.bf16 %v8099_v12  ;;  %v8100_v19 = vunpack.i.l.bf16 %v8099_v12 }
 0x783   : > { %v5166_v20 = vsel %vm660_vm5, %v8105_v8, %v8106_v4  ;;  %6963 = vmatmul.mubr.msk.f32.vlgmr.msra.gmra.mrb[0].mxu1 %vm1431_vm7, %v4798_v3  ;;  %7308 = vmatprep.subr.bf16.mxu1 %v7307_v13 }
 0x784   : > { %v5165_v21 = vsel %vm660_vm5, %v8100_v19, %v8101_v18  ;;  %7310 = vmatpush3.bf16.msra.mxu1 %v7307_v13  ;;  %6973 = vmatprep.mubr.msk.f32.mxu1 %vm1431_vm7, %v4799_v16  ;;  %v8114_v28 = vpop.permute.xlu0 %8113 }
 0x785   : > { %v7311_v22 = vpack.c.bf16 %v5166_v20, %v5165_v21  ;;  %v8109_v23 = vpop.permute.xlu1 %8108  ;;  %v8116_v29 = vunpack.i.h.bf16 %v8114_v28  ;;  %v8115_v30 = vunpack.i.l.bf16 %v8114_v28 }
 0x786   : > { %v8111_v26 = vunpack.i.h.bf16 %v8109_v23  ;;  %v8110_v27 = vunpack.i.l.bf16 %v8109_v23 }
 0x787   : > { %7312 = vmatprep.subr.bf16.mxu1 %v7311_v22  ;;  %v7327_v35 = vpack.c.bf16 %v8116_v29, %v8115_v30 }
 0x788   : > { %7314 = vmatpush3.bf16.msra.mxu1 %v7311_v22  ;;  %v7323_v31 = vpack.c.bf16 %v8111_v26, %v8110_v27  ;;  %v8124_v38 = vpop.permute.xlu0 %8123 }
 0x789   : > { %7316 = vmatprep.subr.bf16.mxu1 %v9033_v6  ;;  %v8119_v32 = vpop.permute.xlu1 %8118  ;;  %v8125_v39 = vunpack.i.l.bf16 %v8124_v38 }
 0x78a   : > { %v8121_v36 = vunpack.i.h.bf16 %v8119_v32  ;;  %v8120_v37 = vunpack.i.l.bf16 %v8119_v32 }
 0x78b   : > { %6974 = vmatmul.mubr.msk.f32.vlgmr.msra.gmra.mrb[0].mxu1 %vm1431_vm7, %v4800_v24 }
 0x78c   : > { %7318 = vmatpush3.bf16.msra.mxu1 %v9033_v6  ;;  %6984 = vmatprep.mubr.msk.f32.mxu1 %vm1431_vm7, %v4801_v25  ;;  %v8126_v6 = vunpack.i.h.bf16 %v8124_v38  ;;  %v7331_v7 = vpack.c.bf16 %v8121_v36, %v8120_v37  ;;  %v8134_v45 = vpop.permute.xlu0 %8133 }
 0x78d   : > { %7320 = vmatprep.subr.bf16.mxu1 %v9037_v61  ;;  %v8129_v40 = vpop.permute.xlu1 %8128  ;;  %v8136_v46 = vunpack.i.h.bf16 %v8134_v45  ;;  %v8135_v47 = vunpack.i.l.bf16 %v8134_v45 }
 0x78e   : > { %v7335_v42 = vpack.c.bf16 %v8126_v6, %v8125_v39  ;;  %v8131_v43 = vunpack.i.h.bf16 %v8129_v40  ;;  %v8130_v44 = vunpack.i.l.bf16 %v8129_v40 }
 0x78f   : > { %v7343_v53 = vpack.c.bf16 %v8136_v46, %v8135_v47 }
 0x790   : > { %7322 = vmatpush3.bf16.msra.mxu1 %v9037_v61  ;;  %v4805_v61 = vld [vmem:[#allocation8 + $0x1080] sm:$0xff]  ;;  %v7339_v48 = vpack.c.bf16 %v8131_v43, %v8130_v44  ;;  %v8144_v55 = vpop.permute.xlu0 %8143 }
 0x791   : > { %7324 = vmatprep.subr.bf16.mxu1 %v7323_v31  ;;  %v8139_v50 = vpop.permute.xlu1 %8138  ;;  %v8146_v56 = vunpack.i.h.bf16 %v8144_v55  ;;  %v8145_v57 = vunpack.i.l.bf16 %v8144_v55 }
 0x792   : > { %v8141_v15 = vunpack.i.h.bf16 %v8139_v50  ;;  %v8140_v54 = vunpack.i.l.bf16 %v8139_v50 }
 0x793   : > { %6985 = vmatmul.mubr.msk.f32.vlgmr.msra.gmra.mrb[0].mxu1 %vm1431_vm7, %v4802_v33  ;;  %v7351_v10 = vpack.c.bf16 %v8146_v56, %v8145_v57 }
 0x794   : > { %7326 = vmatpush3.bf16.msra.mxu1 %v7323_v31  ;;  %6995 = vmatprep.mubr.msk.f32.mxu1 %vm1431_vm7, %v4803_v34  ;;  %v7347_v9 = vpack.c.bf16 %v8141_v15, %v8140_v54 }
 0x795   : > { %7328 = vmatprep.subr.bf16.mxu1 %v7327_v35 }
 0x798   : > { %7330 = vmatpush3.bf16.msra.mxu1 %v7327_v35 }
 0x799   : > { %7332 = vmatprep.subr.bf16.mxu1 %v7331_v7 }
 0x79b   : > { %6996 = vmatmul.mubr.msk.f32.vlgmr.msra.gmra.mrb[0].mxu1 %vm1431_vm7, %v4804_v41 }
 0x79c   : > { %7334 = vmatpush3.bf16.msra.mxu1 %v7331_v7  ;;  %7006 = vmatprep.mubr.msk.f32.mxu1 %vm1431_vm7, %v4805_v61 }
 0x79d   : > { %7336 = vmatprep.subr.bf16.mxu1 %v7335_v42 }
 0x7a0   : > { %7338 = vmatpush3.bf16.msra.mxu1 %v7335_v42 }
 0x7a1   : > { %7340 = vmatprep.subr.bf16.mxu1 %v7339_v48  ;;  %v5725_v60 = vpop.permute.xlu0 %5724 }
 0x7a2   : > { %v5720_v49 = vpop.permute.xlu1 %5719 }
 0x7a3   : > { %7007 = vmatmul.mubr.msk.f32.vlgmr.msra.gmra.mrb[0].mxu1 %vm1431_vm7, %v4806_v51 }
 0x7a4   : > { %7342 = vmatpush3.bf16.msra.mxu1 %v7339_v48  ;;  %7017 = vmatprep.mubr.msk.f32.mxu1 %vm1431_vm7, %v4807_v52 }
 0x7a5   : > { %7344 = vmatprep.subr.bf16.mxu1 %v7343_v53 }
 0x7a8   : > { %7346 = vmatpush3.bf16.msra.mxu1 %v7343_v53 }
 0x7a9   : > { %7348 = vmatprep.subr.bf16.mxu1 %v7347_v9 }
 0x7ab   : > { %7018 = vmatmul.mubr.msk.f32.vlgmr.msra.gmra.mrb[0].mxu1 %vm1431_vm7, %v4808_v14 }
 0x7ac   : > { %7350 = vmatpush3.bf16.msra.mxu1 %v7347_v9  ;;  %7028 = vmatprep.mubr.msk.f32.mxu1 %vm1431_vm7, %v4809_v58 }
 0x7ad   : > { %7352 = vmatprep.subr.bf16.mxu1 %v7351_v10 }
 0x7b0   : > { %7354 = vmatpush3.bf16.msra.mxu1 %v7351_v10 }
 0x7b3   : > { %7029 = vmatmul.mubr.msk.f32.vlgmr.msra.gmra.mrb[0].mxu1 %vm1431_vm7, %v4810_v59 }
 0x886   : > { %v7030_v5 = vpop.f32.mrb[0].mxu1 }
 0x887   : > { %v5728_v11 = vadd.f32 %v7030_v5, %v5725_v60  ;;  %v5706_v62 = vpop.f32.mrb[1].mxu1 }
 0x888   : > { %v5727_v17 = vadd.f32 %v5720_v49, %v5706_v62 }
 0x889   : > { %5730 = vst.msk [vmem:[%s8631_s12 + $0x8] sm:$0xff] %vm1334_vm6, %v5728_v11 }
 0x88a   : > { %5729 = vst.msk [vmem:[%s8631_s12] sm:$0xff] %vm1334_vm6, %v5727_v17 }
 0x88b   : > { %8246 = shalt.err (!%p8243_p12)
}
 0x88c   : > { %s8247_s12 = scalar_lea.hbm %s9107_s13, 256  ;;  %s8251_s14 = scalar_lea.hbm %s9161_s4, 512 }
 0x88d   : > { %p8248_p13 = scmp.ne.s32.totalorder %s9107_s13, %s8247_s12  ;;  %p8252_p3 = scmp.lt.u32.totalorder %s9107_s13, %s9161_s4 }
 0x88e   : > { %p8253_p7 = scmp.lt.u32.totalorder %s8251_s14, %s8247_s12  ;;  %p8255_p4 = scmp.lt.u32.totalorder %s8247_s12, %s9107_s13 }
 0x88f   : > { %p8249_p1 = pnand %p8248_p13, %p9200_p5 }
 0x890   : > { %p8254_p8 = por %p8253_p7, %p8252_p3 }
 0x891   : > { %p8250_p11 = pneg %p8249_p1 }
 0x892   : > { %p8256_p10 = por %p8255_p4, %p8254_p8 }
 0x894   : > { %p8257_p2 = pnand %p8256_p10, %p8250_p11 }
 0x896   : > { %8260 = shalt.err (!%p8257_p2)
}
 0x897   : > { %s8340_s22 = smov 128   ;;  %s8341_s5 = smov 8  }
 0x898   : > { %7511 = dma.vmem_to_hbm [thread:$0]  (%p9200_p5), %s9109_s8, 256, %s9107_s13, %s5732_s19, %s8340_s22, %s8340_s22, %s8341_s5  }
 0x899 PF: > { %s5760_s6 = sand.u32 1, %s8295_s15   ;;  %p9201_p0 = scmp.ne.s32.totalorder %s9183_s28, 0 }
 0x89a   : > { %p9202_p9 = scmp.ge.s32.totalorder %s8307_s18, 2  ;;  %s5761_s11 = scalar_lea.sflag [#allocation5], %s5760_s6 }
 0x89c   : > { %p7525_p6 = pnand %p9202_p9, %p9201_p0 }
 0x89e   : > { %8290 = dma.done.wait (!%p7525_p6), %s5761_s11, 256  }
 0x89f   : > { %8292 = vsyncadd (!%p7525_p6), %s5761_s11, 4294967040  ;;  %p18_p12 = scmp.ge.s32.totalorder %s8392_s21, 4   ;;  %s9203_s15 = smov %s8299_s16 }
 0x8a0   : > { %s9204_s16 = smov %s8303_s17  ;;  %s9205_s17 = smov %s8404_s24 }
 0x8a1   : > { %s9206_s18 = smov %s8392_s21  ;;  %20 = sbr.rel (!%p18_p12) target bundleno = 8 (0x8), region = 116 }
 0x8a8   :  { %5766 = vsyncpa [#allocation4], 1 }
 0x8a9   :  { %5768 = vsyncpa [#allocation4 + $0x1], 1 }
 0x8aa   :  { %5769 = vsyncpa [#allocation7], 1 }
 0x8ab   :  { %5770 = vsyncpa [#allocation5], 1 }
 0x8ac   :  { %5772 = vsyncpa [#allocation5 + $0x1], 1 }

</bundles_post_ra>
